<compile_context>
chip_gen: v5e
topology: v5e:2x2
jax: 0.10.0
libtpu: 0.0.40
codegen_flags: <defaults>
</compile_context>

<pallas_src>
import functools

import jax
import jax.numpy as jnp
from jax.experimental import pallas as pl
from jax.experimental.pallas import tpu as pltpu


# --------------------------------------------------------------------------
# Tiling helpers
# --------------------------------------------------------------------------
_LIVE_F32_SLABS = 12   # ~3 gather buffers + head/rel/tail/combo/p/h1/h2/... live


def _cdiv(a, b):
    return -(-a // b)


def _round_up(x, m):
    return _cdiv(x, m) * m


def _pick_tb(B, LK, D, budget_bytes=24 << 20):
    """Batch-tile size from a VMEM live-bytes budget (sized for v7x 64 MiB)."""
    per_row = _LIVE_F32_SLABS * LK * D * 4
    tb = max(8, min(256, (budget_bytes // max(per_row, 1)) // 8 * 8))
    if B >= 16:
        # keep >= 2 grid steps so v7x's second TensorCore has work
        tb = min(tb, _round_up(_cdiv(B, 2), 8))
    return max(8, min(tb, _round_up(B, 8)))


# --------------------------------------------------------------------------
# Fused kernel: in-kernel gather + attention + 2-step RNN + ripple + NCF head
# --------------------------------------------------------------------------
def _fused_kernel(L, K, TB,
                  # scalar-prefetch (SMEM) index tables
                  items_ref, hidx_ref, ridx_ref, tidx_ref,
                  # regular inputs
                  scalars_ref,                 # SMEM (2,): [b_att, b_lin]
                  emb_hbm, trf_hbm,            # HBM (ANY) embedding tables
                  wah_ref, war_ref, wat_ref,   # (1, D) attention weight rows
                  brnn_ref,                    # (1, D) = b_ih + b_hh
                  wih_ref, whh_ref,            # (D, D) = W_ih^T / W_hh^T
                  w1a_ref, w1b_ref, b1_ref,
                  w2_ref, b2_ref, w3_ref, b3_ref,
                  wla_ref, wlb_ref,            # (1, D) rows of Linear(2D,1)
                  out_ref,                     # (1, TB) lane-major predictions
                  # scratch
                  head_buf, rel_buf, tail_buf,  # VMEM (TB*L*K, D)
                  item_buf,                     # VMEM (TB, D)
                  sems):                        # DMA sems (4,)
    f32 = jnp.float32
    D = emb_hbm.shape[1]
    LK = L * K
    n = TB * LK
    b0 = pl.program_id(0) * TB
    b_att = scalars_ref[0]
    b_lin = scalars_ref[1]

    # ---------------- in-kernel embedding gather (manual DMA) ----------------
    # Item rows first (few), then the ripple rows with a LAG-row wait window so
    # the number of outstanding DMAs stays bounded regardless of TB*L*K.
    @pl.loop(0, TB)
    def _(r):
        pltpu.make_async_copy(emb_hbm.at[pl.ds(items_ref[b0 + r], 1)],
                              item_buf.at[pl.ds(r, 1)], sems.at[3]).start()

    def _start_row(j):
        g = b0 * LK + j
        pltpu.make_async_copy(emb_hbm.at[pl.ds(hidx_ref[g], 1)],
                              head_buf.at[pl.ds(j, 1)], sems.at[0]).start()
        pltpu.make_async_copy(trf_hbm.at[pl.ds(ridx_ref[g], 1)],
                              rel_buf.at[pl.ds(j, 1)], sems.at[1]).start()
        pltpu.make_async_copy(emb_hbm.at[pl.ds(tidx_ref[g], 1)],
                              tail_buf.at[pl.ds(j, 1)], sems.at[2]).start()

    def _wait_row(j):
        # dummy same-shaped src windows are fine for waits (paged-attn pattern)
        pltpu.make_async_copy(emb_hbm.at[pl.ds(0, 1)],
                              head_buf.at[pl.ds(j, 1)], sems.at[0]).wait()
        pltpu.make_async_copy(trf_hbm.at[pl.ds(0, 1)],
                              rel_buf.at[pl.ds(j, 1)], sems.at[1]).wait()
        pltpu.make_async_copy(emb_hbm.at[pl.ds(0, 1)],
                              tail_buf.at[pl.ds(j, 1)], sems.at[2]).wait()

    LAG = 16

    @pl.loop(0, n + LAG)
    def _(j):
        @pl.when(j < n)
        def _():
            _start_row(j)

        @pl.when(j >= LAG)
        def _():
            _wait_row(j - LAG)

    @pl.loop(0, TB)
    def _(r):
        pltpu.make_async_copy(emb_hbm.at[pl.ds(0, 1)],
                              item_buf.at[pl.ds(r, 1)], sems.at[3]).wait()

    head = head_buf[...]            # (TB*LK, D)
    rel = rel_buf[...]
    tail = tail_buf[...]
    item = item_buf[...]            # (TB, D)

    # ---- attention scores: Linear(3D -> 1) as VPU multiply + lane reduce
    combo = head * wah_ref[...] + rel * war_ref[...] + tail * wat_ref[...]
    scores = jnp.sum(combo, axis=-1, keepdims=True) + b_att          # (TB*LK, 1)
    # softmax(sigmoid(s)) without max-subtraction (sigmoid is bounded in (0,1))
    p_un = jnp.exp(jax.nn.sigmoid(scores))

    # ---- 2-step tanh RNN, h0 = 0: two explicit tall-M 2-D MXU matmuls,
    #      no materialized concat copy.
    b_rnn = brnn_ref[...]                                            # (1, D)
    h1 = jnp.tanh(jnp.dot(head, wih_ref[...], preferred_element_type=f32)
                  + b_rnn)
    h2 = jnp.tanh(jnp.dot(tail, wih_ref[...], preferred_element_type=f32)
                  + jnp.dot(h1, whh_ref[...], preferred_element_type=f32)
                  + b_rnn)                                           # (TB*LK, D)

    # ---- per-hop attention-weighted ripple reduction, summed over hops
    p3 = p_un.reshape(TB, LK, 1)
    h3 = h2.reshape(TB, LK, D)
    user = jnp.zeros((TB, D), f32)
    for l in range(L):
        sl = slice(l * K, (l + 1) * K)
        num = jnp.sum(p3[:, sl, :] * h3[:, sl, :], axis=1)           # (TB, D)
        den = jnp.sum(p3[:, sl, :], axis=1)                          # (TB, 1)
        # TODO(synk): approx=True would move this to the EUP but perturbs
        # numerics; kept exact to preserve the rtol=1e-4/atol=1e-5 check.
        user = user + num * pl.reciprocal(den, approx=False)

    # ---- NCF head (dropout = identity, eval semantics)
    y = (jnp.dot(user, w1a_ref[...], preferred_element_type=f32)
         + jnp.dot(item, w1b_ref[...], preferred_element_type=f32)
         + b1_ref[...])
    y = jnp.maximum(y, 0.0)
    y = jnp.maximum(
        jnp.dot(y, w2_ref[...], preferred_element_type=f32) + b2_ref[...], 0.0)
    y1 = jax.nn.sigmoid(
        jnp.dot(y, w3_ref[...], preferred_element_type=f32) + b3_ref[...])
    y2 = user * item
    # final Linear(2D, 1): VPU multiply + lane reduce instead of (D,1) matvecs
    z = jnp.sum(y1 * wla_ref[...] + y2 * wlb_ref[...],
                axis=-1, keepdims=True) + b_lin                      # (TB, 1)
    pred = jax.nn.sigmoid(z)

    # ---- lane-major (1, TB) output: broadcast pred across lanes, keep the
    #      diagonal, reduce over sublanes (avoids a tiny-transpose relayout).
    row = jax.lax.broadcasted_iota(jnp.int32, (TB, TB), 0)
    col = jax.lax.broadcasted_iota(jnp.int32, (TB, TB), 1)
    out_ref[...] = jnp.sum(jnp.where(row == col, pred, 0.0),
                           axis=0, keepdims=True)


# --------------------------------------------------------------------------
# pallas_call wrapper
# --------------------------------------------------------------------------
def ncfg_call(items_pad, hflat, rflat, tflat, p, L, K, tb, nb):
    D = p['embedding'].shape[1]
    LK = L * K

    scalars = jnp.stack([p['b_att'].reshape(()),
                         p['blin'].reshape(())]).astype(jnp.float32)   # (2,)
    b_rnn = p['b_ih'] + p['b_hh']                                      # (1, D)

    def wspec(a):  # whole (resident) weight block
        nd = a.ndim
        return pl.BlockSpec(a.shape, lambda i, *_: (0,) * nd)

    smem_spec = pl.BlockSpec(memory_space=pltpu.MemorySpace.SMEM)
    any_spec = pl.BlockSpec(memory_space=pl.ANY)

    kernel = functools.partial(_fused_kernel, L, K, tb)

    # Explicit scoped-VMEM limit: v5e default is only 16 MiB; keep below v7x's
    # 64 MiB physical VMEM.
    per_row = _LIVE_F32_SLABS * LK * D * 4
    vmem_limit = int(min(60 << 20, max(32 << 20, 3 * tb * per_row)))

    grid_spec = pltpu.PrefetchScalarGridSpec(
        num_scalar_prefetch=4,                    # items, head/rel/tail indices
        grid=(nb,),
        in_specs=[smem_spec,                      # [b_att, b_lin]
                  any_spec, any_spec,             # embedding / transformer (HBM)
                  wspec(p['wa_h']), wspec(p['wa_r']), wspec(p['wa_t']),
                  wspec(b_rnn), wspec(p['w_ih_t']), wspec(p['w_hh_t']),
                  wspec(p['w1a']), wspec(p['w1b']), wspec(p['b1']),
                  wspec(p['w2']), wspec(p['b2']),
                  wspec(p['w3']), wspec(p['b3']),
                  wspec(p['wla']), wspec(p['wlb'])],
        out_specs=pl.BlockSpec((1, tb), lambda i, *_: (i, 0)),
        scratch_shapes=[pltpu.VMEM((tb * LK, D), jnp.float32),
                        pltpu.VMEM((tb * LK, D), jnp.float32),
                        pltpu.VMEM((tb * LK, D), jnp.float32),
                        pltpu.VMEM((tb, D), jnp.float32),
                        pltpu.SemaphoreType.DMA((4,))])

    out = pl.pallas_call(
        kernel,
        out_shape=jax.ShapeDtypeStruct((nb, tb), jnp.float32),
        grid_spec=grid_spec,
        compiler_params=pltpu.CompilerParams(
            dimension_semantics=("parallel",),
            vmem_limit_bytes=vmem_limit),
    )(items_pad, hflat, rflat, tflat,
      scalars, p['embedding'], p['transformer'],
      p['wa_h'], p['wa_r'], p['wa_t'], b_rnn, p['w_ih_t'], p['w_hh_t'],
      p['w1a'], p['w1b'], p['b1'], p['w2'], p['b2'], p['w3'], p['b3'],
      p['wla'], p['wlb'])
    return out                                     # (nb, tb) lane-major


# --------------------------------------------------------------------------
# Full NCFG forward (using_ncf=True): index repack/pad + the fused kernel
# --------------------------------------------------------------------------
def ncfg_forward(items, heads_idx, rels_idx, tails_idx, p):
    L, B, K = heads_idx.shape
    D = p['embedding'].shape[1]
    LK = L * K

    tb = _pick_tb(B, LK, D)
    nb = _cdiv(B, tb)
    B_pad = nb * tb

    def repack(idx):   # (L, B, K) -> (B, L*K), hop-major within each row
        return jnp.transpose(idx, (1, 0, 2)).reshape(B, LK)

    def pad_rows(x):   # zero-pad batch rows up to B_pad (index 0 = valid row)
        return jnp.pad(x, ((0, B_pad - B),) + ((0, 0),) * (x.ndim - 1))

    hflat = pad_rows(repack(heads_idx)).reshape(-1).astype(jnp.int32)
    rflat = pad_rows(repack(rels_idx)).reshape(-1).astype(jnp.int32)
    tflat = pad_rows(repack(tails_idx)).reshape(-1).astype(jnp.int32)
    items_pad = pad_rows(items).astype(jnp.int32)

    out = ncfg_call(items_pad, hflat, rflat, tflat, p, L, K, tb, nb)
    return out.reshape(-1)[:B]                     # (B,)


# --------------------------------------------------------------------------
# Pure-JAX reference for correctness checking
# --------------------------------------------------------------------------
def ncfg_reference(items, heads_idx, rels_idx, tails_idx, p):
    L = heads_idx.shape[0]
    o_sum = 0.0
    for l in range(L):
        head = p['embedding'][heads_idx[l]]
        rel = p['transformer'][rels_idx[l]]
        tail = p['embedding'][tails_idx[l]]
        scores = (head @ p['wa_h'][0] + rel @ p['wa_r'][0]
                  + tail @ p['wa_t'][0])[..., None] + p['b_att'][0, 0]
        pi = jax.nn.softmax(jax.nn.sigmoid(scores), axis=1)
        b = p['b_ih'] + p['b_hh']
        h1 = jnp.tanh(head @ p['w_ih_t'] + b)
        h2 = jnp.tanh(tail @ p['w_ih_t'] + h1 @ p['w_hh_t'] + b)
        o_sum = o_sum + jnp.sum(pi * h2, axis=1)
    user = o_sum
    item = p['embedding'][items]
    y = jax.nn.relu(user @ p['w1a'] + item @ p['w1b'] + p['b1'])
    y = jax.nn.relu(y @ p['w2'] + p['b2'])
    y1 = jax.nn.sigmoid(y @ p['w3'] + p['b3'])
    y2 = user * item
    z = jnp.sum(y1 * p['wla'] + y2 * p['wlb'], axis=-1) + p['blin'][0, 0]
    return jax.nn.sigmoid(z)


# --------------------------------------------------------------------------
# Deterministic parameter init (shapes follow NCFG.__init__ / NCF.__init__)
# --------------------------------------------------------------------------
def init_params(key, dim, n_entity, n_user, n_relation):
    ks = jax.random.split(key, 18)
    f32 = jnp.float32
    r = lambda k, shape, s=0.1: (s * jax.random.normal(k, shape)).astype(f32)
    p = {}
    p['embedding'] = r(ks[0], (n_entity, dim), 0.3)
    p['user_embedding'] = r(ks[1], (n_user, dim), 0.3)       # unused in forward
    p['transformer'] = r(ks[2], (n_relation, dim), 0.3)
    # weight_attention = Linear(3*dim, 1): weight (1, 3*dim) split into 3x(1, dim)
    wa = r(ks[3], (1, 3 * dim))
    p['wa_h'], p['wa_r'], p['wa_t'] = wa[:, :dim], wa[:, dim:2 * dim], wa[:, 2 * dim:]
    p['b_att'] = r(ks[4], (1, 1))
    # RNN(dim, dim, 1): stored pre-transposed so kernel does x @ W^T directly
    p['w_ih_t'] = r(ks[5], (dim, dim))
    p['w_hh_t'] = r(ks[6], (dim, dim))
    p['b_ih'] = r(ks[7], (1, dim))
    p['b_hh'] = r(ks[8], (1, dim))
    # NCF: l1 = Linear(2*dim, dim), split along the input (concat) dim
    w1 = r(ks[9], (2 * dim, dim))
    p['w1a'], p['w1b'] = w1[:dim], w1[dim:]
    p['b1'] = r(ks[10], (1, dim))
    p['w2'] = r(ks[11], (dim, dim))
    p['b2'] = r(ks[12], (1, dim))
    p['w3'] = r(ks[13], (dim, dim))
    p['b3'] = r(ks[14], (1, dim))
    # NCF.linear = Linear(2*dim, 1), stored as two (1, dim) rows
    wlin = r(ks[15], (1, 2 * dim))
    p['wla'], p['wlb'] = wlin[:, :dim], wlin[:, dim:]
    p['blin'] = r(ks[16], (1, 1))
    return p


if __name__ == "__main__":
    dim = 16          # D
    n_entity = 32
    n_user = 4
    n_relation = 6
    L = 2             # number of ripple hops
    K = 8             # ripple-set size per user per hop
    B = 2             # batch (number of (user, item) pairs)

    key = jax.random.PRNGKey(0)
    kp, ki, kh, kr, kt = jax.random.split(key, 5)
    params = init_params(kp, dim, n_entity, n_user, n_relation)

    # Synthetic pairs / ripple sets (already gathered into index tables).
    items = jax.random.randint(ki, (B,), 0, n_entity)
    heads_idx = jax.random.randint(kh, (L, B, K), 0, n_entity)
    rels_idx = jax.random.randint(kr, (L, B, K), 0, n_relation)
    tails_idx = jax.random.randint(kt, (L, B, K), 0, n_entity)

    out = ncfg_forward(items, heads_idx, rels_idx, tails_idx, params)
    out = jax.block_until_ready(out)

    ref = ncfg_reference(items, heads_idx, rels_idx, tails_idx, params)
    assert out.shape == (B,)
    assert jnp.allclose(out, ref, rtol=1e-4, atol=1e-5), (out, ref)

    print("KERNEL_OK")
</pallas_src>

<mosaic_0001>
module attributes {stable_mosaic.version = 11 : i64} {
  func.func @_fused_kernel(%arg0: i32, %arg1: memref<8xi32, #tpu.memory_space<smem>>, %arg2: memref<128xi32, #tpu.memory_space<smem>>, %arg3: memref<128xi32, #tpu.memory_space<smem>>, %arg4: memref<128xi32, #tpu.memory_space<smem>>, %arg5: memref<2xf32, #tpu.memory_space<smem>>, %arg6: memref<32x16xf32, #tpu.memory_space<any>>, %arg7: memref<6x16xf32, #tpu.memory_space<any>>, %arg8: memref<1x16xf32, #tpu.memory_space<vmem>>, %arg9: memref<1x16xf32, #tpu.memory_space<vmem>>, %arg10: memref<1x16xf32, #tpu.memory_space<vmem>>, %arg11: memref<1x16xf32, #tpu.memory_space<vmem>>, %arg12: memref<16x16xf32, #tpu.memory_space<vmem>>, %arg13: memref<16x16xf32, #tpu.memory_space<vmem>>, %arg14: memref<16x16xf32, #tpu.memory_space<vmem>>, %arg15: memref<16x16xf32, #tpu.memory_space<vmem>>, %arg16: memref<1x16xf32, #tpu.memory_space<vmem>>, %arg17: memref<16x16xf32, #tpu.memory_space<vmem>>, %arg18: memref<1x16xf32, #tpu.memory_space<vmem>>, %arg19: memref<16x16xf32, #tpu.memory_space<vmem>>, %arg20: memref<1x16xf32, #tpu.memory_space<vmem>>, %arg21: memref<1x16xf32, #tpu.memory_space<vmem>>, %arg22: memref<1x16xf32, #tpu.memory_space<vmem>>, %arg23: memref<1x8xf32, #tpu.memory_space<vmem>>, %arg24: memref<128x16xf32, #tpu.memory_space<vmem>>, %arg25: memref<128x16xf32, #tpu.memory_space<vmem>>, %arg26: memref<128x16xf32, #tpu.memory_space<vmem>>, %arg27: memref<8x16xf32, #tpu.memory_space<vmem>>, %arg28: memref<4x!tpu.dma_semaphore, #tpu.memory_space<semaphore_mem>>) attributes {dimension_semantics = [#tpu.dimension_semantics<parallel>], iteration_bounds = array<i64: 1>, scalar_prefetch = 4 : i64, scratch_operands = 5 : i64, tpu.core_type = #tpu.core_type<tc>, window_params = [{transform_indices = @transform_0, window_bounds = array<i64: 2>}, {}, {}, {pipeline_mode = #tpu.pipeline_mode<synchronous>, transform_indices = @transform_3, window_bounds = array<i64: 1, 16>}, {pipeline_mode = #tpu.pipeline_mode<synchronous>, transform_indices = @transform_4, window_bounds = array<i64: 1, 16>}, {pipeline_mode = #tpu.pipeline_mode<synchronous>, transform_indices = @transform_5, window_bounds = array<i64: 1, 16>}, {pipeline_mode = #tpu.pipeline_mode<synchronous>, transform_indices = @transform_6, window_bounds = array<i64: 1, 16>}, {pipeline_mode = #tpu.pipeline_mode<synchronous>, transform_indices = @transform_7, window_bounds = array<i64: 16, 16>}, {pipeline_mode = #tpu.pipeline_mode<synchronous>, transform_indices = @transform_8, window_bounds = array<i64: 16, 16>}, {pipeline_mode = #tpu.pipeline_mode<synchronous>, transform_indices = @transform_9, window_bounds = array<i64: 16, 16>}, {pipeline_mode = #tpu.pipeline_mode<synchronous>, transform_indices = @transform_10, window_bounds = array<i64: 16, 16>}, {pipeline_mode = #tpu.pipeline_mode<synchronous>, transform_indices = @transform_11, window_bounds = array<i64: 1, 16>}, {pipeline_mode = #tpu.pipeline_mode<synchronous>, transform_indices = @transform_12, window_bounds = array<i64: 16, 16>}, {pipeline_mode = #tpu.pipeline_mode<synchronous>, transform_indices = @transform_13, window_bounds = array<i64: 1, 16>}, {pipeline_mode = #tpu.pipeline_mode<synchronous>, transform_indices = @transform_14, window_bounds = array<i64: 16, 16>}, {pipeline_mode = #tpu.pipeline_mode<synchronous>, transform_indices = @transform_15, window_bounds = array<i64: 1, 16>}, {pipeline_mode = #tpu.pipeline_mode<synchronous>, transform_indices = @transform_16, window_bounds = array<i64: 1, 16>}, {pipeline_mode = #tpu.pipeline_mode<synchronous>, transform_indices = @transform_17, window_bounds = array<i64: 1, 16>}, {transform_indices = @transform_18, window_bounds = array<i64: 1, 8>}]} {
    %c8_i32 = arith.constant 8 : i32
    %0 = arith.muli %arg0, %c8_i32 : i32
    %c0 = arith.constant 0 : index
    %1 = memref.load %arg5[%c0] : memref<2xf32, #tpu.memory_space<smem>>
    %c1 = arith.constant 1 : index
    %2 = memref.load %arg5[%c1] : memref<2xf32, #tpu.memory_space<smem>>
    %c0_i32 = arith.constant 0 : i32
    %c8_i32_0 = arith.constant 8 : i32
    %3 = arith.addi %c0_i32, %c8_i32_0 : i32
    %c1_i32 = arith.constant 1 : i32
    scf.for %arg29 = %c0_i32 to %3 step %c1_i32  : i32 {
      %c1_i32_71 = arith.constant 1 : i32
      %124 = arith.muli %arg29, %c1_i32_71 : i32
      %c0_i32_72 = arith.constant 0 : i32
      %125 = arith.addi %c0_i32_72, %124 : i32
      %126 = arith.addi %0, %125 : i32
      %127 = arith.index_cast %126 : i32 to index
      %128 = memref.load %arg1[%127] : memref<8xi32, #tpu.memory_space<smem>>
      %c3_i32 = arith.constant 3 : i32
      %c0_i32_73 = arith.constant 0 : i32
      %129 = tpu.memref_slice %arg6[%128, %c0_i32_73] : memref<32x16xf32, #tpu.memory_space<any>> -> memref<1x16xf32, #tpu.memory_space<any>>
      %c0_i32_74 = arith.constant 0 : i32
      %130 = tpu.memref_slice %arg27[%125, %c0_i32_74] : memref<8x16xf32, #tpu.memory_space<vmem>> -> memref<1x16xf32, #tpu.memory_space<vmem>>
      %131 = tpu.memref_slice %arg28[%c3_i32] : memref<4x!tpu.dma_semaphore, #tpu.memory_space<semaphore_mem>> -> memref<1x!tpu.dma_semaphore, #tpu.memory_space<semaphore_mem>>
      %132 = tpu.memref_squeeze %131 : memref<1x!tpu.dma_semaphore, #tpu.memory_space<semaphore_mem>> -> memref<!tpu.dma_semaphore, #tpu.memory_space<semaphore_mem>>
      tpu.enqueue_dma source(%129 : memref<1x16xf32, #tpu.memory_space<any>>) target(%130 : memref<1x16xf32, #tpu.memory_space<vmem>>) target_semaphore(%132 : memref<!tpu.dma_semaphore, #tpu.memory_space<semaphore_mem>>)
    }
    %c8_i32_1 = arith.constant 8 : i32
    %c0_i32_2 = arith.constant 0 : i32
    %c144_i32 = arith.constant 144 : i32
    %4 = arith.addi %c0_i32_2, %c144_i32 : i32
    %c1_i32_3 = arith.constant 1 : i32
    scf.for %arg29 = %c0_i32_2 to %4 step %c1_i32_3  : i32 {
      %c1_i32_71 = arith.constant 1 : i32
      %124 = arith.muli %arg29, %c1_i32_71 : i32
      %c0_i32_72 = arith.constant 0 : i32
      %125 = arith.addi %c0_i32_72, %124 : i32
      %c128_i32 = arith.constant 128 : i32
      %126 = arith.cmpi slt, %125, %c128_i32 : i32
      %127 = arith.extui %126 : i1 to i32
      %c0_i32_73 = arith.constant 0 : i32
      %128 = arith.cmpi ne, %127, %c0_i32_73 : i32
      scf.if %128 {
        %c16_i32_75 = arith.constant 16 : i32
        %132 = arith.muli %0, %c16_i32_75 : i32
        %133 = arith.addi %132, %125 : i32
        %134 = arith.index_cast %133 : i32 to index
        %135 = memref.load %arg2[%134] : memref<128xi32, #tpu.memory_space<smem>>
        %c0_i32_76 = arith.constant 0 : i32
        %c0_i32_77 = arith.constant 0 : i32
        %136 = tpu.memref_slice %arg6[%135, %c0_i32_77] : memref<32x16xf32, #tpu.memory_space<any>> -> memref<1x16xf32, #tpu.memory_space<any>>
        %c0_i32_78 = arith.constant 0 : i32
        %137 = tpu.memref_slice %arg24[%125, %c0_i32_78] : memref<128x16xf32, #tpu.memory_space<vmem>> -> memref<1x16xf32, #tpu.memory_space<vmem>>
        %138 = tpu.memref_slice %arg28[%c0_i32_76] : memref<4x!tpu.dma_semaphore, #tpu.memory_space<semaphore_mem>> -> memref<1x!tpu.dma_semaphore, #tpu.memory_space<semaphore_mem>>
        %139 = tpu.memref_squeeze %138 : memref<1x!tpu.dma_semaphore, #tpu.memory_space<semaphore_mem>> -> memref<!tpu.dma_semaphore, #tpu.memory_space<semaphore_mem>>
        tpu.enqueue_dma source(%136 : memref<1x16xf32, #tpu.memory_space<any>>) target(%137 : memref<1x16xf32, #tpu.memory_space<vmem>>) target_semaphore(%139 : memref<!tpu.dma_semaphore, #tpu.memory_space<semaphore_mem>>)
        %140 = arith.index_cast %133 : i32 to index
        %141 = memref.load %arg3[%140] : memref<128xi32, #tpu.memory_space<smem>>
        %c1_i32_79 = arith.constant 1 : i32
        %c0_i32_80 = arith.constant 0 : i32
        %142 = tpu.memref_slice %arg7[%141, %c0_i32_80] : memref<6x16xf32, #tpu.memory_space<any>> -> memref<1x16xf32, #tpu.memory_space<any>>
        %c0_i32_81 = arith.constant 0 : i32
        %143 = tpu.memref_slice %arg25[%125, %c0_i32_81] : memref<128x16xf32, #tpu.memory_space<vmem>> -> memref<1x16xf32, #tpu.memory_space<vmem>>
        %144 = tpu.memref_slice %arg28[%c1_i32_79] : memref<4x!tpu.dma_semaphore, #tpu.memory_space<semaphore_mem>> -> memref<1x!tpu.dma_semaphore, #tpu.memory_space<semaphore_mem>>
        %145 = tpu.memref_squeeze %144 : memref<1x!tpu.dma_semaphore, #tpu.memory_space<semaphore_mem>> -> memref<!tpu.dma_semaphore, #tpu.memory_space<semaphore_mem>>
        tpu.enqueue_dma source(%142 : memref<1x16xf32, #tpu.memory_space<any>>) target(%143 : memref<1x16xf32, #tpu.memory_space<vmem>>) target_semaphore(%145 : memref<!tpu.dma_semaphore, #tpu.memory_space<semaphore_mem>>)
        %146 = arith.index_cast %133 : i32 to index
        %147 = memref.load %arg4[%146] : memref<128xi32, #tpu.memory_space<smem>>
        %c2_i32 = arith.constant 2 : i32
        %c0_i32_82 = arith.constant 0 : i32
        %148 = tpu.memref_slice %arg6[%147, %c0_i32_82] : memref<32x16xf32, #tpu.memory_space<any>> -> memref<1x16xf32, #tpu.memory_space<any>>
        %c0_i32_83 = arith.constant 0 : i32
        %149 = tpu.memref_slice %arg26[%125, %c0_i32_83] : memref<128x16xf32, #tpu.memory_space<vmem>> -> memref<1x16xf32, #tpu.memory_space<vmem>>
        %150 = tpu.memref_slice %arg28[%c2_i32] : memref<4x!tpu.dma_semaphore, #tpu.memory_space<semaphore_mem>> -> memref<1x!tpu.dma_semaphore, #tpu.memory_space<semaphore_mem>>
        %151 = tpu.memref_squeeze %150 : memref<1x!tpu.dma_semaphore, #tpu.memory_space<semaphore_mem>> -> memref<!tpu.dma_semaphore, #tpu.memory_space<semaphore_mem>>
        tpu.enqueue_dma source(%148 : memref<1x16xf32, #tpu.memory_space<any>>) target(%149 : memref<1x16xf32, #tpu.memory_space<vmem>>) target_semaphore(%151 : memref<!tpu.dma_semaphore, #tpu.memory_space<semaphore_mem>>)
      } else {
      }
      %c16_i32 = arith.constant 16 : i32
      %129 = arith.cmpi sge, %125, %c16_i32 : i32
      %130 = arith.extui %129 : i1 to i32
      %c0_i32_74 = arith.constant 0 : i32
      %131 = arith.cmpi ne, %130, %c0_i32_74 : i32
      scf.if %131 {
        %c16_i32_75 = arith.constant 16 : i32
        %132 = arith.subi %125, %c16_i32_75 : i32
        %c0_i32_76 = arith.constant 0 : i32
        %c0_i32_77 = arith.constant 0 : i32
        %c0_i32_78 = arith.constant 0 : i32
        %133 = tpu.memref_slice %arg6[%c0_i32_77, %c0_i32_78] : memref<32x16xf32, #tpu.memory_space<any>> -> memref<1x16xf32, #tpu.memory_space<any>>
        %c0_i32_79 = arith.constant 0 : i32
        %134 = tpu.memref_slice %arg24[%132, %c0_i32_79] : memref<128x16xf32, #tpu.memory_space<vmem>> -> memref<1x16xf32, #tpu.memory_space<vmem>>
        %135 = tpu.memref_slice %arg28[%c0_i32_76] : memref<4x!tpu.dma_semaphore, #tpu.memory_space<semaphore_mem>> -> memref<1x!tpu.dma_semaphore, #tpu.memory_space<semaphore_mem>>
        %136 = tpu.memref_squeeze %135 : memref<1x!tpu.dma_semaphore, #tpu.memory_space<semaphore_mem>> -> memref<!tpu.dma_semaphore, #tpu.memory_space<semaphore_mem>>
        tpu.wait_dma2 semaphore(%136 : memref<!tpu.dma_semaphore, #tpu.memory_space<semaphore_mem>>) src(%133 : memref<1x16xf32, #tpu.memory_space<any>>) dst(%134 : memref<1x16xf32, #tpu.memory_space<vmem>>)
        %c1_i32_80 = arith.constant 1 : i32
        %c0_i32_81 = arith.constant 0 : i32
        %c0_i32_82 = arith.constant 0 : i32
        %137 = tpu.memref_slice %arg7[%c0_i32_81, %c0_i32_82] : memref<6x16xf32, #tpu.memory_space<any>> -> memref<1x16xf32, #tpu.memory_space<any>>
        %c0_i32_83 = arith.constant 0 : i32
        %138 = tpu.memref_slice %arg25[%132, %c0_i32_83] : memref<128x16xf32, #tpu.memory_space<vmem>> -> memref<1x16xf32, #tpu.memory_space<vmem>>
        %139 = tpu.memref_slice %arg28[%c1_i32_80] : memref<4x!tpu.dma_semaphore, #tpu.memory_space<semaphore_mem>> -> memref<1x!tpu.dma_semaphore, #tpu.memory_space<semaphore_mem>>
        %140 = tpu.memref_squeeze %139 : memref<1x!tpu.dma_semaphore, #tpu.memory_space<semaphore_mem>> -> memref<!tpu.dma_semaphore, #tpu.memory_space<semaphore_mem>>
        tpu.wait_dma2 semaphore(%140 : memref<!tpu.dma_semaphore, #tpu.memory_space<semaphore_mem>>) src(%137 : memref<1x16xf32, #tpu.memory_space<any>>) dst(%138 : memref<1x16xf32, #tpu.memory_space<vmem>>)
        %c2_i32 = arith.constant 2 : i32
        %c0_i32_84 = arith.constant 0 : i32
        %c0_i32_85 = arith.constant 0 : i32
        %141 = tpu.memref_slice %arg6[%c0_i32_84, %c0_i32_85] : memref<32x16xf32, #tpu.memory_space<any>> -> memref<1x16xf32, #tpu.memory_space<any>>
        %c0_i32_86 = arith.constant 0 : i32
        %142 = tpu.memref_slice %arg26[%132, %c0_i32_86] : memref<128x16xf32, #tpu.memory_space<vmem>> -> memref<1x16xf32, #tpu.memory_space<vmem>>
        %143 = tpu.memref_slice %arg28[%c2_i32] : memref<4x!tpu.dma_semaphore, #tpu.memory_space<semaphore_mem>> -> memref<1x!tpu.dma_semaphore, #tpu.memory_space<semaphore_mem>>
        %144 = tpu.memref_squeeze %143 : memref<1x!tpu.dma_semaphore, #tpu.memory_space<semaphore_mem>> -> memref<!tpu.dma_semaphore, #tpu.memory_space<semaphore_mem>>
        tpu.wait_dma2 semaphore(%144 : memref<!tpu.dma_semaphore, #tpu.memory_space<semaphore_mem>>) src(%141 : memref<1x16xf32, #tpu.memory_space<any>>) dst(%142 : memref<1x16xf32, #tpu.memory_space<vmem>>)
      } else {
      }
    }
    %c144_i32_4 = arith.constant 144 : i32
    %c0_i32_5 = arith.constant 0 : i32
    %c8_i32_6 = arith.constant 8 : i32
    %5 = arith.addi %c0_i32_5, %c8_i32_6 : i32
    %c1_i32_7 = arith.constant 1 : i32
    scf.for %arg29 = %c0_i32_5 to %5 step %c1_i32_7  : i32 {
      %c1_i32_71 = arith.constant 1 : i32
      %124 = arith.muli %arg29, %c1_i32_71 : i32
      %c0_i32_72 = arith.constant 0 : i32
      %125 = arith.addi %c0_i32_72, %124 : i32
      %c3_i32 = arith.constant 3 : i32
      %c0_i32_73 = arith.constant 0 : i32
      %c0_i32_74 = arith.constant 0 : i32
      %126 = tpu.memref_slice %arg6[%c0_i32_73, %c0_i32_74] : memref<32x16xf32, #tpu.memory_space<any>> -> memref<1x16xf32, #tpu.memory_space<any>>
      %c0_i32_75 = arith.constant 0 : i32
      %127 = tpu.memref_slice %arg27[%125, %c0_i32_75] : memref<8x16xf32, #tpu.memory_space<vmem>> -> memref<1x16xf32, #tpu.memory_space<vmem>>
      %128 = tpu.memref_slice %arg28[%c3_i32] : memref<4x!tpu.dma_semaphore, #tpu.memory_space<semaphore_mem>> -> memref<1x!tpu.dma_semaphore, #tpu.memory_space<semaphore_mem>>
      %129 = tpu.memref_squeeze %128 : memref<1x!tpu.dma_semaphore, #tpu.memory_space<semaphore_mem>> -> memref<!tpu.dma_semaphore, #tpu.memory_space<semaphore_mem>>
      tpu.wait_dma2 semaphore(%129 : memref<!tpu.dma_semaphore, #tpu.memory_space<semaphore_mem>>) src(%126 : memref<1x16xf32, #tpu.memory_space<any>>) dst(%127 : memref<1x16xf32, #tpu.memory_space<vmem>>)
    }
    %c8_i32_8 = arith.constant 8 : i32
    %c0_9 = arith.constant 0 : index
    %c0_10 = arith.constant 0 : index
    %6 = vector.load %arg24[%c0_9, %c0_10] : memref<128x16xf32, #tpu.memory_space<vmem>>, vector<128x16xf32>
    %c0_11 = arith.constant 0 : index
    %c0_12 = arith.constant 0 : index
    %7 = vector.load %arg25[%c0_11, %c0_12] : memref<128x16xf32, #tpu.memory_space<vmem>>, vector<128x16xf32>
    %c0_13 = arith.constant 0 : index
    %c0_14 = arith.constant 0 : index
    %8 = vector.load %arg26[%c0_13, %c0_14] : memref<128x16xf32, #tpu.memory_space<vmem>>, vector<128x16xf32>
    %c0_15 = arith.constant 0 : index
    %c0_16 = arith.constant 0 : index
    %9 = vector.load %arg27[%c0_15, %c0_16] : memref<8x16xf32, #tpu.memory_space<vmem>>, vector<8x16xf32>
    %c0_17 = arith.constant 0 : index
    %c0_18 = arith.constant 0 : index
    %10 = vector.load %arg8[%c0_17, %c0_18] : memref<1x16xf32, #tpu.memory_space<vmem>>, vector<1x16xf32>
    %11 = vector.broadcast %10 : vector<1x16xf32> to vector<128x16xf32>
    %12 = arith.mulf %6, %11 : vector<128x16xf32>
    %c0_19 = arith.constant 0 : index
    %c0_20 = arith.constant 0 : index
    %13 = vector.load %arg9[%c0_19, %c0_20] : memref<1x16xf32, #tpu.memory_space<vmem>>, vector<1x16xf32>
    %14 = vector.broadcast %13 : vector<1x16xf32> to vector<128x16xf32>
    %15 = arith.mulf %7, %14 : vector<128x16xf32>
    %16 = arith.addf %12, %15 : vector<128x16xf32>
    %c0_21 = arith.constant 0 : index
    %c0_22 = arith.constant 0 : index
    %17 = vector.load %arg10[%c0_21, %c0_22] : memref<1x16xf32, #tpu.memory_space<vmem>>, vector<1x16xf32>
    %18 = vector.broadcast %17 : vector<1x16xf32> to vector<128x16xf32>
    %19 = arith.mulf %8, %18 : vector<128x16xf32>
    %20 = arith.addf %16, %19 : vector<128x16xf32>
    %cst = arith.constant dense<0.000000e+00> : vector<128xf32>
    %21 = vector.multi_reduction <add>, %20, %cst [1] : vector<128x16xf32> to vector<128xf32>
    %22 = vector.shape_cast %21 : vector<128xf32> to vector<128x1xf32>
    %23 = vector.broadcast %1 : f32 to vector<128x1xf32>
    %24 = arith.addf %22, %23 : vector<128x1xf32>
    %25 = arith.negf %24 : vector<128x1xf32>
    %26 = math.exp %25 : vector<128x1xf32>
    %cst_23 = arith.constant 1.000000e+00 : f32
    %27 = vector.broadcast %cst_23 : f32 to vector<128x1xf32>
    %28 = arith.addf %27, %26 : vector<128x1xf32>
    %29 = arith.divf %27, %28 : vector<128x1xf32>
    %30 = math.exp %29 : vector<128x1xf32>
    %c0_24 = arith.constant 0 : index
    %c0_25 = arith.constant 0 : index
    %31 = vector.load %arg11[%c0_24, %c0_25] : memref<1x16xf32, #tpu.memory_space<vmem>>, vector<1x16xf32>
    %c0_26 = arith.constant 0 : index
    %c0_27 = arith.constant 0 : index
    %32 = vector.load %arg12[%c0_26, %c0_27] : memref<16x16xf32, #tpu.memory_space<vmem>>, vector<16x16xf32>
    %cst_28 = arith.constant dense<0.000000e+00> : vector<128x16xf32>
    %33 = tpu.matmul %6, %32, %cst_28 {dimension_numbers = #tpu.dot_dimension_numbers<[1], [0], [0], [1], [0, 0, 1, 1], [], []>} : vector<128x16xf32>, vector<16x16xf32>, vector<128x16xf32> -> vector<128x16xf32>
    %34 = vector.broadcast %31 : vector<1x16xf32> to vector<128x16xf32>
    %35 = arith.addf %33, %34 : vector<128x16xf32>
    %36 = math.tanh %35 : vector<128x16xf32>
    %c0_29 = arith.constant 0 : index
    %c0_30 = arith.constant 0 : index
    %37 = vector.load %arg12[%c0_29, %c0_30] : memref<16x16xf32, #tpu.memory_space<vmem>>, vector<16x16xf32>
    %cst_31 = arith.constant dense<0.000000e+00> : vector<128x16xf32>
    %38 = tpu.matmul %8, %37, %cst_31 {dimension_numbers = #tpu.dot_dimension_numbers<[1], [0], [0], [1], [0, 0, 1, 1], [], []>} : vector<128x16xf32>, vector<16x16xf32>, vector<128x16xf32> -> vector<128x16xf32>
    %c0_32 = arith.constant 0 : index
    %c0_33 = arith.constant 0 : index
    %39 = vector.load %arg13[%c0_32, %c0_33] : memref<16x16xf32, #tpu.memory_space<vmem>>, vector<16x16xf32>
    %cst_34 = arith.constant dense<0.000000e+00> : vector<128x16xf32>
    %40 = tpu.matmul %36, %39, %cst_34 {dimension_numbers = #tpu.dot_dimension_numbers<[1], [0], [0], [1], [0, 0, 1, 1], [], []>} : vector<128x16xf32>, vector<16x16xf32>, vector<128x16xf32> -> vector<128x16xf32>
    %41 = arith.addf %38, %40 : vector<128x16xf32>
    %42 = vector.broadcast %31 : vector<1x16xf32> to vector<128x16xf32>
    %43 = arith.addf %41, %42 : vector<128x16xf32>
    %44 = math.tanh %43 : vector<128x16xf32>
    %45 = vector.shape_cast %30 : vector<128x1xf32> to vector<8x16x1xf32>
    %46 = vector.shape_cast %44 : vector<128x16xf32> to vector<8x16x16xf32>
    %cst_35 = arith.constant 0.000000e+00 : f32
    %47 = vector.broadcast %cst_35 : f32 to vector<8x16xf32>
    %48 = vector.extract_strided_slice %45 {offsets = [0, 0, 0], sizes = [8, 8, 1], strides = [1, 1, 1]} : vector<8x16x1xf32> to vector<8x8x1xf32>
    %49 = vector.extract_strided_slice %46 {offsets = [0, 0, 0], sizes = [8, 8, 16], strides = [1, 1, 1]} : vector<8x16x16xf32> to vector<8x8x16xf32>
    %50 = vector.broadcast %48 : vector<8x8x1xf32> to vector<8x8x16xf32>
    %51 = arith.mulf %50, %49 : vector<8x8x16xf32>
    %cst_36 = arith.constant dense<0.000000e+00> : vector<8x16xf32>
    %52 = vector.multi_reduction <add>, %51, %cst_36 [1] : vector<8x8x16xf32> to vector<8x16xf32>
    %53 = vector.extract_strided_slice %45 {offsets = [0, 0, 0], sizes = [8, 8, 1], strides = [1, 1, 1]} : vector<8x16x1xf32> to vector<8x8x1xf32>
    %cst_37 = arith.constant dense<0.000000e+00> : vector<8x1xf32>
    %54 = vector.multi_reduction <add>, %53, %cst_37 [1] : vector<8x8x1xf32> to vector<8x1xf32>
    %55 = tpu.reciprocal %54 : vector<8x1xf32> -> vector<8x1xf32>
    %56 = vector.broadcast %55 : vector<8x1xf32> to vector<8x16xf32>
    %57 = arith.mulf %52, %56 : vector<8x16xf32>
    %58 = arith.addf %47, %57 : vector<8x16xf32>
    %59 = vector.extract_strided_slice %45 {offsets = [0, 8, 0], sizes = [8, 8, 1], strides = [1, 1, 1]} : vector<8x16x1xf32> to vector<8x8x1xf32>
    %60 = vector.extract_strided_slice %46 {offsets = [0, 8, 0], sizes = [8, 8, 16], strides = [1, 1, 1]} : vector<8x16x16xf32> to vector<8x8x16xf32>
    %61 = vector.broadcast %59 : vector<8x8x1xf32> to vector<8x8x16xf32>
    %62 = arith.mulf %61, %60 : vector<8x8x16xf32>
    %cst_38 = arith.constant dense<0.000000e+00> : vector<8x16xf32>
    %63 = vector.multi_reduction <add>, %62, %cst_38 [1] : vector<8x8x16xf32> to vector<8x16xf32>
    %64 = vector.extract_strided_slice %45 {offsets = [0, 8, 0], sizes = [8, 8, 1], strides = [1, 1, 1]} : vector<8x16x1xf32> to vector<8x8x1xf32>
    %cst_39 = arith.constant dense<0.000000e+00> : vector<8x1xf32>
    %65 = vector.multi_reduction <add>, %64, %cst_39 [1] : vector<8x8x1xf32> to vector<8x1xf32>
    %66 = tpu.reciprocal %65 : vector<8x1xf32> -> vector<8x1xf32>
    %67 = vector.broadcast %66 : vector<8x1xf32> to vector<8x16xf32>
    %68 = arith.mulf %63, %67 : vector<8x16xf32>
    %69 = arith.addf %58, %68 : vector<8x16xf32>
    %c0_40 = arith.constant 0 : index
    %c0_41 = arith.constant 0 : index
    %70 = vector.load %arg14[%c0_40, %c0_41] : memref<16x16xf32, #tpu.memory_space<vmem>>, vector<16x16xf32>
    %cst_42 = arith.constant dense<0.000000e+00> : vector<8x16xf32>
    %71 = tpu.matmul %69, %70, %cst_42 {dimension_numbers = #tpu.dot_dimension_numbers<[1], [0], [0], [1], [0, 0, 1, 1], [], []>} : vector<8x16xf32>, vector<16x16xf32>, vector<8x16xf32> -> vector<8x16xf32>
    %c0_43 = arith.constant 0 : index
    %c0_44 = arith.constant 0 : index
    %72 = vector.load %arg15[%c0_43, %c0_44] : memref<16x16xf32, #tpu.memory_space<vmem>>, vector<16x16xf32>
    %cst_45 = arith.constant dense<0.000000e+00> : vector<8x16xf32>
    %73 = tpu.matmul %9, %72, %cst_45 {dimension_numbers = #tpu.dot_dimension_numbers<[1], [0], [0], [1], [0, 0, 1, 1], [], []>} : vector<8x16xf32>, vector<16x16xf32>, vector<8x16xf32> -> vector<8x16xf32>
    %74 = arith.addf %71, %73 : vector<8x16xf32>
    %c0_46 = arith.constant 0 : index
    %c0_47 = arith.constant 0 : index
    %75 = vector.load %arg16[%c0_46, %c0_47] : memref<1x16xf32, #tpu.memory_space<vmem>>, vector<1x16xf32>
    %76 = vector.broadcast %75 : vector<1x16xf32> to vector<8x16xf32>
    %77 = arith.addf %74, %76 : vector<8x16xf32>
    %cst_48 = arith.constant 0.000000e+00 : f32
    %78 = vector.broadcast %cst_48 : f32 to vector<8x16xf32>
    %79 = arith.maximumf %77, %78 : vector<8x16xf32>
    %c0_49 = arith.constant 0 : index
    %c0_50 = arith.constant 0 : index
    %80 = vector.load %arg17[%c0_49, %c0_50] : memref<16x16xf32, #tpu.memory_space<vmem>>, vector<16x16xf32>
    %cst_51 = arith.constant dense<0.000000e+00> : vector<8x16xf32>
    %81 = tpu.matmul %79, %80, %cst_51 {dimension_numbers = #tpu.dot_dimension_numbers<[1], [0], [0], [1], [0, 0, 1, 1], [], []>} : vector<8x16xf32>, vector<16x16xf32>, vector<8x16xf32> -> vector<8x16xf32>
    %c0_52 = arith.constant 0 : index
    %c0_53 = arith.constant 0 : index
    %82 = vector.load %arg18[%c0_52, %c0_53] : memref<1x16xf32, #tpu.memory_space<vmem>>, vector<1x16xf32>
    %83 = vector.broadcast %82 : vector<1x16xf32> to vector<8x16xf32>
    %84 = arith.addf %81, %83 : vector<8x16xf32>
    %cst_54 = arith.constant 0.000000e+00 : f32
    %85 = vector.broadcast %cst_54 : f32 to vector<8x16xf32>
    %86 = arith.maximumf %84, %85 : vector<8x16xf32>
    %c0_55 = arith.constant 0 : index
    %c0_56 = arith.constant 0 : index
    %87 = vector.load %arg19[%c0_55, %c0_56] : memref<16x16xf32, #tpu.memory_space<vmem>>, vector<16x16xf32>
    %cst_57 = arith.constant dense<0.000000e+00> : vector<8x16xf32>
    %88 = tpu.matmul %86, %87, %cst_57 {dimension_numbers = #tpu.dot_dimension_numbers<[1], [0], [0], [1], [0, 0, 1, 1], [], []>} : vector<8x16xf32>, vector<16x16xf32>, vector<8x16xf32> -> vector<8x16xf32>
    %c0_58 = arith.constant 0 : index
    %c0_59 = arith.constant 0 : index
    %89 = vector.load %arg20[%c0_58, %c0_59] : memref<1x16xf32, #tpu.memory_space<vmem>>, vector<1x16xf32>
    %90 = vector.broadcast %89 : vector<1x16xf32> to vector<8x16xf32>
    %91 = arith.addf %88, %90 : vector<8x16xf32>
    %92 = arith.negf %91 : vector<8x16xf32>
    %93 = math.exp %92 : vector<8x16xf32>
    %cst_60 = arith.constant 1.000000e+00 : f32
    %94 = vector.broadcast %cst_60 : f32 to vector<8x16xf32>
    %95 = arith.addf %94, %93 : vector<8x16xf32>
    %96 = arith.divf %94, %95 : vector<8x16xf32>
    %97 = arith.mulf %69, %9 : vector<8x16xf32>
    %c0_61 = arith.constant 0 : index
    %c0_62 = arith.constant 0 : index
    %98 = vector.load %arg21[%c0_61, %c0_62] : memref<1x16xf32, #tpu.memory_space<vmem>>, vector<1x16xf32>
    %99 = vector.broadcast %98 : vector<1x16xf32> to vector<8x16xf32>
    %100 = arith.mulf %96, %99 : vector<8x16xf32>
    %c0_63 = arith.constant 0 : index
    %c0_64 = arith.constant 0 : index
    %101 = vector.load %arg22[%c0_63, %c0_64] : memref<1x16xf32, #tpu.memory_space<vmem>>, vector<1x16xf32>
    %102 = vector.broadcast %101 : vector<1x16xf32> to vector<8x16xf32>
    %103 = arith.mulf %97, %102 : vector<8x16xf32>
    %104 = arith.addf %100, %103 : vector<8x16xf32>
    %cst_65 = arith.constant dense<0.000000e+00> : vector<8xf32>
    %105 = vector.multi_reduction <add>, %104, %cst_65 [1] : vector<8x16xf32> to vector<8xf32>
    %106 = vector.shape_cast %105 : vector<8xf32> to vector<8x1xf32>
    %107 = vector.broadcast %2 : f32 to vector<8x1xf32>
    %108 = arith.addf %106, %107 : vector<8x1xf32>
    %109 = arith.negf %108 : vector<8x1xf32>
    %110 = math.exp %109 : vector<8x1xf32>
    %cst_66 = arith.constant 1.000000e+00 : f32
    %111 = vector.broadcast %cst_66 : f32 to vector<8x1xf32>
    %112 = arith.addf %111, %110 : vector<8x1xf32>
    %113 = arith.divf %111, %112 : vector<8x1xf32>
    %114 = tpu.iota {dimensions = array<i32: 0>} : vector<8x8xi32>
    %115 = tpu.iota {dimensions = array<i32: 1>} : vector<8x8xi32>
    %116 = arith.cmpi eq, %114, %115 : vector<8x8xi32>
    %cst_67 = arith.constant 0.000000e+00 : f32
    %117 = vector.shape_cast %113 : vector<8x1xf32> to vector<8x1xf32>
    %118 = vector.broadcast %117 : vector<8x1xf32> to vector<8x8xf32>
    %119 = vector.broadcast %cst_67 : f32 to vector<8x8xf32>
    %120 = arith.select %116, %118, %119 : vector<8x8xi1>, vector<8x8xf32>
    %cst_68 = arith.constant dense<0.000000e+00> : vector<8xf32>
    %121 = vector.multi_reduction <add>, %120, %cst_68 [0] : vector<8x8xf32> to vector<8xf32>
    %122 = vector.shape_cast %121 : vector<8xf32> to vector<1x8xf32>
    %c0_69 = arith.constant 0 : index
    %c0_70 = arith.constant 0 : index
    %123 = vector.load %arg23[%c0_69, %c0_70] : memref<1x8xf32, #tpu.memory_space<vmem>>, vector<1x8xf32>
    tpu.vector_store %arg23[%c0_69, %c0_70], %122 {strides = array<i32>} : memref<1x8xf32, #tpu.memory_space<vmem>>, vector<1x8xf32>,
    return
  }
  func.func @transform_0(%arg0: i32, %arg1: memref<8xi32, #tpu.memory_space<smem>>, %arg2: memref<128xi32, #tpu.memory_space<smem>>, %arg3: memref<128xi32, #tpu.memory_space<smem>>, %arg4: memref<128xi32, #tpu.memory_space<smem>>) -> i32 {
    %c0_i32 = arith.constant 0 : i32
    %c0_i32_0 = arith.constant 0 : i32
    return %c0_i32 : i32
  }
  func.func @transform_3(%arg0: i32, %arg1: memref<8xi32, #tpu.memory_space<smem>>, %arg2: memref<128xi32, #tpu.memory_space<smem>>, %arg3: memref<128xi32, #tpu.memory_space<smem>>, %arg4: memref<128xi32, #tpu.memory_space<smem>>) -> (i32, i32) {
    %c0_i32 = arith.constant 0 : i32
    %c0_i32_0 = arith.constant 0 : i32
    %c0_i32_1 = arith.constant 0 : i32
    return %c0_i32, %c0_i32_0 : i32, i32
  }
  func.func @transform_4(%arg0: i32, %arg1: memref<8xi32, #tpu.memory_space<smem>>, %arg2: memref<128xi32, #tpu.memory_space<smem>>, %arg3: memref<128xi32, #tpu.memory_space<smem>>, %arg4: memref<128xi32, #tpu.memory_space<smem>>) -> (i32, i32) {
    %c0_i32 = arith.constant 0 : i32
    %c0_i32_0 = arith.constant 0 : i32
    %c0_i32_1 = arith.constant 0 : i32
    return %c0_i32, %c0_i32_0 : i32, i32
  }
  func.func @transform_5(%arg0: i32, %arg1: memref<8xi32, #tpu.memory_space<smem>>, %arg2: memref<128xi32, #tpu.memory_space<smem>>, %arg3: memref<128xi32, #tpu.memory_space<smem>>, %arg4: memref<128xi32, #tpu.memory_space<smem>>) -> (i32, i32) {
    %c0_i32 = arith.constant 0 : i32
    %c0_i32_0 = arith.constant 0 : i32
    %c0_i32_1 = arith.constant 0 : i32
    return %c0_i32, %c0_i32_0 : i32, i32
  }
  func.func @transform_6(%arg0: i32, %arg1: memref<8xi32, #tpu.memory_space<smem>>, %arg2: memref<128xi32, #tpu.memory_space<smem>>, %arg3: memref<128xi32, #tpu.memory_space<smem>>, %arg4: memref<128xi32, #tpu.memory_space<smem>>) -> (i32, i32) {
    %c0_i32 = arith.constant 0 : i32
    %c0_i32_0 = arith.constant 0 : i32
    %c0_i32_1 = arith.constant 0 : i32
    return %c0_i32, %c0_i32_0 : i32, i32
  }
  func.func @transform_7(%arg0: i32, %arg1: memref<8xi32, #tpu.memory_space<smem>>, %arg2: memref<128xi32, #tpu.memory_space<smem>>, %arg3: memref<128xi32, #tpu.memory_space<smem>>, %arg4: memref<128xi32, #tpu.memory_space<smem>>) -> (i32, i32) {
    %c0_i32 = arith.constant 0 : i32
    %c0_i32_0 = arith.constant 0 : i32
    %c0_i32_1 = arith.constant 0 : i32
    return %c0_i32, %c0_i32_0 : i32, i32
  }
  func.func @transform_8(%arg0: i32, %arg1: memref<8xi32, #tpu.memory_space<smem>>, %arg2: memref<128xi32, #tpu.memory_space<smem>>, %arg3: memref<128xi32, #tpu.memory_space<smem>>, %arg4: memref<128xi32, #tpu.memory_space<smem>>) -> (i32, i32) {
    %c0_i32 = arith.constant 0 : i32
    %c0_i32_0 = arith.constant 0 : i32
    %c0_i32_1 = arith.constant 0 : i32
    return %c0_i32, %c0_i32_0 : i32, i32
  }
  func.func @transform_9(%arg0: i32, %arg1: memref<8xi32, #tpu.memory_space<smem>>, %arg2: memref<128xi32, #tpu.memory_space<smem>>, %arg3: memref<128xi32, #tpu.memory_space<smem>>, %arg4: memref<128xi32, #tpu.memory_space<smem>>) -> (i32, i32) {
    %c0_i32 = arith.constant 0 : i32
    %c0_i32_0 = arith.constant 0 : i32
    %c0_i32_1 = arith.constant 0 : i32
    return %c0_i32, %c0_i32_0 : i32, i32
  }
  func.func @transform_10(%arg0: i32, %arg1: memref<8xi32, #tpu.memory_space<smem>>, %arg2: memref<128xi32, #tpu.memory_space<smem>>, %arg3: memref<128xi32, #tpu.memory_space<smem>>, %arg4: memref<128xi32, #tpu.memory_space<smem>>) -> (i32, i32) {
    %c0_i32 = arith.constant 0 : i32
    %c0_i32_0 = arith.constant 0 : i32
    %c0_i32_1 = arith.constant 0 : i32
    return %c0_i32, %c0_i32_0 : i32, i32
  }
  func.func @transform_11(%arg0: i32, %arg1: memref<8xi32, #tpu.memory_space<smem>>, %arg2: memref<128xi32, #tpu.memory_space<smem>>, %arg3: memref<128xi32, #tpu.memory_space<smem>>, %arg4: memref<128xi32, #tpu.memory_space<smem>>) -> (i32, i32) {
    %c0_i32 = arith.constant 0 : i32
    %c0_i32_0 = arith.constant 0 : i32
    %c0_i32_1 = arith.constant 0 : i32
    return %c0_i32, %c0_i32_0 : i32, i32
  }
  func.func @transform_12(%arg0: i32, %arg1: memref<8xi32, #tpu.memory_space<smem>>, %arg2: memref<128xi32, #tpu.memory_space<smem>>, %arg3: memref<128xi32, #tpu.memory_space<smem>>, %arg4: memref<128xi32, #tpu.memory_space<smem>>) -> (i32, i32) {
    %c0_i32 = arith.constant 0 : i32
    %c0_i32_0 = arith.constant 0 : i32
    %c0_i32_1 = arith.constant 0 : i32
    return %c0_i32, %c0_i32_0 : i32, i32
  }
  func.func @transform_13(%arg0: i32, %arg1: memref<8xi32, #tpu.memory_space<smem>>, %arg2: memref<128xi32, #tpu.memory_space<smem>>, %arg3: memref<128xi32, #tpu.memory_space<smem>>, %arg4: memref<128xi32, #tpu.memory_space<smem>>) -> (i32, i32) {
    %c0_i32 = arith.constant 0 : i32
    %c0_i32_0 = arith.constant 0 : i32
    %c0_i32_1 = arith.constant 0 : i32
    return %c0_i32, %c0_i32_0 : i32, i32
  }
  func.func @transform_14(%arg0: i32, %arg1: memref<8xi32, #tpu.memory_space<smem>>, %arg2: memref<128xi32, #tpu.memory_space<smem>>, %arg3: memref<128xi32, #tpu.memory_space<smem>>, %arg4: memref<128xi32, #tpu.memory_space<smem>>) -> (i32, i32) {
    %c0_i32 = arith.constant 0 : i32
    %c0_i32_0 = arith.constant 0 : i32
    %c0_i32_1 = arith.constant 0 : i32
    return %c0_i32, %c0_i32_0 : i32, i32
  }
  func.func @transform_15(%arg0: i32, %arg1: memref<8xi32, #tpu.memory_space<smem>>, %arg2: memref<128xi32, #tpu.memory_space<smem>>, %arg3: memref<128xi32, #tpu.memory_space<smem>>, %arg4: memref<128xi32, #tpu.memory_space<smem>>) -> (i32, i32) {
    %c0_i32 = arith.constant 0 : i32
    %c0_i32_0 = arith.constant 0 : i32
    %c0_i32_1 = arith.constant 0 : i32
    return %c0_i32, %c0_i32_0 : i32, i32
  }
  func.func @transform_16(%arg0: i32, %arg1: memref<8xi32, #tpu.memory_space<smem>>, %arg2: memref<128xi32, #tpu.memory_space<smem>>, %arg3: memref<128xi32, #tpu.memory_space<smem>>, %arg4: memref<128xi32, #tpu.memory_space<smem>>) -> (i32, i32) {
    %c0_i32 = arith.constant 0 : i32
    %c0_i32_0 = arith.constant 0 : i32
    %c0_i32_1 = arith.constant 0 : i32
    return %c0_i32, %c0_i32_0 : i32, i32
  }
  func.func @transform_17(%arg0: i32, %arg1: memref<8xi32, #tpu.memory_space<smem>>, %arg2: memref<128xi32, #tpu.memory_space<smem>>, %arg3: memref<128xi32, #tpu.memory_space<smem>>, %arg4: memref<128xi32, #tpu.memory_space<smem>>) -> (i32, i32) {
    %c0_i32 = arith.constant 0 : i32
    %c0_i32_0 = arith.constant 0 : i32
    %c0_i32_1 = arith.constant 0 : i32
    return %c0_i32, %c0_i32_0 : i32, i32
  }
  func.func @transform_18(%arg0: i32, %arg1: memref<8xi32, #tpu.memory_space<smem>>, %arg2: memref<128xi32, #tpu.memory_space<smem>>, %arg3: memref<128xi32, #tpu.memory_space<smem>>, %arg4: memref<128xi32, #tpu.memory_space<smem>>) -> (i32, i32) {
    %c0_i32 = arith.constant 0 : i32
    %c0_i32_0 = arith.constant 0 : i32
    return %arg0, %c0_i32 : i32, i32
  }
}

</mosaic_0001>

<bundles_post_ra>
// kernel: tpu_custom_call.1
= control target key start
LH: loop header
LB: loop body
LE: loop exit
PB: predicated region body
PF: predicated region fallthrough
CT: control target
= control target key end

     0   :  { %s2837_s23 = smov [#allocation8]   ;;  %s2839_s27 = smov [#allocation10]   ;;  %s4435_s0 = inlined_call_operand.hbm [shape: s32[8], index: 0, kind: input, shape index: {}]   ;;  %s4436_s4 = inlined_call_operand.hbm [shape: f32[2], index: 4, kind: input, shape index: {}]   ;;  %s4437_s5 = inlined_call_operand.vmem [shape: f32[32,16], index: 5, kind: input, shape index: {}]   ;;  %s4438_s6 = inlined_call_operand.hbm [shape: f32[6,16], index: 6, kind: input, shape index: {}]   ;;  %s4439_s7 = inlined_call_operand.hbm [shape: f32[1,16], index: 7, kind: input, shape index: {}]   ;;  %s4440_s8 = inlined_call_operand.hbm [shape: f32[1,16], index: 8, kind: input, shape index: {}]   ;;  %s4441_s9 = inlined_call_operand.hbm [shape: f32[1,16], index: 9, kind: input, shape index: {}]   ;;  %s4442_s10 = inlined_call_operand.hbm [shape: f32[1,16], index: 10, kind: input, shape index: {}]   ;;  %s4443_s11 = inlined_call_operand.vmem [shape: f32[16,16], index: 11, kind: input, shape index: {}]   ;;  %s4444_s12 = inlined_call_operand.vmem [shape: f32[16,16], index: 12, kind: input, shape index: {}]   ;;  %s4445_s13 = inlined_call_operand.vmem [shape: f32[16,16], index: 13, kind: input, shape index: {}]   ;;  %s4446_s14 = inlined_call_operand.hbm [shape: f32[16,16], index: 14, kind: input, shape index: {}]   ;;  %s4447_s15 = inlined_call_operand.hbm [shape: f32[1,16], index: 15, kind: input, shape index: {}]   ;;  %s4448_s16 = inlined_call_operand.hbm [shape: f32[16,16], index: 16, kind: input, shape index: {}]   ;;  %s4449_s17 = inlined_call_operand.hbm [shape: f32[1,16], index: 17, kind: input, shape index: {}]   ;;  %s4450_s18 = inlined_call_operand.vmem [shape: f32[16,16], index: 18, kind: input, shape index: {}]   ;;  %s4451_s19 = inlined_call_operand.vmem [shape: f32[1,16], index: 19, kind: input, shape index: {}]   ;;  %s4452_s20 = inlined_call_operand.vmem [shape: f32[1,16], index: 20, kind: input, shape index: {}]   ;;  %s4453_s21 = inlined_call_operand.vmem [shape: f32[1,16], index: 21, kind: input, shape index: {}]   ;;  %s4454_s22 = inlined_call_operand.hbm [shape: f32[1,8], index: 22, kind: output, shape index: {}]   ;;  %s4455_s1 = inlined_call_operand.hbm [shape: s32[128], index: 1, kind: input, shape index: {}]   ;;  %s4456_s2 = inlined_call_operand.hbm [shape: s32[128], index: 2, kind: input, shape index: {}]   ;;  %s4457_s3 = inlined_call_operand.hbm [shape: s32[128], index: 3, kind: input, shape index: {}]  }
   0x1   :  { %4460 = sst [smem:[#allocation48_spill]] %s4435_s0  ;;  %s33_s0 = sshll.u32 %s4455_s1, 4  ;;  %s34_s0 = int_to_ptr.hbm [resolvable:$true] %s33_s0 }
   0x2   :  { %4461 = sst [smem:[#allocation49_spill]] %s4436_s4  ;;  %s2838_s4 = smov [#allocation9]  }
   0x3   :  { %4462 = sst [smem:[#allocation50_spill]] %s4437_s5  ;;  %s43_s5 = sshll.u32 %s4457_s3, 4  ;;  %s44_s5 = int_to_ptr.hbm [resolvable:$true] %s43_s5 }
   0x4   :  { %4463 = sst [smem:[#allocation51_spill]] %s4438_s6  ;;  %s2840_s6 = smov [#allocation11]  }
   0x5   :  { %4464 = sst [smem:[#allocation52_spill]] %s4439_s7 }
   0x6   :  { %4465 = sst [smem:[#allocation53_spill]] %s4440_s8 }
   0x7   :  { %4466 = sst [smem:[#allocation54_spill]] %s4441_s9  ;;  %s38_s9 = sshll.u32 %s4456_s2, 4  ;;  %s39_s9 = int_to_ptr.hbm [resolvable:$true] %s38_s9 }
   0x8   :  { %4467 = sst [smem:[#allocation55_spill]] %s4451_s19 }
   0x9   :  { %s4468_s29 = sld [smem:[#allocation48_spill]] }
   0xf   :  { %s28_s19 = sshll.u32 %s4468_s29, 4  ;;  %s29_s19 = int_to_ptr.hbm [resolvable:$true] %s28_s19 }
  0x10   :  { %31 = dma.hbm_to_smem %s29_s19, 16, %s2837_s23, [#allocation7] }
  0x11   :  { %36 = dma.hbm_to_smem %s34_s0, 16, %s2838_s4, [#allocation7] }
  0x12   :  { %41 = dma.hbm_to_smem %s39_s9, 16, %s2839_s27, [#allocation7] }
  0x13   :  { %46 = dma.hbm_to_smem %s44_s5, 16, %s2840_s6, [#allocation7] }
  0x14   :  { %2795 = dma.done.wait [#allocation7], 64 }
  0x15   :  { %2796 = vsyncadd [#allocation7], 4294967232 }
  0x16   :  { %49 = sfence }
  0x17   :  { %50 = vsyncpa [#allocation15], 0 }
  0x18   :  { %51 = vsyncpa [#allocation13], 0 }
  0x19   :  { %52 = vsyncpa [#allocation18], 0 }
  0x1a   :  { %53 = vsyncpa [#allocation21], 0 }
  0x1b   :  { %54 = vsyncpa [#allocation24], 0 }
  0x1c   :  { %55 = vsyncpa [#allocation27], 0  ;;  %s4469_s19 = sld [smem:[#allocation53_spill]] }
  0x22   :  { %s82_s28 = sshll.u32 %s4469_s19, 4  ;;  %s83_s28 = int_to_ptr.hbm [resolvable:$true] %s82_s28 }
  0x23   :  { %56 = vsyncpa [#allocation14], 0  ;;  %s2841_s3 = smov [#allocation17]   ;;  %s104_s0 = sshll.u32 %s4442_s10, 4  ;;  %s105_s0 = int_to_ptr.hbm [resolvable:$true] %s104_s0 }
  0x24   :  { %s84_s29 = sshll.u32 %s2841_s3, 4  ;;  %s2842_s23 = smov [#allocation20]   ;;  %s85_s29 = int_to_ptr.vmem [resolvable:$true] %s84_s29 }
  0x25   :  { %87 = dma.hbm_to_vmem [thread:$0]  %s83_s28, 16, %s85_s29, [#allocation18]  }
  0x26   :  { %s106_s4 = sshll.u32 %s2842_s23, 4  ;;  %s134_s9 = sshll.u32 %s4447_s15, 4  ;;  %s107_s4 = int_to_ptr.vmem [resolvable:$true] %s106_s4  ;;  %s135_s9 = int_to_ptr.hbm [resolvable:$true] %s134_s9 }
  0x27   :  { %109 = dma.hbm_to_vmem [thread:$0]  %s105_s0, 16, %s107_s4, [#allocation21]  }
  0x28   :  { %s4470_s5 = sld [smem:[#allocation49_spill]]  ;;  %s2843_s6 = smov [#allocation23]  }
  0x29   :  { %s136_s1 = sshll.u32 %s2843_s6, 4  ;;  %s2844_s10 = smov [#allocation12]   ;;  %s137_s1 = int_to_ptr.vmem [resolvable:$true] %s136_s1 }
  0x2a   :  { %139 = dma.hbm_to_vmem [thread:$0]  %s135_s9, 16, %s137_s1, [#allocation24]  }
  0x2b   :  { %s4471_s28 = sld [smem:[#allocation52_spill]]  ;;  %s2845_s15 = smov [#allocation16]  }
  0x2c   :  { %s73_s29 = sshll.u32 %s2845_s15, 4  ;;  %s4472_s0 = sld [smem:[#allocation54_spill]]  ;;  %s74_s29 = int_to_ptr.vmem [resolvable:$true] %s73_s29 }
  0x2d   :  { %s2846_s4 = smov [#allocation19]   ;;  %s120_s25 = sshll.u32 %s4446_s14, 4  ;;  %s121_s25 = int_to_ptr.hbm [resolvable:$true] %s120_s25 }
  0x2e   :  { %s62_s27 = sshll.u32 %s4470_s5, 4  ;;  %s95_s8 = sshll.u32 %s2846_s4, 4  ;;  %s63_s27 = int_to_ptr.hbm [resolvable:$true] %s62_s27  ;;  %s96_s8 = int_to_ptr.vmem [resolvable:$true] %s95_s8 }
  0x2f   :  { %65 = dma.hbm_to_smem %s63_s27, 16, %s2844_s10, [#allocation15]  }
  0x30   :  { %s2847_s26 = smov [#allocation22]   ;;  %s144_s1 = sshll.u32 %s4448_s16, 4  ;;  %s145_s1 = int_to_ptr.hbm [resolvable:$true] %s144_s1 }
  0x31   :  { %s71_s3 = sshll.u32 %s4471_s28, 4  ;;  %s122_s5 = sshll.u32 %s2847_s26, 4  ;;  %s72_s3 = int_to_ptr.hbm [resolvable:$true] %s71_s3  ;;  %s123_s5 = int_to_ptr.vmem [resolvable:$true] %s122_s5 }
  0x32   :  { %s93_s23 = sshll.u32 %s4472_s0, 4  ;;  %s2848_s10 = smov 128   ;;  %s94_s23 = int_to_ptr.hbm [resolvable:$true] %s93_s23 }
  0x33   :  { %76 = dma.hbm_to_vmem [thread:$0]  %s72_s3, 16, %s74_s29, [#allocation13]  }
  0x34   :  { %98 = dma.hbm_to_vmem [thread:$0]  %s94_s23, 16, %s96_s8, [#allocation18]  }
  0x35   :  { %s2849_s2 = smov 8   ;;  %s2850_s19 = smov [#allocation25]  }
  0x36   :  { %128 = dma.hbm_to_vmem [thread:$0]  %s121_s25, 256, %s123_s5, [#allocation21], %s2848_s10, %s2848_s10, %s2849_s2  }
  0x37   :  { %s146_s28 = sshll.u32 %s2850_s19, 4  ;;  %s158_s14 = sshll.u32 %s4449_s17, 4  ;;  %s147_s28 = int_to_ptr.vmem [resolvable:$true] %s146_s28  ;;  %s159_s14 = int_to_ptr.hbm [resolvable:$true] %s158_s14 }
  0x38   :  { %152 = dma.hbm_to_vmem [thread:$0]  %s145_s1, 256, %s147_s28, [#allocation24], %s2848_s10, %s2848_s10, %s2849_s2  }
  0x39   :  { %s2851_s29 = smov [#allocation26]  }
  0x3a   :  { %s160_s30 = sshll.u32 %s2851_s29, 4  ;;  %s161_s30 = int_to_ptr.vmem [resolvable:$true] %s160_s30 }
  0x3b   :  { %163 = dma.hbm_to_vmem [thread:$0]  %s159_s14, 16, %s161_s30, [#allocation27]  }
  0x3c   :  { %2797 = dma.done.wait [#allocation15], 16  }
  0x3d   :  { %2798 = vsyncadd [#allocation15], 4294967280 }
  0x3e   :  { %2799 = dma.done.wait [#allocation13], 16  }
  0x3f   :  { %2800 = vsyncadd [#allocation13], 4294967280 }
  0x40   :  { %2801 = dma.done.wait [#allocation18], 32  }
  0x41   :  { %2802 = vsyncadd [#allocation18], 4294967264 }
  0x42   :  { %2803 = dma.done.wait [#allocation21], 272  }
  0x43   :  { %2804 = vsyncadd [#allocation21], 4294967024 }
  0x44   :  { %2805 = dma.done.wait [#allocation24], 272  }
  0x45   :  { %2806 = vsyncadd [#allocation24], 4294967024 }
  0x46   :  { %2807 = dma.done.wait [#allocation27], 16  }
  0x47   :  { %2808 = vsyncadd [#allocation27], 4294967280 }
  0x48   :  { %208 = sfence }
  0x49   :  { %s3008_s16 = sld [smem:[#allocation12]]  ;;  %s2825_s7 = smov 0  }
  0x4a   :  { %s3010_s17 = sld [smem:[#allocation12 + $0x1]] }
  0x4b LB: > { %s219_s0 = sld [smem:[#allocation8 + %s2827_s7]]  ;;  %s221_s9 = scalar_lea.vmem [#allocation5], %s2827_s7  ;;  %s2827_s7 = sphi %s2825_s7, %s217_s7  }
  0x4c   : > { %s4473_s8 = sld [smem:[#allocation50_spill]] }
  0x52   : > { %s220_s24 = scalar_lea.vmem %s4473_s8, %s219_s0 }
  0x53   : > { %v237_v0 = vld [vmem:[%s220_s24] sm:$0x1] }
  0x54   : > { %238 = vst [vmem:[%s221_s9] sm:$0x1] %v237_v0 }
  0x55   : > { %256 = vsyncadd [#allocation6 + $0x3], 16  ;;  %s217_s7 = sadd.s32 1, %s2827_s7  }
  0x56   : > { %p214_p0 = scmp.ge.s32.totalorder %s217_s7, 8  }
  0x57   :  { %s3015_s25 = smov (%p214_p0), 0  }
  0x58   :  { %216 = sbr.rel (!%p214_p0) target bundleno = 75 (0x4b), region = 272 }
  0x5d LB: > { %p2146_p1 = scmp.ge.s32.totalorder %s2831_s25, 128  ;;  %s2831_s25 = sphi %s3015_s25, %s262_s25  }
  0x5e   : > { %s269_s26 = sld [smem:[#allocation9 + %s2831_s25]] (!%p2146_p1)  ;;  %s271_s10 = scalar_lea.vmem (!%p2146_p1), [#allocation2], %s2831_s25 }
  0x5f   : > { %266 = sbr.rel (%p2146_p1) target bundleno = 137 (0x89), region = 149  ;;  %s4474_s6 = sld [smem:[#allocation50_spill]] (!%p2146_p1) }
  0x65   : > { %s270_s1 = scalar_lea.vmem %s4474_s6, %s269_s26 }
  0x66   : > { %v286_v1 = vld [vmem:[%s270_s1] sm:$0x1] }
  0x67   : > { %287 = vst [vmem:[%s271_s10] sm:$0x1] %v286_v1 }
  0x68   : > { %305 = vsyncadd [#allocation6], 16  ;;  %s306_s2 = sld [smem:[#allocation10 + %s2831_s25]]  ;;  %s308_s28 = scalar_lea.vmem [#allocation3], %s2831_s25 }
  0x69   : > { %s323_s19 = sld [smem:[#allocation11 + %s2831_s25]]  ;;  %s3029_s3 = sshll.u32 %s308_s28, 4  ;;  %s320_s3 = int_to_ptr.vmem [resolvable:$true] %s3029_s3 }
  0x6a   : > { %s4475_s29 = sld [smem:[#allocation51_spill]] }
  0x6f   : > { %s324_s4 = scalar_lea.vmem %s4474_s6, %s323_s19 }
  0x70   : > { %s307_s30 = scalar_lea.hbm %s4475_s29, %s306_s2  ;;  %v341_v2 = vld [vmem:[%s324_s4] sm:$0x1]  ;;  %s2739_s5 = scalar_lea.hbm %s4475_s29, 8 }
  0x71   : > { %s317_s7 = sshll.u32 %s307_s30, 4  ;;  %s318_s7 = int_to_ptr.hbm [resolvable:$true] %s317_s7 }
  0x72   : > { %s2735_s8 = sshra.s32 %s318_s7, 4  ;;  %s2736_s8 = int_to_ptr.hbm [resolvable:$true] %s2735_s8 }
  0x73   : > { %s2737_s24 = scalar_lea.hbm %s2736_s8, 1  ;;  %p2740_p3 = scmp.lt.s32.totalorder %s2736_s8, %s4475_s29 }
  0x74   : > { %p2738_p2 = scmp.ne.s32.totalorder %s2736_s8, %s2737_s24  ;;  %p2741_p4 = scmp.lt.s32.totalorder %s2739_s5, %s2737_s24 }
  0x76   : > { %p2742_p5 = por %p2741_p4, %p2740_p3 }
  0x78   : > { %p2743_p6 = pnand %p2742_p5, %p2738_p2 }
  0x7a   : > { %2746 = shalt.err (!%p2743_p6)  }
  0x7b   : > { %s2747_s10 = sshra.s32 %s320_s3, 4  ;;  %s2852_s2 = smov [#allocation3]   ;;  %s2748_s10 = int_to_ptr.vmem [resolvable:$true] %s2747_s10 }
  0x7c   : > { %s2749_s6 = scalar_lea.vmem %s2748_s10, 1  ;;  %s2751_s19 = scalar_lea.vmem %s2852_s2, 128 }
  0x7d   : > { %p2750_p7 = scmp.ne.s32.totalorder %s2748_s10, %s2749_s6  ;;  %p2752_p8 = scmp.lt.s32.totalorder %s2748_s10, [#allocation3] }
  0x7e   : > { %p2753_p9 = scmp.lt.s32.totalorder %s2751_s19, %s2749_s6 }
  0x80   : > { %p2754_p10 = por %p2753_p9, %p2752_p8 }
  0x82   : > { %p2755_p11 = pnand %p2754_p10, %p2750_p7 }
  0x84   : > { %2758 = shalt.err (!%p2755_p11)  }
  0x85   : > { %322 = dma.hbm_to_vmem [thread:$0]  %s318_s7, 16, %s320_s3, [#allocation6 + $0x1] }
  0x86   : > { %s325_s28 = scalar_lea.vmem [#allocation4], %s2831_s25 }
  0x87   : > { %342 = vst [vmem:[%s325_s28] sm:$0x1] %v341_v2 }
  0x88   : > { %360 = vsyncadd [#allocation6 + $0x2], 16 }
  0x89 PF: > { %p2232_p12 = scmp.ge.s32.totalorder %s2831_s25, 16 }
  0x8b   : > { %2810 = dma.done.wait (%p2232_p12), [#allocation6], 16 }
  0x8c   : > { %2812 = vsyncadd (%p2232_p12), [#allocation6], 4294967280 }
  0x8d   : > { %2814 = dma.done.wait (%p2232_p12), [#allocation6 + $0x1], 16 }
  0x8e   : > { %2816 = vsyncadd (%p2232_p12), [#allocation6 + $0x1], 4294967280 }
  0x8f   : > { %2818 = dma.done.wait (%p2232_p12), [#allocation6 + $0x2], 16 }
  0x90   : > { %2820 = vsyncadd (%p2232_p12), [#allocation6 + $0x2], 4294967280  ;;  %s262_s25 = sadd.s32 1, %s2831_s25  }
  0x91   : > { %p259_p13 = scmp.ge.s32.totalorder %s262_s25, 144  }
  0x92   :  { %s2833_s3 = smov (%p259_p13), 0  }
  0x93   :  { %261 = sbr.rel (!%p259_p13) target bundleno = 93 (0x5d), region = 283 }
  0x98 LB: > { %2821 = dma.done.wait [#allocation6 + $0x3], 16  ;;  %s2835_s3 = sphi %s2833_s3, %s379_s3  }
  0x99   : > { %2822 = vsyncadd [#allocation6 + $0x3], 4294967280  ;;  %s379_s3 = sadd.s32 1, %s2835_s3  }
  0x9a   : > { %p376_p0 = scmp.ge.s32.totalorder %s379_s3, 8  }
  0x9b   :  { %v3052_v3 = vld [vmem:[%s4443_s11 + $0x8] sm:$0xff] (%p376_p0)  ;;  %v3057_v4 = vld [vmem:[%s4443_s11] sm:$0xff] (%p376_p0)  ;;  %vm525_vm0 = vcmask (%p376_p0), 130048   ;;  %v3070_v8 = vld [vmem:[#allocation2 + $0x70] sm:$0xff] (%p376_p0)  ;;  %s4592_s1 = sld [smem:[#allocation55_spill]] (%p376_p0)  ;;  %s2068_s19 = sshll.u32 (%p376_p0), %s4454_s22, 4  ;;  %s2069_s19 = int_to_ptr.hbm [resolvable:$true] %s2068_s19 }
  0x9c   :  { %378 = sbr.rel (!%p376_p0) target bundleno = 152 (0x98), region = 294  ;;  %995 = vmatpush.msra.mxu0 (%p376_p0), %v3052_v3  ;;  %v384_v5 = vld [vmem:[#allocation2] sm:$0xff] (%p376_p0)  ;;  %2222 = vmatpush.msra.mxu3 (%p376_p0), %v3052_v3  ;;  %v3061_v6 = vld [vmem:[#allocation2 + $0x68] sm:$0xff] (%p376_p0)  ;;  %v386_v9 = vld [vmem:[#allocation2 + $0x10] sm:$0xff] (%p376_p0) }
  0x9d   :  { %1239 = vmatpush.msra.mxu2 (%p376_p0), %v3052_v3  ;;  %v385_v7 = vld [vmem:[#allocation2 + $0x8] sm:$0xff] (%p376_p0)  ;;  %v3075_v10 = vld [vmem:[#allocation2 + $0x78] sm:$0xff] (%p376_p0)  ;;  %v388_v12 = vld [vmem:[#allocation2 + $0x20] sm:$0xff] (%p376_p0) }
  0x9e   :  { %996 = vmatpush.msra.mxu0 (%p376_p0), %v3057_v4  ;;  %2223 = vmatpush.msra.mxu3 (%p376_p0), %v3057_v4  ;;  %v387_v11 = vld [vmem:[#allocation2 + $0x18] sm:$0xff] (%p376_p0)  ;;  %v3082_v13 = vld [vmem:[#allocation2 + $0x28] sm:$0xff] (%p376_p0)  ;;  %v3086_v14 = vld [vmem:[#allocation2 + $0x30] sm:$0xff] (%p376_p0) }
  0x9f   :  { %2164 = vmatmul.msk.f32.vlgmr.msra.gmra.mxu0 (%p376_p0), %vm525_vm0, %v384_v5  ;;  %2177 = vmatmul.msk.f32.vlgmr.msra.gmra.mxu3 (%p376_p0), %vm525_vm0, %v3061_v6  ;;  %v3090_v15 = vld [vmem:[#allocation2 + $0x38] sm:$0xff] (%p376_p0)  ;;  %v3094_v16 = vld [vmem:[#allocation16] ss:$0 sm:$0xff] (%p376_p0)  ;;  %v3096_v17 = vld [vmem:[#allocation2 + $0x40] sm:$0xff] (%p376_p0) }
  0xa0   :  { %1240 = vmatpush.msra.mxu2 (%p376_p0), %v3057_v4  ;;  %v437_v18 = vmul.f32 (%p376_p0), %v3094_v16, %v384_v5  ;;  %v3099_v19 = vld [vmem:[#allocation17] ss:$0 sm:$0xff] (%p376_p0)  ;;  %v400_v20 = vld [vmem:[#allocation3] sm:$0xff] (%p376_p0)  ;;  %v438_v21 = vmul.f32 (%p376_p0), %v3094_v16, %v385_v7  ;;  %v439_v22 = vmul.f32 (%p376_p0), %v3094_v16, %v386_v9  ;;  %v3106_v25 = vld [vmem:[#allocation19] ss:$0 sm:$0xff] (%p376_p0)  ;;  %v440_v47 = vmul.f32 (%p376_p0), %v3094_v16, %v387_v11 }
  0xa1   :  { %v416_v23 = vld [vmem:[#allocation4] sm:$0xff]  ;;  %v457_v24 = vmul.f32 %v3099_v19, %v400_v20  ;;  %v401_v26 = vld [vmem:[#allocation3 + $0x8] sm:$0xff]  ;;  %v402_v29 = vld [vmem:[#allocation3 + $0x10] sm:$0xff]  ;;  %v441_v50 = vmul.f32 %v3094_v16, %v388_v12  ;;  %v442_v0 = vmul.f32 %v3094_v16, %v3082_v13  ;;  %v444_v1 = vmul.f32 %v3094_v16, %v3090_v15 }
  0xa2   :  { %v417_v27 = vld [vmem:[#allocation4 + $0x8] sm:$0xff]  ;;  %v458_v28 = vmul.f32 %v3099_v19, %v401_v26  ;;  %v418_v30 = vld [vmem:[#allocation4 + $0x10] sm:$0xff]  ;;  %2196 = vmatmul.msk.f32.vlgmr.msra.gmra.mxu2 %vm525_vm0, %v416_v23  ;;  %v493_v32 = vmul.f32 %v3106_v25, %v416_v23  ;;  %v459_v33 = vmul.f32 %v3099_v19, %v402_v29  ;;  %v3124_v46 = vld [vmem:[#allocation2 + $0x58] sm:$0xff]  ;;  %v443_v5 = vmul.f32 %v3094_v16, %v3086_v14 }
  0xa3   :  { %v473_v31 = vadd.f32 %v457_v24, %v437_v18  ;;  %v495_v34 = vmul.f32 %v3106_v25, %v418_v30  ;;  %v494_v37 = vmul.f32 %v3106_v25, %v417_v27  ;;  %v3114_v39 = vld [vmem:[#allocation2 + $0x48] sm:$0xff]  ;;  %v394_v45 = vld [vmem:[#allocation2 + $0x50] sm:$0xff]  ;;  %v403_v48 = vld [vmem:[#allocation3 + $0x18] sm:$0xff] }
  0xa4   :  { %v474_v36 = vadd.f32 %v458_v28, %v438_v21  ;;  %v475_v38 = vadd.f32 %v459_v33, %v439_v22  ;;  %v460_v49 = vmul.f32 %v3099_v19, %v403_v48  ;;  %v419_v51 = vld [vmem:[#allocation4 + $0x18] sm:$0xff]  ;;  %v404_v54 = vld [vmem:[#allocation3 + $0x20] sm:$0xff]  ;;  %v1063_v63 = vld [vmem:[%s4444_s12 + $0x8] sm:$0xff]  ;;  %v447_v33 = vmul.f32 %v3094_v16, %v394_v45 }
  0xa5   :  { %v509_v35 = vadd.f32 %v493_v32, %v473_v31  ;;  %v496_v53 = vmul.f32 %v3106_v25, %v419_v51  ;;  %v461_v55 = vmul.f32 %v3099_v19, %v404_v54  ;;  %v420_v57 = vld [vmem:[#allocation4 + $0x20] sm:$0xff]  ;;  %1126 = vmatpush.msra.mxu1 %v1063_v63  ;;  %2224 = vmatpush.msrb.mxu3 %v1063_v63  ;;  %v3154_v20 = vld [vmem:[#allocation4 + $0x38] sm:$0xff]  ;;  %v422_v21 = vld [vmem:[#allocation4 + $0x30] sm:$0xff] }
  0xa6   :  { %v511_v41 = vadd.f32 %v495_v34, %v475_v38  ;;  %v510_v42 = vadd.f32 %v494_v37, %v474_v36  ;;  %v476_v52 = vadd.f32 %v460_v49, %v440_v47  ;;  %v3134_v58 = vld [vmem:[#allocation2 + $0x60] sm:$0xff]  ;;  %v497_v60 = vmul.f32 %v3106_v25, %v420_v57  ;;  %v410_v38 = vld [vmem:[#allocation3 + $0x50] sm:$0xff] }
  0xa7   :  { %2165 = vmatmul.msk.f32.gmra.mxu0 %vm525_vm0, %v385_v7  ;;  %2178 = vmatmul.msk.f32.gmra.mxu3 %vm525_vm0, %v3070_v8  ;;  %v526_v40 = vsel %vm525_vm0, %v509_v35, 0.0  ;;  %v477_v59 = vadd.f32 %v461_v55, %v441_v50  ;;  %v405_v7 = vld [vmem:[#allocation3 + $0x28] sm:$0xff]  ;;  %v500_v26 = vmul.f32 %v3106_v25, %v3154_v20  ;;  %v499_v28 = vmul.f32 %v3106_v25, %v422_v21  ;;  %v412_v63 = vld [vmem:[#allocation3 + $0x60] sm:$0xff] }
  0xa8   :  { %527 = vadd.xlane.f32.xlu0 %v526_v40  ;;  %v532_v43 = vsel %vm525_vm0, %v511_v41, 0.0  ;;  %v529_v44 = vsel %vm525_vm0, %v510_v42, 0.0  ;;  %v512_v56 = vadd.f32 %v496_v53, %v476_v52  ;;  %v445_v32 = vmul.f32 %v3094_v16, %v3096_v17  ;;  %v409_v40 = vld [vmem:[#allocation3 + $0x48] sm:$0xff] }
  0xa9   :  { %533 = vadd.xlane.f32.xlu1 %v532_v43  ;;  %v513_v62 = vadd.f32 %v497_v60, %v477_v59  ;;  %v446_v36 = vmul.f32 %v3094_v16, %v3114_v39  ;;  %v467_v41 = vmul.f32 %v3099_v19, %v410_v38  ;;  %v466_v42 = vmul.f32 %v3099_v19, %v409_v40  ;;  %v3179_v43 = vld [vmem:[#allocation4 + $0x50] sm:$0xff] }
  0xaa   :  { %2197 = vmatmul.msk.f32.gmra.mxu2 %vm525_vm0, %v417_v27  ;;  %v535_v61 = vsel %vm525_vm0, %v512_v56, 0.0  ;;  %v503_v48 = vmul.f32 %v3106_v25, %v3179_v43  ;;  %v450_v54 = vmul.f32 %v3094_v16, %v3061_v6  ;;  %v448_v55 = vmul.f32 %v3094_v16, %v3124_v46 }
  0xab   :  { %v538_v2 = vsel %vm525_vm0, %v513_v62, 0.0  ;;  %v483_v47 = vadd.f32 %v467_v41, %v447_v33  ;;  %v482_v49 = vadd.f32 %v466_v42, %v446_v36  ;;  %v449_v59 = vmul.f32 %v3094_v16, %v3134_v58  ;;  %v413_v62 = vld [vmem:[#allocation3 + $0x68] sm:$0xff] }
  0xac   :  { %539 = vadd.xlane.f32.xlu2 %v538_v2  ;;  %v3204_v2 = vld [vmem:[#allocation4 + $0x68] sm:$0xff] }
  0xad   :  { %v519_v52 = vadd.f32 %v503_v48, %v483_v47 }
  0xaf   :  { %2166 = vmatmul.msk.f32.gmra.mxu0 %vm525_vm0, %v386_v9  ;;  %2179 = vmatmul.msk.f32.gmra.mxu3 %vm525_vm0, %v3075_v10  ;;  %v407_v9 = vld [vmem:[#allocation3 + $0x38] sm:$0xff] }
  0xb0   :  { %530 = vadd.xlane.f32.xlu0 %v529_v44 }
  0xb1   :  { %536 = vadd.xlane.f32.xlu1 %v535_v61  ;;  %v411_v61 = vld [vmem:[#allocation3 + $0x58] sm:$0xff] }
  0xb2   :  { %2198 = vmatmul.msk.f32.gmra.mxu2 %vm525_vm0, %v418_v30  ;;  %v468_v6 = vmul.f32 %v3099_v19, %v411_v61 }
  0xb7   :  { %2167 = vmatmul.msk.f32.gmra.mxu0 %vm525_vm0, %v387_v11  ;;  %v406_v11 = vld [vmem:[#allocation3 + $0x30] sm:$0xff] }
  0xb8   :  { %v463_v18 = vmul.f32 %v3099_v19, %v406_v11  ;;  %v506_v11 = vmul.f32 %v3106_v25, %v3204_v2 }
  0xba   :  { %2199 = vmatmul.msk.f32.gmra.mxu2 %vm525_vm0, %v419_v51  ;;  %v479_v27 = vadd.f32 %v463_v18, %v443_v5  ;;  %v484_v5 = vadd.f32 %v468_v6, %v448_v55 }
  0xbc   :  { %v515_v31 = vadd.f32 %v499_v28, %v479_v27  ;;  %v414_v28 = vld [vmem:[#allocation3 + $0x70] sm:$0xff] }
  0xbe   :  { %v544_v37 = vsel %vm525_vm0, %v515_v31, 0.0 }
  0xbf   :  { %2168 = vmatmul.msk.f32.gmra.mxu0 %vm525_vm0, %v388_v12  ;;  %v462_v12 = vmul.f32 %v3099_v19, %v405_v7  ;;  %545 = vadd.xlane.f32.xlu0 %v544_v37 }
  0xc1   :  { %v478_v22 = vadd.f32 %v462_v12, %v442_v0  ;;  %v470_v0 = vmul.f32 %v3099_v19, %v413_v62 }
  0xc2   :  { %2200 = vmatmul.msk.f32.gmra.mxu2 %vm525_vm0, %v420_v57  ;;  %v556_v57 = vsel %vm525_vm0, %v519_v52, 0.0 }
  0xc7   :  { %2169 = vmatmul.msk.f32.gmra.mxu0 %vm525_vm0, %v3082_v13  ;;  %v464_v13 = vmul.f32 %v3099_v19, %v407_v9  ;;  %v486_v9 = vadd.f32 %v470_v0, %v450_v54 }
  0xc9   :  { %v480_v24 = vadd.f32 %v464_v13, %v444_v1  ;;  %v3202_v1 = vld [vmem:[#allocation4 + $0x58] sm:$0xff] }
  0xca   :  { %v504_v7 = vmul.f32 %v3106_v25, %v3202_v1 }
  0xcb   :  { %v516_v30 = vadd.f32 %v500_v26, %v480_v24  ;;  %v3220_v26 = vld [vmem:[#allocation20] ss:$0 sm:$0xff] }
  0xcc   :  { %v520_v18 = vadd.f32 %v504_v7, %v484_v5 }
  0xcd   :  { %v547_v35 = vsel %vm525_vm0, %v516_v30, 0.0  ;;  %v471_v30 = vmul.f32 %v3099_v19, %v414_v28 }
  0xce   :  { %548 = vadd.xlane.f32.xlu1 %v547_v35 }
  0xcf   :  { %2170 = vmatmul.msk.f32.gmra.mxu0 %vm525_vm0, %v3086_v14  ;;  %v1062_v14 = vld [vmem:[%s4444_s12] sm:$0xff] }
  0xd0   :  { %1127 = vmatpush.msra.mxu1 %v1062_v14  ;;  %2225 = vmatpush.msrb.mxu3 %v1062_v14  ;;  %v451_v14 = vmul.f32 %v3094_v16, %v3070_v8 }
  0xd2   :  { %2226 = vmatpush.msra.mxu3 %v3052_v3  ;;  %v408_v3 = vld [vmem:[#allocation3 + $0x40] sm:$0xff] }
  0xd4   :  { %2227 = vmatpush.msra.mxu3 %v3057_v4  ;;  %v3177_v4 = vld [vmem:[#allocation4 + $0x40] sm:$0xff] }
  0xd6   :  { %557 = vadd.xlane.f32.xlu1 %v556_v57 }
  0xd7   :  { %2171 = vmatmul.msk.f32.gmra.mxu0 %vm525_vm0, %v3090_v15  ;;  %v421_v15 = vld [vmem:[#allocation4 + $0x28] sm:$0xff] }
  0xd8   :  { %v498_v23 = vmul.f32 %v3106_v25, %v421_v15  ;;  %2201 = vmatmul.msk.f32.gmra.mxu2 %vm525_vm0, %v421_v15  ;;  %v522_v15 = vadd.f32 %v506_v11, %v486_v9 }
  0xda   :  { %v514_v29 = vadd.f32 %v498_v23, %v478_v22  ;;  %v452_v22 = vmul.f32 %v3094_v16, %v3075_v10  ;;  %v559_v23 = vsel %vm525_vm0, %v520_v18, 0.0  ;;  %v565_v24 = vsel %vm525_vm0, %v522_v15, 0.0  ;;  %v430_v10 = vld [vmem:[#allocation4 + $0x70] sm:$0xff]  ;;  %v3227_v16 = vld [vmem:[#allocation4 + $0x78] sm:$0xff] }
  0xdb   :  { %v507_v33 = vmul.f32 %v3106_v25, %v430_v10  ;;  %v508_v35 = vmul.f32 %v3106_v25, %v3227_v16 }
  0xdc   :  { %v541_v34 = vsel %vm525_vm0, %v514_v29, 0.0  ;;  %v415_v29 = vld [vmem:[#allocation3 + $0x78] sm:$0xff] }
  0xdd   :  { %542 = vadd.xlane.f32.xlu2 %v541_v34  ;;  %v472_v8 = vmul.f32 %v3099_v19, %v415_v29 }
  0xde   :  { %566 = vadd.xlane.f32.xlu1 %v565_v24 }
  0xdf   :  { %2172 = vmatmul.msk.f32.gmra.mxu0 %vm525_vm0, %v3096_v17  ;;  %v465_v17 = vmul.f32 %v3099_v19, %v408_v3  ;;  %v488_v34 = vadd.f32 %v472_v8, %v452_v22 }
  0xe0   :  { %2202 = vmatmul.msk.f32.gmra.mxu2 %vm525_vm0, %v422_v21 }
  0xe1   :  { %v481_v44 = vadd.f32 %v465_v17, %v445_v32  ;;  %v487_v32 = vadd.f32 %v471_v30, %v451_v14  ;;  %v524_v3 = vadd.f32 %v508_v35, %v488_v34 }
  0xe3   :  { %v523_v37 = vadd.f32 %v507_v33, %v487_v32 }
  0xe7   :  { %2173 = vmatmul.msk.f32.gmra.mxu0 %vm525_vm0, %v3114_v39  ;;  %v3181_v39 = vld [vmem:[#allocation4 + $0x48] sm:$0xff] }
  0xe8   :  { %v502_v50 = vmul.f32 %v3106_v25, %v3181_v39  ;;  %2203 = vmatmul.msk.f32.gmra.mxu2 %vm525_vm0, %v3154_v20  ;;  %v571_v20 = vsel %vm525_vm0, %v524_v3, 0.0 }
  0xea   :  { %v518_v53 = vadd.f32 %v502_v50, %v482_v49 }
  0xec   :  { %v553_v60 = vsel %vm525_vm0, %v518_v53, 0.0 }
  0xed   :  { %554 = vadd.xlane.f32.xlu0 %v553_v60 }
  0xef   :  { %2174 = vmatmul.msk.f32.gmra.mxu0 %vm525_vm0, %v394_v45  ;;  %v501_v45 = vmul.f32 %v3106_v25, %v3177_v4 }
  0xf0   :  { %2204 = vmatmul.msk.f32.gmra.mxu2 %vm525_vm0, %v3177_v4 }
  0xf1   :  { %v517_v51 = vadd.f32 %v501_v45, %v481_v44 }
  0xf3   :  { %v550_v56 = vsel %vm525_vm0, %v517_v51, 0.0 }
  0xf4   :  { %551 = vadd.xlane.f32.xlu2 %v550_v56 }
  0xf7   :  { %2175 = vmatmul.msk.f32.gmra.mxu0 %vm525_vm0, %v3124_v46  ;;  %v469_v46 = vmul.f32 %v3099_v19, %v412_v63  ;;  %v568_v19 = vsel %vm525_vm0, %v523_v37, 0.0 }
  0xf8   :  { %2205 = vmatmul.msk.f32.gmra.mxu2 %vm525_vm0, %v3181_v39 }
  0xf9   :  { %v485_v12 = vadd.f32 %v469_v46, %v449_v59 }
  0xfc   :  { %560 = vadd.xlane.f32.xlu2 %v559_v23 }
  0xff   :  { %2176 = vmatmul.msk.f32.gmra.mxu0 %vm525_vm0, %v3134_v58  ;;  %v3206_v58 = vld [vmem:[#allocation4 + $0x60] sm:$0xff] }
 0x100   :  { %v505_v13 = vmul.f32 %v3106_v25, %v3206_v58  ;;  %2206 = vmatmul.msk.f32.gmra.mxu2 %vm525_vm0, %v3179_v43 }
 0x102   :  { %v521_v21 = vadd.f32 %v505_v13, %v485_v12 }
 0x104   :  { %v562_v27 = vsel %vm525_vm0, %v521_v21, 0.0  ;;  %569 = vadd.xlane.f32.xlu2 %v568_v19 }
 0x105   :  { %563 = vadd.xlane.f32.xlu0 %v562_v27 }
 0x108   :  { %2207 = vmatmul.msk.f32.gmra.mxu2 %vm525_vm0, %v3202_v1  ;;  %v3271_v1 = vstv %s3008_s16 }
 0x10d   :  { %572 = vadd.xlane.f32.xlu0 %v571_v20 }
 0x110   :  { %2208 = vmatmul.msk.f32.gmra.mxu2 %vm525_vm0, %v3206_v58 }
 0x11c   :  { %v998_v31 = vpop.f32.mrf.mxu0  ;;  %v534_v24 = vpop.xlane.xlu1 %533 }
 0x11d   :  { %v999_v36 = vadd.f32 %v3220_v26, %v998_v31  ;;  %v577_v27 = vadd.f32 %v3271_v1, %v534_v24 }
 0x11f   :  { %2282 = vtanh.f32 %v999_v36  ;;  %v2150_v30 = vmul.f32 -1.442695, %v577_v27 }
 0x122   :  { %v1037_v38 = vpop.f32.mrf.mxu3 }
 0x123   :  { %v1038_v40 = vadd.f32 %v3220_v26, %v1037_v38 }
 0x124   :  { %v1001_v17 = vpop.f32.mrf.mxu0  ;;  %v537_v36 = vpop.xlane.xlu1 %536 }
 0x125   :  { %v2283_v41 = vpop.eup %2282  ;;  %v1002_v25 = vadd.f32 %v3220_v26, %v1001_v17  ;;  %2284 = vtanh.f32 %v1038_v40  ;;  %v578_v37 = vadd.f32 %v3271_v1, %v537_v36 }
 0x126   :  { %2180 = vmatmul.msk.f32.vlgmr.msra.gmra.mxu1 %vm525_vm0, %v2283_v41 }
 0x127   :  { %2286 = vtanh.f32 %v1002_v25  ;;  %v2151_v17 = vmul.f32 -1.442695, %v578_v37 }
 0x12a   :  { %v1040_v42 = vpop.f32.mrf.mxu3 }
 0x12b   :  { %v2285_v44 = vpop.eup %2284  ;;  %v1041_v45 = vadd.f32 %v3220_v26, %v1040_v42 }
 0x12c   :  { %v1004_v47 = vpop.f32.mrf.mxu0  ;;  %2193 = vmatmul.msk.f32.vlgmr.msrb.gmra.mxu3 %vm525_vm0, %v2285_v44 }
 0x12d   :  { %v2287_v4 = vpop.eup %2286  ;;  %v1005_v48 = vadd.f32 %v3220_v26, %v1004_v47  ;;  %2288 = vtanh.f32 %v1041_v45 }
 0x12e   :  { %2181 = vmatmul.msk.f32.gmra.mxu1 %vm525_vm0, %v2287_v4 }
 0x12f   :  { %2290 = vtanh.f32 %v1005_v48  ;;  %v540_v48 = vpop.xlane.xlu2 %539 }
 0x132   :  { %v1043_v49 = vpop.f32.mrf.mxu3 }
 0x133   :  { %v2289_v50 = vpop.eup %2288  ;;  %v1044_v39 = vadd.f32 %v3220_v26, %v1043_v49 }
 0x134   :  { %v1007_v51 = vpop.f32.mrf.mxu0  ;;  %2194 = vmatmul.msk.f32.gmra.mxu3 %vm525_vm0, %v2289_v50 }
 0x135   :  { %v2291_v52 = vpop.eup %2290  ;;  %v1008_v53 = vadd.f32 %v3220_v26, %v1007_v51  ;;  %2292 = vtanh.f32 %v1044_v39 }
 0x136   :  { %2182 = vmatmul.msk.f32.gmra.mxu1 %vm525_vm0, %v2291_v52 }
 0x137   :  { %2294 = vtanh.f32 %v1008_v53  ;;  %v579_v53 = vadd.f32 %v3271_v1, %v540_v48 }
 0x13b   :  { %v2293_v54 = vpop.eup %2292 }
 0x13c   :  { %v1010_v55 = vpop.f32.mrf.mxu0  ;;  %2195 = vmatmul.msk.f32.gmra.mxu3 %vm525_vm0, %v2293_v54 }
 0x13d   :  { %v2295_v43 = vpop.eup %2294  ;;  %v1011_v56 = vadd.f32 %v3220_v26, %v1010_v55 }
 0x13e   :  { %2183 = vmatmul.msk.f32.gmra.mxu1 %vm525_vm0, %v2295_v43 }
 0x13f   :  { %2296 = vtanh.f32 %v1011_v56 }
 0x144   :  { %v1013_v57 = vpop.f32.mrf.mxu0  ;;  %2209 = vmatmul.msk.f32.vlgmr.msra.gmra.mxu3 %vm525_vm0, %v3204_v2  ;;  %v528_v2 = vpop.xlane.xlu0 %527 }
 0x145   :  { %v2297_v59 = vpop.eup %2296  ;;  %v1014_v60 = vadd.f32 %v3220_v26, %v1013_v57  ;;  %v575_v58 = vadd.f32 %v3271_v1, %v528_v2  ;;  %v2152_v57 = vmul.f32 -1.442695, %v579_v53 }
 0x146   :  { %2184 = vmatmul.msk.f32.gmra.mxu1 %vm525_vm0, %v2297_v59 }
 0x147   :  { %2298 = vtanh.f32 %v1014_v60  ;;  %v2148_v7 = vmul.f32 -1.442695, %v575_v58 }
 0x14c   :  { %v1016_v61 = vpop.f32.mrf.mxu0  ;;  %2210 = vmatmul.msk.f32.gmra.mxu3 %vm525_vm0, %v430_v10  ;;  %v531_v12 = vpop.xlane.xlu0 %530 }
 0x14d   :  { %v2299_v62 = vpop.eup %2298  ;;  %v1017_v63 = vadd.f32 %v3220_v26, %v1016_v61  ;;  %v576_v13 = vadd.f32 %v3271_v1, %v531_v12 }
 0x14e   :  { %2185 = vmatmul.msk.f32.gmra.mxu1 %vm525_vm0, %v2299_v62 }
 0x14f   :  { %2300 = vtanh.f32 %v1017_v63  ;;  %v2149_v21 = vmul.f32 -1.442695, %v576_v13 }
 0x154   :  { %v1019_v6 = vpop.f32.mrf.mxu0  ;;  %2211 = vmatmul.msk.f32.gmra.mxu3 %vm525_vm0, %v3227_v16 }
 0x155   :  { %v2301_v0 = vpop.eup %2300  ;;  %v1020_v46 = vadd.f32 %v3220_v26, %v1019_v6 }
 0x156   :  { %2186 = vmatmul.msk.f32.gmra.mxu1 %vm525_vm0, %v2301_v0 }
 0x157   :  { %2302 = vtanh.f32 %v1020_v46 }
 0x158   :  { %2304 = vpow2.f32 %v2148_v7 }
 0x15c   :  { %v1022_v5 = vpop.f32.mrf.mxu0 }
 0x15d   :  { %v2303_v9 = vpop.eup %2302  ;;  %v1023_v11 = vadd.f32 %v3220_v26, %v1022_v5 }
 0x15e   :  { %2187 = vmatmul.msk.f32.gmra.mxu1 %vm525_vm0, %v2303_v9  ;;  %v2305_v18 = vpop.eup %2304 }
 0x15f   :  { %2306 = vtanh.f32 %v1023_v11  ;;  %v639_v23 = vadd.f32 1.0, %v2305_v18  ;;  %v543_v11 = vpop.xlane.xlu2 %542  ;;  %v546_v18 = vpop.xlane.xlu0 %545 }
 0x160   :  { %2308 = vpow2.f32 %v2149_v21  ;;  %v580_v13 = vadd.f32 %v3271_v1, %v543_v11  ;;  %v581_v21 = vadd.f32 %v3271_v1, %v546_v18  ;;  %v3342_v18 = vpop.f32.mrf.mxu2 }
 0x161   :  { %v666_v33 = vand.u32 2147483648, %v639_v23  ;;  %vm660_vm1 = vweird.f32 %v639_v23  ;;  %v664_v35 = vand.u32 2147483647, %v639_v23 }
 0x162   :  { %v2153_v27 = vmul.f32 -1.442695, %v580_v13 }
 0x163   :  { %v667_v40 = vor.u32 1.1754944e-38, %v666_v33  ;;  %vm665_vm4 = vcmp.eq.f32.partialorder %v664_v35, 8.507059e+37 }
 0x164   :  { %v1025_v15 = vpop.f32.mrf.mxu0 }
 0x165   :  { %v2307_v14 = vpop.eup %2306  ;;  %v1026_v22 = vadd.f32 %v3220_v26, %v1025_v15 }
 0x166   :  { %2188 = vmatmul.msk.f32.gmra.mxu1 %vm525_vm0, %v2307_v14  ;;  %v2309_v28 = vpop.eup %2308 }
 0x167   :  { %2310 = vtanh.f32 %v1026_v22  ;;  %v640_v16 = vadd.f32 1.0, %v2309_v28 }
 0x168   :  { %2312 = vrcp.f32 %v639_v23 }
 0x169   :  { %2314 = vpow2.f32 %v2150_v30  ;;  %vm675_vm5 = vweird.f32 %v640_v16  ;;  %v681_v50 = vand.u32 2147483648, %v640_v16  ;;  %v679_v52 = vand.u32 2147483647, %v640_v16 }
 0x16b   :  { %v682_v56 = vor.u32 1.1754944e-38, %v681_v50  ;;  %vm680_vm8 = vcmp.eq.f32.partialorder %v679_v52, 8.507059e+37 }
 0x16c   :  { %v1028_v29 = vpop.f32.mrf.mxu0 }
 0x16d   :  { %v2311_v8 = vpop.eup %2310  ;;  %v1029_v10 = vadd.f32 %v3220_v26, %v1028_v29 }
 0x16e   :  { %v2313_v31 = vpop.eup %2312  ;;  %2189 = vmatmul.msk.f32.gmra.mxu1 %vm525_vm0, %v2311_v8  ;;  %v2154_v8 = vmul.f32 -1.442695, %v581_v21 }
 0x16f   :  { %2316 = vtanh.f32 %v1029_v10  ;;  %v656_v32 = vmul.f32 %v2313_v31, %v639_v23  ;;  %vm661_vm2 = vweird.f32 %v2313_v31  ;;  %v2315_v19 = vpop.eup %2314 }
 0x170   :  { %2318 = vrcp.f32 %v640_v16  ;;  %vm3283_vm3 = vmor %vm660_vm1, %vm661_vm2  ;;  %v641_v44 = vadd.f32 1.0, %v2315_v19 }
 0x171   :  { %v657_v34 = vsub.f32 1.0, %v656_v32  ;;  %2320 = vpow2.f32 %v2151_v17 }
 0x172   :  { %vm690_vm9 = vweird.f32 %v641_v44  ;;  %v696_v2 = vand.u32 2147483648, %v641_v44  ;;  %v694_v9 = vand.u32 2147483647, %v641_v44 }
 0x173   :  { %v658_v3 = vmul.f32 %v2313_v31, %v657_v34 }
 0x174   :  { %v1031_v20 = vpop.f32.mrf.mxu0  ;;  %v697_v24 = vor.u32 1.1754944e-38, %v696_v2  ;;  %vm695_vm12 = vcmp.eq.f32.partialorder %v694_v9, 8.507059e+37  ;;  %v555_v9 = vpop.xlane.xlu0 %554 }
 0x175   :  { %v2317_v41 = vpop.eup %2316  ;;  %v1032_v25 = vadd.f32 %v3220_v26, %v1031_v20  ;;  %v659_v42 = vadd.f32 %v2313_v31, %v658_v3  ;;  %v549_v20 = vpop.xlane.xlu1 %548 }
 0x176   :  { %v2319_v45 = vpop.eup %2318  ;;  %2190 = vmatmul.msk.f32.gmra.mxu1 %vm525_vm0, %v2317_v41 }
 0x177   :  { %2322 = vtanh.f32 %v1032_v25  ;;  %v663_v47 = vsel %vm3283_vm3, %v2313_v31, %v659_v42  ;;  %v671_v4 = vmul.f32 %v2319_v45, %v640_v16  ;;  %vm676_vm6 = vweird.f32 %v2319_v45  ;;  %v2321_v55 = vpop.eup %2320 }
 0x178   :  { %v668_v49 = vsel %vm665_vm4, %v667_v40, %v663_v47  ;;  %2324 = vrcp.f32 %v641_v44  ;;  %vm677_vm7 = vmor %vm675_vm5, %vm676_vm6  ;;  %v642_v62 = vadd.f32 1.0, %v2321_v55  ;;  %v582_v40 = vadd.f32 %v3271_v1, %v549_v20 }
 0x179   :  { %v895_v39 = vmul.f32 1.442695, %v668_v49  ;;  %v672_v51 = vsub.f32 1.0, %v671_v4  ;;  %v552_v4 = vpop.xlane.xlu2 %551 }
 0x17a   :  { %vm705_vm13 = vweird.f32 %v642_v62  ;;  %v709_v35 = vand.u32 2147483647, %v642_v62  ;;  %v711_v36 = vand.u32 2147483648, %v642_v62  ;;  %v2155_v47 = vmul.f32 -1.442695, %v582_v40 }
 0x17b   :  { %2326 = vpow2.f32 %v895_v39  ;;  %v673_v54 = vmul.f32 %v2319_v45, %v672_v51  ;;  %v583_v39 = vadd.f32 %v3271_v1, %v552_v4 }
 0x17c   :  { %v1034_v43 = vpop.f32.mrf.mxu0  ;;  %2328 = vpow2.f32 %v2152_v57  ;;  %vm3317_vm1 = vcmp.eq.f32.partialorder %v709_v35, 8.507059e+37 }
 0x17d   :  { %v2323_v59 = vpop.eup %2322  ;;  %v1035_v60 = vadd.f32 %v3220_v26, %v1034_v43  ;;  %v674_v61 = vadd.f32 %v2319_v45, %v673_v54 }
 0x17e   :  { %v2325_v63 = vpop.eup %2324  ;;  %2191 = vmatmul.msk.f32.gmra.mxu1 %vm525_vm0, %v2323_v59 }
 0x17f   :  { %2330 = vtanh.f32 %v1035_v60  ;;  %v678_v6 = vsel %vm677_vm7, %v2319_v45, %v674_v61  ;;  %v686_v0 = vmul.f32 %v2325_v63, %v641_v44  ;;  %vm691_vm10 = vweird.f32 %v2325_v63 }
 0x180   :  { %v683_v46 = vsel %vm680_vm8, %v682_v56, %v678_v6  ;;  %2332 = vrcp.f32 %v642_v62  ;;  %vm3301_vm11 = vmor %vm690_vm9, %vm691_vm10  ;;  %v712_v45 = vor.u32 1.1754944e-38, %v711_v36  ;;  %v2156_v6 = vmul.f32 -1.442695, %v583_v39 }
 0x181   :  { %v3294_v58 = vpop.eup %2326  ;;  %v897_v5 = vmul.f32 1.442695, %v683_v46  ;;  %v687_v7 = vsub.f32 1.0, %v686_v0 }
 0x182   :  { %v1386_v12 = vrot.slane %v3294_v58, 4  ;;  %v2329_v14 = vpop.eup %2328 }
 0x183   :  { %2334 = vpow2.f32 %v897_v5  ;;  %v688_v15 = vmul.f32 %v2325_v63, %v687_v7  ;;  %v643_v30 = vadd.f32 1.0, %v2329_v14 }
 0x184   :  { %v1387_v22 = vadd.f32 %v3294_v58, %v1386_v12  ;;  %2336 = vpow2.f32 %v2153_v27 }
 0x185   :  { %v2331_v28 = vpop.eup %2330  ;;  %v689_v29 = vadd.f32 %v2325_v63, %v688_v15  ;;  %2338 = vrcp.f32 %v643_v30  ;;  %vm720_vm2 = vweird.f32 %v643_v30  ;;  %v726_v43 = vand.u32 2147483648, %v643_v30 }
 0x186   :  { %v2333_v10 = vpop.eup %2332  ;;  %v1388_v16 = vrot.slane %v1387_v22, 2  ;;  %2192 = vmatmul.msk.f32.gmra.mxu1 %vm525_vm0, %v2331_v28  ;;  %2340 = vpow2.f32 %v2154_v8  ;;  %v724_v59 = vand.u32 2147483647, %v643_v30  ;;  %v584_v15 = vadd.f32 %v3271_v1, %v555_v9  ;;  %v558_v28 = vpop.xlane.xlu1 %557 }
 0x187   :  { %v693_v31 = vsel %vm3301_vm11, %v2325_v63, %v689_v29  ;;  %v701_v32 = vmul.f32 %v2333_v10, %v642_v62  ;;  %vm706_vm14 = vweird.f32 %v2333_v10  ;;  %v727_v2 = vor.u32 1.1754944e-38, %v726_v43 }
 0x188   :  { %v1389_v33 = vadd.f32 %v1388_v16, %v1387_v22  ;;  %v698_v34 = vsel %vm695_vm12, %v697_v24, %v693_v31  ;;  %vm3313_vm15 = vmor %vm705_vm13, %vm706_vm14  ;;  %vm725_vm5 = vcmp.eq.f32.partialorder %v724_v59, 8.507059e+37  ;;  %v2157_v31 = vmul.f32 -1.442695, %v584_v15 }
 0x189   :  { %v3308_v37 = vpop.eup %2334  ;;  %v899_v3 = vmul.f32 1.442695, %v698_v34  ;;  %v702_v19 = vsub.f32 1.0, %v701_v32 }
 0x18a   :  { %v1626_v38 = vrot.slane %v3308_v37, 4  ;;  %v1390_v17 = vrot.slane %v1389_v33, 1  ;;  %v2337_v25 = vpop.eup %2336 }
 0x18b   :  { %v703_v41 = vmul.f32 %v2333_v10, %v702_v19  ;;  %v2339_v48 = vpop.eup %2338  ;;  %2342 = vpow2.f32 %v899_v3  ;;  %v644_v50 = vadd.f32 1.0, %v2337_v25 }
 0x18c   :  { %v1627_v51 = vadd.f32 %v3308_v37, %v1626_v38  ;;  %v716_v52 = vmul.f32 %v2339_v48, %v643_v30  ;;  %2344 = vpow2.f32 %v2155_v47  ;;  %v3323_v53 = vadd.f32 %v1390_v17, %v1389_v33  ;;  %v2341_v54 = vpop.eup %2340 }
 0x18d   :  { %v704_v49 = vadd.f32 %v2333_v10, %v703_v41  ;;  %2346 = vrcp.f32 %v644_v50  ;;  %vm721_vm3 = vweird.f32 %v2339_v48  ;;  %v3329_v61 = vadd.f32 1.0, %v2341_v54 }
 0x18e   :  { %v717_v57 = vsub.f32 1.0, %v716_v52  ;;  %v1628_v62 = vrot.slane %v1627_v51, 2  ;;  %2348 = vrcp.f32 %v3323_v53  ;;  %vm3335_vm4 = vmor %vm720_vm2, %vm721_vm3  ;;  %vm735_vm6 = vweird.f32 %v644_v50 }
 0x18f   :  { %v708_v55 = vsel %vm3313_vm15, %v2333_v10, %v704_v49  ;;  %v739_v12 = vand.u32 2147483647, %v644_v50  ;;  %v741_v27 = vand.u32 2147483648, %v644_v50  ;;  %v585_v10 = vadd.f32 %v3271_v1, %v558_v28 }
 0x190   :  { %v713_v56 = vsel %vm3317_vm1, %v712_v45, %v708_v55  ;;  %v718_v63 = vmul.f32 %v2339_v48, %v717_v57  ;;  %v3345_v21 = vadd.f32 %v1628_v62, %v1627_v51  ;;  %vm750_vm10 = vweird.f32 %v3329_v61  ;;  %v3387_v51 = vpop.f32.mrf.mxu2 }
 0x191   :  { %v901_v60 = vmul.f32 1.442695, %v713_v56  ;;  %v3332_v0 = vpop.eup %2342  ;;  %vm3363_vm9 = vcmp.eq.f32.partialorder %v739_v12, 8.507059e+37  ;;  %v742_v36 = vor.u32 1.1754944e-38, %v741_v27  ;;  %v2158_v41 = vmul.f32 -1.442695, %v585_v10 }
 0x192   :  { %v2345_v5 = vpop.eup %2344  ;;  %v719_v7 = vadd.f32 %v2339_v48, %v718_v63  ;;  %v1392_v23 = vrot.slane %v3332_v0, 4  ;;  %v1630_v19 = vrot.slane %v3345_v21, 1  ;;  %v754_v4 = vand.u32 2147483647, %v3329_v61 }
 0x193   :  { %2350 = vpow2.f32 %v901_v60  ;;  %v2347_v11 = vpop.eup %2346  ;;  %v3340_v13 = vadd.f32 1.0, %v2345_v5  ;;  %vm1439_vm1 = vweird.f32 %v3323_v53  ;;  %v1445_v27 = vand.u32 2147483648, %v3323_v53 }
 0x194   :  { %2352 = vrcp.f32 %v3329_v61  ;;  %v723_v14 = vsel %vm3335_vm4, %v2339_v48, %v719_v7  ;;  %v731_v22 = vmul.f32 %v2347_v11, %v644_v50  ;;  %v3351_v29 = vpop.eup %2348  ;;  %vm736_vm7 = vweird.f32 %v2347_v11 }
 0x195   :  { %2354 = vpow2.f32 %v2156_v6  ;;  %v728_v24 = vsel %vm725_vm5, %v727_v2, %v723_v14  ;;  %vm3359_vm8 = vmor %vm735_vm6, %vm736_vm7  ;;  %v1393_v38 = vadd.f32 %v3332_v0, %v1392_v23  ;;  %v1435_v17 = vmul.f32 %v3351_v29, %v3323_v53 }
 0x196   :  { %2356 = vrcp.f32 %v3340_v13  ;;  %v903_v30 = vmul.f32 1.442695, %v728_v24  ;;  %v732_v8 = vsub.f32 1.0, %v731_v22  ;;  %v756_v48 = vand.u32 2147483648, %v3329_v61 }
 0x197   :  { %v1436_v39 = vsub.f32 1.0, %v1435_v17  ;;  %v1394_v54 = vrot.slane %v1393_v38, 2  ;;  %vm765_vm12 = vweird.f32 %v3340_v13  ;;  %v769_v57 = vand.u32 2147483647, %v3340_v13 }
 0x198   :  { %2358 = vpow2.f32 %v903_v30  ;;  %v733_v33 = vmul.f32 %v2347_v11, %v732_v8  ;;  %v771_v63 = vand.u32 2147483648, %v3340_v13  ;;  %vm3408_vm15 = vcmp.eq.f32.partialorder %v754_v4, 8.507059e+37 }
 0x199   :  { %v3354_v16 = vpop.eup %2350  ;;  %2360 = vpow2.f32 %v2157_v31  ;;  %v757_v7 = vor.u32 1.1754944e-38, %v756_v48  ;;  %vm1440_vm3 = vweird.f32 %v3351_v29  ;;  %v1443_v23 = vand.u32 2147483647, %v3323_v53 }
 0x19a   :  { %v3356_v32 = vpop.eup %2352  ;;  %v734_v40 = vadd.f32 %v2347_v11, %v733_v33  ;;  %v1632_v42 = vrot.slane %v3354_v16, 4  ;;  %v3434_v28 = vadd.f32 %v1630_v19, %v3345_v21  ;;  %vm3440_vm4 = vcmp.eq.f32.partialorder %v769_v57, 8.507059e+37  ;;  %vm3452_vm5 = vmor %vm1439_vm1, %vm1440_vm3 }
 0x19b   :  { %v746_v3 = vmul.f32 %v3356_v32, %v3329_v61  ;;  %v2355_v20 = vpop.eup %2354  ;;  %vm751_vm11 = vweird.f32 %v3356_v32  ;;  %v772_v10 = vor.u32 1.1754944e-38, %v771_v63  ;;  %vm3462_vm6 = vcmp.eq.f32.partialorder %v1443_v23, 8.507059e+37 }
 0x19c   :  { %v3373_v25 = vpop.eup %2356  ;;  %v738_v45 = vsel %vm3359_vm8, %v2347_v11, %v734_v40  ;;  %v1633_v56 = vadd.f32 %v3354_v16, %v1632_v42  ;;  %v3395_v60 = vadd.f32 1.0, %v2355_v20  ;;  %vm3404_vm14 = vmor %vm750_vm10, %vm751_vm11  ;;  %v1437_v11 = vmul.f32 %v3351_v29, %v1436_v39  ;;  %v3466_v20 = vpop.f32.mrf.mxu2 }
 0x19d   :  { %v747_v44 = vsub.f32 1.0, %v746_v3  ;;  %v761_v47 = vmul.f32 %v3373_v25, %v3340_v13  ;;  %v743_v49 = vsel %vm3363_vm9, %v742_v36, %v738_v45  ;;  %vm766_vm13 = vweird.f32 %v3373_v25  ;;  %v567_v39 = vpop.xlane.xlu1 %566 }
 0x19e   :  { %v3389_v52 = vpop.eup %2358  ;;  %v905_v55 = vmul.f32 1.442695, %v743_v49  ;;  %2362 = vrcp.f32 %v3395_v60  ;;  %v1634_v15 = vrot.slane %v1633_v56, 2  ;;  %vm3422_vm2 = vmor %vm765_vm12, %vm766_vm13  ;;  %v1438_v31 = vadd.f32 %v3351_v29, %v1437_v11 }
 0x19f   :  { %v748_v50 = vmul.f32 %v3356_v32, %v747_v44  ;;  %v762_v43 = vsub.f32 1.0, %v761_v47  ;;  %v2361_v2 = vpop.eup %2360  ;;  %v1398_v5 = vrot.slane %v3389_v52, 4  ;;  %v3458_v36 = vadd.f32 %v1394_v54, %v1393_v38 }
 0x1a0   :  { %2364 = vpow2.f32 %v905_v55  ;;  %v3456_v34 = vadd.f32 1.0, %v2361_v2  ;;  %v3460_v3 = vadd.f32 %v1634_v15, %v1633_v56  ;;  %v1446_v53 = vor.u32 1.1754944e-38, %v1445_v27 }
 0x1a1   :  { %v749_v59 = vadd.f32 %v3356_v32, %v748_v50  ;;  %v763_v62 = vmul.f32 %v3373_v25, %v762_v43  ;;  %v3438_v30 = vadd.f32 %v3389_v52, %v1398_v5  ;;  %vm780_vm7 = vweird.f32 %v3395_v60 }
 0x1a2   :  { %v784_v49 = vand.u32 2147483647, %v3395_v60  ;;  %v801_v63 = vand.u32 2147483648, %v3456_v34  ;;  %v588_v2 = vadd.f32 %v3271_v1, %v567_v39  ;;  %vm1679_vm11 = vweird.f32 %v3434_v28 }
 0x1a3   :  { %v1129_v9 = vpop.f32.mrf.mxu1  ;;  %v764_v61 = vadd.f32 %v3373_v25, %v763_v62  ;;  %v753_v22 = vsel %vm3404_vm14, %v3356_v32, %v749_v59  ;;  %v1400_v38 = vrot.slane %v3438_v30, 2  ;;  %v799_v62 = vand.u32 2147483647, %v3456_v34 }
 0x1a4   :  { %v1243_v12 = vadd.f32 %v3342_v18, %v1129_v9  ;;  %v561_v18 = vpop.xlane.xlu2 %560  ;;  %v758_v21 = vsel %vm3408_vm15, %v757_v7, %v753_v22  ;;  %v2363_v35 = vpop.eup %2362  ;;  %vm785_vm10 = vcmp.eq.f32.partialorder %v784_v49, 8.507059e+37  ;;  %vm795_vm12 = vweird.f32 %v3456_v34 }
 0x1a5   :  { %v586_v13 = vadd.f32 %v3271_v1, %v561_v18  ;;  %v768_v32 = vsel %vm3422_vm2, %v3373_v25, %v764_v61  ;;  %v776_v17 = vmul.f32 %v2363_v35, %v3395_v60  ;;  %v786_v25 = vand.u32 2147483648, %v3395_v60  ;;  %v3522_v22 = vpop.f32.mrf.mxu2 }
 0x1a6   :  { %v1290_v24 = vadd.f32 %v3220_v26, %v1243_v12  ;;  %v3468_v40 = vpop.eup %2364  ;;  %v773_v42 = vsel %vm3440_vm4, %v772_v10, %v768_v32  ;;  %v907_v44 = vmul.f32 1.442695, %v758_v21  ;;  %vm781_vm8 = vweird.f32 %v2363_v35 }
 0x1a7   :  { %v777_v47 = vsub.f32 1.0, %v776_v17  ;;  %v1638_v48 = vrot.slane %v3468_v40, 4  ;;  %v2159_v50 = vmul.f32 -1.442695, %v586_v13  ;;  %v909_v55 = vmul.f32 1.442695, %v773_v42  ;;  %vm3489_vm9 = vmor %vm780_vm7, %vm781_vm8  ;;  %v564_v13 = vpop.xlane.xlu0 %563 }
 0x1a8   :  { %2366 = vtanh.f32 %v1290_v24  ;;  %v787_v56 = vor.u32 1.1754944e-38, %v786_v25  ;;  %vm3515_vm13 = vcmp.eq.f32.partialorder %v799_v62, 8.507059e+37  ;;  %v1683_v15 = vand.u32 2147483647, %v3434_v28 }
 0x1a9   :  { %2368 = vpow2.f32 %v2158_v41  ;;  %v1442_v41 = vsel %vm3452_vm5, %v3351_v29, %v1438_v31  ;;  %v778_v43 = vmul.f32 %v2363_v35, %v777_v47  ;;  %v802_v24 = vor.u32 1.1754944e-38, %v801_v63 }
 0x1aa   :  { %2370 = vrcp.f32 %v3456_v34  ;;  %v3506_v9 = vsel %vm3462_vm6, %v1446_v53, %v1442_v41  ;;  %v2161_v27 = vmul.f32 -1.442695, %v588_v2  ;;  %v1685_v32 = vand.u32 2147483648, %v3434_v28 }
 0x1ab   :  { %v1132_v45 = vpop.f32.mrf.mxu1  ;;  %2372 = vrcp.f32 %v3434_v28  ;;  %v779_v6 = vadd.f32 %v2363_v35, %v778_v43  ;;  %v587_v21 = vadd.f32 %v3271_v1, %v564_v13  ;;  %vm3537_vm1 = vcmp.eq.f32.partialorder %v1683_v15, 8.507059e+37 }
 0x1ac   :  { %v1246_v4 = vadd.f32 %v3387_v51, %v1132_v45  ;;  %2374 = vpow2.f32 %v2159_v50  ;;  %v1686_v15 = vor.u32 1.1754944e-38, %v1685_v32 }
 0x1ad   :  { %v783_v11 = vsel %vm3489_vm9, %v2363_v35, %v779_v6  ;;  %v2160_v6 = vmul.f32 -1.442695, %v587_v21 }
 0x1ae   :  { %v2367_v54 = vpop.eup %2366  ;;  %v1291_v29 = vadd.f32 %v3220_v26, %v1246_v4  ;;  %v788_v18 = vsel %vm785_vm10, %v787_v56, %v783_v11 }
 0x1af   :  { %v2369_v57 = vpop.eup %2368  ;;  %v1322_v59 = vmul.f32 %v2367_v54, %v3294_v58  ;;  %v3499_v58 = vadd.f32 %v3468_v40, %v1638_v48  ;;  %v911_v25 = vmul.f32 1.442695, %v788_v18 }
 0x1b0   :  { %v3495_v46 = vadd.f32 1.0, %v2369_v57  ;;  %2376 = vtanh.f32 %v1291_v29  ;;  %v3502_v5 = vpop.eup %2370 }
 0x1b1   :  { %2378 = vpow2.f32 %v907_v44  ;;  %v1330_v60 = vsel %vm525_vm0, %v1322_v59, 0.0  ;;  %v3512_v61 = vpop.eup %2372  ;;  %v1640_v10 = vrot.slane %v3499_v58, 2  ;;  %v791_v31 = vmul.f32 %v3502_v5, %v3456_v34 }
 0x1b2   :  { %v1331_v7 = vrot.slane %v1330_v60, 4  ;;  %2380 = vrcp.f32 %v3495_v46  ;;  %v2375_v8 = vpop.eup %2374  ;;  %vm810_vm14 = vweird.f32 %v3495_v46  ;;  %v814_v19 = vand.u32 2147483647, %v3495_v46 }
 0x1b3   :  { %2382 = vpow2.f32 %v909_v55  ;;  %v3520_v14 = vpop.f32.mrf.mxu1  ;;  %v1675_v53 = vmul.f32 %v3512_v61, %v3434_v28  ;;  %v792_v42 = vsub.f32 1.0, %v791_v31  ;;  %vm796_vm15 = vweird.f32 %v3502_v5 }
 0x1b4   :  { %v1332_v23 = vadd.f32 %v1331_v7, %v1330_v60  ;;  %v3541_v48 = vadd.f32 1.0, %v2375_v8  ;;  %2384 = vpow2.f32 %v2161_v27  ;;  %v816_v39 = vand.u32 2147483648, %v3495_v46  ;;  %vm3551_vm2 = vmor %vm795_vm12, %vm796_vm15  ;;  %v573_v27 = vpop.xlane.xlu0 %572 }
 0x1b5   :  { %v1676_v47 = vsub.f32 1.0, %v1675_v53  ;;  %v793_v54 = vmul.f32 %v3502_v5, %v792_v42  ;;  %vm1680_vm3 = vweird.f32 %v3512_v61  ;;  %vm3582_vm7 = vcmp.eq.f32.partialorder %v814_v19, 8.507059e+37 }
 0x1b6   :  { %v2377_v33 = vpop.eup %2376  ;;  %v1333_v35 = vrot.slane %v1332_v23, 2  ;;  %2386 = vrcp.f32 %v3541_v48  ;;  %vm3569_vm5 = vmor %vm1679_vm11, %vm1680_vm3  ;;  %v817_v32 = vor.u32 1.1754944e-38, %v816_v39  ;;  %vm825_vm8 = vweird.f32 %v3541_v48 }
 0x1b7   :  { %v3533_v17 = vpop.eup %2378  ;;  %v1562_v44 = vmul.f32 %v2377_v33, %v3308_v37  ;;  %v1677_v56 = vmul.f32 %v3512_v61, %v1676_v47  ;;  %v794_v59 = vadd.f32 %v3502_v5, %v793_v54  ;;  %2388 = vpow2.f32 %v911_v25 }
 0x1b8   :  { %v2381_v41 = vpop.eup %2380  ;;  %v1334_v45 = vadd.f32 %v1333_v35, %v1332_v23  ;;  %v1404_v34 = vrot.slane %v3533_v17, 4  ;;  %v3573_v23 = vpop.f32.mrf.mxu2  ;;  %2390 = vpow2.f32 %v2160_v6  ;;  %v829_v42 = vand.u32 2147483647, %v3541_v48 }
 0x1b9   :  { %v3543_v49 = vpop.eup %2382  ;;  %v806_v50 = vmul.f32 %v2381_v41, %v3495_v46  ;;  %v1570_v37 = vsel %vm525_vm0, %v1562_v44, 0.0  ;;  %vm811_vm4 = vweird.f32 %v2381_v41  ;;  %v1678_v63 = vadd.f32 %v3512_v61, %v1677_v56 }
 0x1ba   :  { %v1571_v43 = vrot.slane %v1570_v37, 4  ;;  %v1335_v29 = vrot.slane %v1334_v45, 1  ;;  %v1644_v2 = vrot.slane %v3543_v49, 4  ;;  %v798_v7 = vsel %vm3551_vm2, %v3502_v5, %v794_v59  ;;  %v2385_v18 = vpop.eup %2384  ;;  %vm3578_vm6 = vmor %vm810_vm14, %vm811_vm4 }
 0x1bb   :  { %v807_v57 = vsub.f32 1.0, %v806_v50  ;;  %v3559_v51 = vpop.f32.mrf.mxu1  ;;  %v803_v28 = vsel %vm3515_vm13, %v802_v24, %v798_v7  ;;  %v1682_v46 = vsel %vm3569_vm5, %v3512_v61, %v1678_v63  ;;  %v3591_v53 = vadd.f32 1.0, %v2385_v18 }
 0x1bc   :  { %v1572_v62 = vadd.f32 %v1571_v43, %v1570_v37  ;;  %v1336_v8 = vadd.f32 %v1335_v29, %v1334_v45  ;;  %v913_v21 = vmul.f32 1.442695, %v803_v28  ;;  %v2387_v33 = vpop.eup %2386  ;;  %v831_v24 = vand.u32 2147483648, %v3541_v48 }
 0x1bd   :  { %v808_v60 = vmul.f32 %v2381_v41, %v807_v57  ;;  %v821_v12 = vmul.f32 %v2387_v33, %v3541_v48  ;;  %v1687_v44 = vsel %vm3537_vm1, %v1686_v15, %v1682_v46  ;;  %vm826_vm9 = vweird.f32 %v2387_v33  ;;  %v3606_v50 = vpop.eup %2388 }
 0x1be   :  { %v1573_v13 = vrot.slane %v1572_v62, 2  ;;  %2392 = vpow2.f32 %v913_v21  ;;  %v3609_v39 = vadd.f32 %v3543_v49, %v1644_v2  ;;  %v3612_v54 = vadd.f32 %v3533_v17, %v1404_v34  ;;  %v2391_v57 = vpop.eup %2390  ;;  %vm3621_vm10 = vmor %vm825_vm8, %vm826_vm9 }
 0x1bf   :  { %v809_v31 = vadd.f32 %v2381_v41, %v808_v60  ;;  %2394 = vrcp.f32 %v3591_v53  ;;  %v822_v45 = vsub.f32 1.0, %v821_v12  ;;  %v1249_v55 = vadd.f32 %v3466_v20, %v3520_v14  ;;  %v3627_v14 = vpop.f32.mrf.mxu3 }
 0x1c0   :  { %v1574_v35 = vadd.f32 %v1573_v13, %v1572_v62  ;;  %v1546_v4 = vmul.f32 %v3506_v9, %v1336_v8  ;;  %v832_v56 = vor.u32 1.1754944e-38, %v831_v24  ;;  %v1396_v29 = vrot.slane %v3458_v36, 1  ;;  %v3640_v7 = vpop.f32.mrf.mxu2 }
 0x1c1   :  { %v813_v19 = vsel %vm3578_vm6, %v2381_v41, %v809_v31  ;;  %v570_v41 = vpop.xlane.xlu2 %569  ;;  %v823_v43 = vmul.f32 %v2387_v33, %v822_v45  ;;  %v1292_v34 = vadd.f32 %v3220_v26, %v1249_v55  ;;  %vm3631_vm11 = vcmp.eq.f32.partialorder %v829_v42, 8.507059e+37 }
 0x1c2   :  { %v1575_v25 = vrot.slane %v1574_v35, 1  ;;  %v818_v61 = vsel %vm3582_vm7, %v817_v32, %v813_v19  ;;  %v589_v20 = vadd.f32 %v3271_v1, %v570_v41  ;;  %v3635_v60 = vadd.f32 1.0, %v2391_v57 }
 0x1c3   :  { %v3604_v47 = vpop.f32.mrf.mxu1  ;;  %v915_v59 = vmul.f32 1.442695, %v818_v61  ;;  %v824_v6 = vadd.f32 %v2387_v33, %v823_v43  ;;  %v3638_v48 = vadd.f32 %v1396_v29, %v3458_v36  ;;  %v1410_v26 = vrot.slane %v3606_v50, 4 }
 0x1c4   :  { %v1576_v37 = vadd.f32 %v1575_v25, %v1574_v35  ;;  %v3629_v9 = vpop.eup %2392  ;;  %v859_v18 = vand.u32 2147483647, %v3591_v53  ;;  %2396 = vtanh.f32 %v1292_v34  ;;  %v861_v36 = vand.u32 2147483648, %v3591_v53 }
 0x1c5   :  { %v3642_v11 = vpop.eup %2394  ;;  %v828_v5 = vsel %vm3621_vm10, %v2387_v33, %v824_v6  ;;  %2398 = vrcp.f32 %v3635_v60  ;;  %v1650_v13 = vrot.slane %v3629_v9, 4  ;;  %v2162_v31 = vmul.f32 -1.442695, %v589_v20 }
 0x1c6   :  { %v1786_v62 = vmul.f32 %v1687_v44, %v1576_v37  ;;  %v851_v28 = vmul.f32 %v3642_v11, %v3591_v53  ;;  %2400 = vpow2.f32 %v915_v59  ;;  %v833_v8 = vsel %vm3631_vm11, %v832_v56, %v828_v5 }
 0x1c7   :  { %v3660_v32 = vadd.f32 %v1400_v38, %v3438_v30  ;;  %2402 = vrcp.f32 %v3638_v48  ;;  %v590_v33 = vadd.f32 %v3271_v1, %v573_v27  ;;  %v3669_v46 = vadd.f32 %v1640_v10, %v3499_v58  ;;  %v3699_v43 = vpop.f32.mrf.mxu3 }
 0x1c8   :  { %v3645_v15 = vadd.f32 %v1786_v62, %v1546_v4  ;;  %v852_v21 = vsub.f32 1.0, %v851_v28  ;;  %v917_v19 = vmul.f32 1.442695, %v833_v8  ;;  %vm855_vm12 = vweird.f32 %v3591_v53  ;;  %v3705_v57 = vpop.f32.mrf.mxu2 }
 0x1c9   :  { %vm856_vm13 = vweird.f32 %v3642_v11  ;;  %v1646_v30 = vrot.slane %v3609_v39, 2  ;;  %v1406_v38 = vrot.slane %v3612_v54, 2  ;;  %v3676_v12 = vadd.f32 %v3606_v50, %v1410_v26 }
 0x1ca   :  { %v853_v1 = vmul.f32 %v3642_v11, %v852_v21  ;;  %v2397_v24 = vpop.eup %2396  ;;  %v3680_v25 = vadd.f32 %v3629_v9, %v1650_v13  ;;  %vm3682_vm14 = vcmp.eq.f32.partialorder %v859_v18, 8.507059e+37  ;;  %v862_v10 = vor.u32 1.1754944e-38, %v861_v36  ;;  %vm3687_vm15 = vmor %vm855_vm12, %vm856_vm13  ;;  %v3734_v36 = vld [vmem:[#allocation20] ss:$0 sm:$0xff] }
 0x1cb   :  { %v3664_v35 = vpop.f32.mrf.mxu1  ;;  %2404 = vpow2.f32 %v2162_v31  ;;  %v2399_v53 = vpop.eup %2398  ;;  %vm840_vm1 = vweird.f32 %v3635_v60  ;;  %v1323_v44 = vmul.f32 %v2397_v24, %v3332_v0  ;;  %v2163_v45 = vmul.f32 -1.442695, %v590_v33 }
 0x1cc   :  { %v854_v42 = vadd.f32 %v3642_v11, %v853_v1  ;;  %v3693_v41 = vpop.eup %2400  ;;  %2406 = vpow2.f32 %v917_v19  ;;  %v836_v37 = vmul.f32 %v2399_v53, %v3635_v60  ;;  %v844_v55 = vand.u32 2147483647, %v3635_v60 }
 0x1cd   :  { %v1252_v4 = vadd.f32 %v3522_v22, %v3559_v51  ;;  %v3701_v56 = vpop.eup %2402  ;;  %vm841_vm2 = vweird.f32 %v2399_v53  ;;  %v846_v29 = vand.u32 2147483648, %v3635_v60  ;;  %v1337_v0 = vsel %vm525_vm0, %v1323_v44, 0.0 }
 0x1ce   :  { %2408 = vpow2.f32 %v2163_v45  ;;  %v858_v59 = vsel %vm3687_vm15, %v3642_v11, %v854_v42  ;;  %v837_v62 = vsub.f32 1.0, %v836_v37  ;;  %v1338_v63 = vrot.slane %v1337_v0, 4  ;;  %vm3728_vm3 = vmor %vm840_vm1, %vm841_vm2 }
 0x1cf   :  { %v1449_v22 = vmul.f32 %v3701_v56, %v3638_v48  ;;  %v3713_v51 = vadd.f32 %v1646_v30, %v3609_v39  ;;  %v3716_v34 = vadd.f32 %v1406_v38, %v3612_v54  ;;  %v1412_v20 = vrot.slane %v3676_v12, 2 }
 0x1d0   :  { %v1416_v6 = vrot.slane %v3693_v41, 4  ;;  %v1652_v11 = vrot.slane %v3680_v25, 2  ;;  %v838_v18 = vmul.f32 %v2399_v53, %v837_v62  ;;  %v1339_v27 = vadd.f32 %v1338_v63, %v1337_v0 }
 0x1d1   :  { %v2405_v26 = vpop.eup %2404  ;;  %v1450_v5 = vsub.f32 1.0, %v1449_v22  ;;  %v863_v28 = vsel %vm3682_vm14, %v862_v10, %v858_v59  ;;  %v1293_v13 = vadd.f32 %v3734_v36, %v1252_v4  ;;  %v1636_v8 = vrot.slane %v3460_v3, 1  ;;  %v3776_v59 = vpop.f32.mrf.mxu2 }
 0x1d2   :  { %v3732_v54 = vadd.f32 1.0, %v2405_v26  ;;  %v3738_v31 = vpop.eup %2406  ;;  %v839_v21 = vadd.f32 %v2399_v53, %v838_v18  ;;  %vm3740_vm4 = vcmp.eq.f32.partialorder %v844_v55, 8.507059e+37  ;;  %v847_v60 = vor.u32 1.1754944e-38, %v846_v29  ;;  %v3765_v55 = vpop.f32.mrf.mxu3 }
 0x1d3   :  { %v3720_v2 = vpop.f32.mrf.mxu1  ;;  %vm1453_vm5 = vweird.f32 %v3638_v48  ;;  %v1340_v30 = vrot.slane %v1339_v27, 2  ;;  %v1451_v38 = vmul.f32 %v3701_v56, %v1450_v5  ;;  %v1457_v1 = vand.u32 2147483647, %v3638_v48 }
 0x1d4   :  { %v2409_v19 = vpop.eup %2408  ;;  %2410 = vrcp.f32 %v3732_v54  ;;  %v921_v24 = vmul.f32 1.442695, %v863_v28  ;;  %v843_v58 = vsel %vm3728_vm3, %v2399_v53, %v839_v21  ;;  %v1459_v10 = vand.u32 2147483648, %v3638_v48 }
 0x1d5   :  { %v3751_v42 = vadd.f32 1.0, %v2409_v19  ;;  %v1656_v61 = vrot.slane %v3738_v31, 4  ;;  %vm1454_vm6 = vweird.f32 %v3701_v56  ;;  %2412 = vtanh.f32 %v1293_v13 }
 0x1d6   :  { %v3756_v44 = vadd.f32 %v1636_v8, %v3460_v3  ;;  %v3759_v45 = vadd.f32 %v1412_v20, %v3676_v12  ;;  %v848_v37 = vsel %vm3740_vm4, %v847_v60, %v843_v58  ;;  %v876_v53 = vand.u32 2147483648, %v3732_v54  ;;  %vm3782_vm7 = vmor %vm1453_vm5, %vm1454_vm6 }
 0x1d7   :  { %2414 = vrcp.f32 %v3751_v42  ;;  %v3768_v4 = vadd.f32 %v3693_v41, %v1416_v6  ;;  %v3771_v29 = vadd.f32 %v1652_v11, %v3680_v25  ;;  %v1341_v3 = vadd.f32 %v1340_v30, %v1339_v27 }
 0x1d8   :  { %v1452_v0 = vadd.f32 %v3701_v56, %v1451_v38  ;;  %2416 = vpow2.f32 %v921_v24  ;;  %vm3786_vm8 = vcmp.eq.f32.partialorder %v1457_v1, 8.507059e+37  ;;  %v1460_v25 = vor.u32 1.1754944e-38, %v1459_v10 }
 0x1d9   :  { %v874_v22 = vand.u32 2147483647, %v3732_v54  ;;  %v3794_v6 = vadd.f32 %v3738_v31, %v1656_v61  ;;  %v919_v26 = vmul.f32 1.442695, %v848_v37  ;;  %2418 = vrcp.f32 %v3756_v44 }
 0x1da   :  { %v3791_v20 = vpop.eup %2410  ;;  %v1697_v48 = vand.u32 2147483647, %v3756_v44  ;;  %vm870_vm9 = vweird.f32 %v3732_v54  ;;  %v3801_v18 = vor.u32 1.1754944e-38, %v876_v53  ;;  %vm1693_vm10 = vweird.f32 %v3756_v44 }
 0x1db   :  { %v3774_v12 = vpop.f32.mrf.mxu1  ;;  %v866_v11 = vmul.f32 %v3791_v20, %v3732_v54  ;;  %v1255_v27 = vadd.f32 %v3573_v23, %v3604_v47  ;;  %v2413_v5 = vpop.eup %2412  ;;  %v1342_v28 = vrot.slane %v1341_v3, 1  ;;  %v1456_v39 = vsel %vm3782_vm7, %v3701_v56, %v1452_v0 }
 0x1dc   :  { %v1402_v13 = vrot.slane %v3660_v32, 1  ;;  %v1258_v8 = vadd.f32 %v3640_v7, %v3664_v35  ;;  %vm3814_vm11 = vcmp.eq.f32.partialorder %v874_v22, 8.507059e+37  ;;  %v1563_v23 = vmul.f32 %v2413_v5, %v3354_v16  ;;  %v1281_v22 = vpop.f32.mrf.mxu3 }
 0x1dd   :  { %v3812_v21 = vpop.eup %2414  ;;  %v867_v33 = vsub.f32 1.0, %v866_v11  ;;  %v1294_v47 = vadd.f32 %v3734_v36, %v1255_v27  ;;  %v1642_v19 = vrot.slane %v3669_v46, 1  ;;  %2420 = vpow2.f32 %v919_v26 }
 0x1de   :  { %vm871_vm12 = vweird.f32 %v3791_v20  ;;  %v881_v56 = vmul.f32 %v3812_v21, %v3751_v42  ;;  %v3825_v7 = vadd.f32 %v1402_v13, %v3660_v32  ;;  %v3827_v35 = vpop.eup %2416  ;;  %v1577_v38 = vsel %vm525_vm0, %v1563_v23, 0.0  ;;  %v3837_v32 = vpop.f32.mrf.mxu2 }
 0x1df   :  { %v868_v30 = vmul.f32 %v3791_v20, %v867_v33  ;;  %2422 = vtanh.f32 %v1294_v47  ;;  %v1295_v16 = vadd.f32 %v3734_v36, %v1258_v8  ;;  %v2419_v1 = vpop.eup %2418  ;;  %v889_v24 = vand.u32 2147483647, %v3751_v42  ;;  %vm3850_vm13 = vmor %vm870_vm9, %vm871_vm12 }
 0x1e0   :  { %v891_v58 = vand.u32 2147483648, %v3751_v42  ;;  %v1578_v10 = vrot.slane %v1577_v38, 4  ;;  %2424 = vrcp.f32 %v3825_v7  ;;  %v882_v53 = vsub.f32 1.0, %v881_v56 }
 0x1e1   :  { %v869_v37 = vadd.f32 %v3791_v20, %v868_v30  ;;  %v1689_v0 = vmul.f32 %v2419_v1, %v3756_v44  ;;  %v3842_v62 = vadd.f32 %v1642_v19, %v3669_v46  ;;  %v1343_v26 = vadd.f32 %v1342_v28, %v1341_v3 }
 0x1e2   :  { %v1461_v11 = vsel %vm3786_vm8, %v1460_v25, %v1456_v39  ;;  %v1579_v5 = vadd.f32 %v1578_v10, %v1577_v38  ;;  %v1699_v13 = vand.u32 2147483648, %v3756_v44  ;;  %vm885_vm14 = vweird.f32 %v3751_v42 }
 0x1e3   :  { %v3835_v61 = vpop.f32.mrf.mxu1  ;;  %v1690_v46 = vsub.f32 1.0, %v1689_v0  ;;  %vm1694_vm15 = vweird.f32 %v2419_v1  ;;  %2426 = vtanh.f32 %v1295_v16  ;;  %v3856_v3 = vpop.eup %2420  ;;  %v1662_v63 = vrot.slane %v3827_v35, 4 }
 0x1e4   :  { %v892_v25 = vor.u32 1.1754944e-38, %v891_v58  ;;  %v1580_v28 = vrot.slane %v1579_v5, 2  ;;  %vm3859_vm1 = vcmp.eq.f32.partialorder %v1697_v48, 8.507059e+37  ;;  %v873_v8 = vsel %vm3850_vm13, %v3791_v20, %v869_v37  ;;  %vm3877_vm3 = vmor %vm1693_vm10, %vm1694_vm15 }
 0x1e5   :  { %v2423_v39 = vpop.eup %2422  ;;  %v883_v33 = vmul.f32 %v3812_v21, %v882_v53  ;;  %vm3867_vm2 = vcmp.eq.f32.partialorder %v889_v24, 8.507059e+37  ;;  %v1691_v47 = vmul.f32 %v2419_v1, %v1690_v46  ;;  %2428 = vrcp.f32 %v3842_v62 }
 0x1e6   :  { %v3872_v19 = vpop.eup %2424  ;;  %v1547_v48 = vmul.f32 %v1461_v11, %v1343_v26  ;;  %v1581_v56 = vadd.f32 %v1580_v28, %v1579_v5  ;;  %v1700_v20 = vor.u32 1.1754944e-38, %v1699_v13  ;;  %v1324_v38 = vmul.f32 %v2423_v39, %v3389_v52  ;;  %v3893_v52 = vpop.f32.mrf.mxu2 }
 0x1e7   :  { %vm886_vm4 = vweird.f32 %v3812_v21  ;;  %v1692_v16 = vadd.f32 %v2419_v1, %v1691_v47  ;;  %v1463_v24 = vmul.f32 %v3872_v19, %v3825_v7  ;;  %v1282_v58 = vadd.f32 %v1281_v22, %v3627_v14 }
 0x1e8   :  { %v1422_v10 = vrot.slane %v3856_v3, 4  ;;  %v878_v44 = vsel %vm3814_vm11, %v3801_v18, %v873_v8  ;;  %v1582_v37 = vrot.slane %v1581_v56, 1  ;;  %v1344_v53 = vsel %vm525_vm0, %v1324_v38, 0.0  ;;  %vm3902_vm5 = vmor %vm885_vm14, %vm886_vm4  ;;  %v1284_v8 = vpop.f32.mrf.mxu3 }
 0x1e9   :  { %v2427_v26 = vpop.eup %2426  ;;  %v884_v11 = vadd.f32 %v3812_v21, %v883_v33  ;;  %v1696_v27 = vsel %vm3877_vm3, %v2419_v1, %v1692_v16  ;;  %v1345_v14 = vrot.slane %v1344_v53, 4  ;;  %v1464_v22 = vsub.f32 1.0, %v1463_v24 }
 0x1ea   :  { %v1583_v60 = vadd.f32 %v1582_v37, %v1581_v56  ;;  %v1701_v5 = vsel %vm3859_vm1, %v1700_v20, %v1696_v27  ;;  %vm1467_vm6 = vweird.f32 %v3825_v7  ;;  %v1564_v13 = vmul.f32 %v2427_v26, %v3468_v40 }
 0x1eb   :  { %v3891_v0 = vpop.f32.mrf.mxu1  ;;  %v3910_v46 = vpop.eup %2428  ;;  %v923_v1 = vmul.f32 1.442695, %v878_v44  ;;  %v1346_v28 = vadd.f32 %v1345_v14, %v1344_v53  ;;  %v1471_v39 = vand.u32 2147483647, %v3825_v7  ;;  %v1303_v42 = vadd.f32 %v3734_v36, %v1282_v58 }
 0x1ec   :  { %v1787_v33 = vmul.f32 %v1701_v5, %v1583_v60  ;;  %v1465_v47 = vmul.f32 %v3872_v19, %v1464_v22  ;;  %v1584_v56 = vsel %vm525_vm0, %v1564_v13, 0.0  ;;  %v1703_v54 = vmul.f32 %v3910_v46, %v3842_v62 }
 0x1ed   :  { %v888_v40 = vsel %vm3902_vm5, %v3812_v21, %v884_v11  ;;  %v1347_v30 = vrot.slane %v1346_v28, 2  ;;  %v1473_v20 = vand.u32 2147483648, %v3825_v7  ;;  %v1585_v38 = vrot.slane %v1584_v56, 4 }
 0x1ee   :  { %v3922_v16 = vadd.f32 %v1787_v33, %v1547_v48  ;;  %v1704_v24 = vsub.f32 1.0, %v1703_v54  ;;  %2430 = vtanh.f32 %v1303_v42  ;;  %v1261_v58 = vadd.f32 %v3705_v57, %v3720_v2  ;;  %v3935_v27 = vpop.f32.mrf.mxu2 }
 0x1ef   :  { %2432 = vpow2.f32 %v923_v1  ;;  %vm1468_vm7 = vweird.f32 %v3872_v19  ;;  %v1586_v44 = vadd.f32 %v1585_v38, %v1584_v56  ;;  %v1408_v37 = vrot.slane %v3716_v34, 1 }
 0x1f0   :  { %v893_v21 = vsel %vm3867_vm2, %v892_v25, %v888_v40  ;;  %v1466_v53 = vadd.f32 %v3872_v19, %v1465_v47  ;;  %v1296_v26 = vadd.f32 %v3734_v36, %v1261_v58  ;;  %v1285_v48 = vadd.f32 %v1284_v8, %v3699_v43  ;;  %vm3943_vm8 = vmor %vm1467_vm6, %vm1468_vm7  ;;  %v1287_v8 = vpop.f32.mrf.mxu3 }
 0x1f1   :  { %v1348_v57 = vadd.f32 %v1347_v30, %v1346_v28  ;;  %v1587_v2 = vrot.slane %v1586_v44, 2  ;;  %v1705_v14 = vmul.f32 %v3910_v46, %v1704_v24  ;;  %v3939_v22 = vadd.f32 %v1408_v37, %v3716_v34 }
 0x1f2   :  { %2434 = vtanh.f32 %v1296_v26  ;;  %v1304_v43 = vadd.f32 %v3734_v36, %v1285_v48  ;;  %v1264_v23 = vadd.f32 %v3776_v59, %v3774_v12  ;;  %v1648_v18 = vrot.slane %v3713_v51, 1 }
 0x1f3   :  { %v3933_v11 = vpop.f32.mrf.mxu1  ;;  %v925_v60 = vmul.f32 1.442695, %v893_v21  ;;  %v1588_v5 = vadd.f32 %v1587_v2, %v1586_v44  ;;  %v1711_v13 = vand.u32 2147483647, %v3842_v62  ;;  %2436 = vrcp.f32 %v3939_v22 }
 0x1f4   :  { %v2431_v34 = vpop.eup %2430  ;;  %vm1707_vm9 = vweird.f32 %v3842_v62  ;;  %vm1708_vm10 = vweird.f32 %v3910_v46  ;;  %v1713_v7 = vand.u32 2147483648, %v3842_v62  ;;  %2438 = vtanh.f32 %v1304_v43 }
 0x1f5   :  { %v3956_v1 = vpop.eup %2432  ;;  %v1470_v12 = vsel %vm3943_vm8, %v3872_v19, %v1466_v53  ;;  %vm3961_vm11 = vcmp.eq.f32.partialorder %v1471_v39, 8.507059e+37  ;;  %v1474_v28 = vor.u32 1.1754944e-38, %v1473_v20  ;;  %v1568_v42 = vmul.f32 %v2431_v34, %v3827_v35  ;;  %vm3975_vm12 = vmor %vm1707_vm9, %vm1708_vm10 }
 0x1f6   :  { %v1349_v33 = vrot.slane %v1348_v57, 1  ;;  %v1706_v47 = vadd.f32 %v3910_v46, %v1705_v14  ;;  %v1297_v56 = vadd.f32 %v3734_v36, %v1264_v23  ;;  %v3969_v54 = vadd.f32 %v1648_v18, %v3713_v51  ;;  %v1275_v44 = vpop.f32.mrf.mxu2  ;;  %v1805_v23 = vld [vmem:[#allocation22 + $0x8] sm:$0xff] }
 0x1f7   :  { %2440 = vpow2.f32 %v925_v60  ;;  %v1589_v40 = vrot.slane %v1588_v5, 1  ;;  %vm3979_vm13 = vcmp.eq.f32.partialorder %v1711_v13, 8.507059e+37  ;;  %v1612_v30 = vsel %vm525_vm0, %v1568_v42, 0.0  ;;  %1823 = vmatpush.msrb.mxu3 %v1805_v23 }
 0x1f8   :  { %v2435_v20 = vpop.eup %2434  ;;  %v1714_v38 = vor.u32 1.1754944e-38, %v1713_v7  ;;  %v1613_v51 = vrot.slane %v1612_v30, 4  ;;  %2442 = vtanh.f32 %v1297_v56  ;;  %v1288_v24 = vadd.f32 %v1287_v8, %v3765_v55 }
 0x1f9   :  { %v3987_v62 = vpop.eup %2436  ;;  %v1475_v37 = vsel %vm3961_vm11, %v1474_v28, %v1470_v12  ;;  %v1325_v21 = vmul.f32 %v2435_v20, %v3533_v17  ;;  %2444 = vrcp.f32 %v3969_v54  ;;  %v1267_v53 = vadd.f32 %v3837_v32, %v3835_v61  ;;  %v1804_v61 = vld [vmem:[#allocation22] sm:$0xff]  ;;  %v1803_v12 = vld [vmem:[%s4445_s13 + $0x8] sm:$0xff] }
 0x1fa   :  { %v2439_v26 = vpop.eup %2438  ;;  %v1350_v48 = vadd.f32 %v1349_v33, %v1348_v57  ;;  %v1710_v55 = vsel %vm3975_vm12, %v3910_v46, %v1706_v47  ;;  %v1477_v2 = vmul.f32 %v3987_v62, %v3939_v22  ;;  %vm1481_vm14 = vweird.f32 %v3939_v22  ;;  %1824 = vmatpush.msrb.mxu3 %v1804_v61  ;;  %v4019_v47 = vld [vmem:[#allocation5] sm:$0xff] }
 0x1fb   :  { %v3985_v58 = vpop.f32.mrf.mxu1  ;;  %v1590_v14 = vadd.f32 %v1589_v40, %v1588_v5  ;;  %v1351_v25 = vsel %vm525_vm0, %v1325_v21, 0.0  ;;  %v1485_v17 = vand.u32 2147483647, %v3939_v22  ;;  %v1329_v43 = vmul.f32 %v2439_v26, %v3956_v1  ;;  %2212 = vmatmul.msk.f32.vlgmr.msrb.gmra.mxu3 %vm525_vm0, %v4019_v47 }
 0x1fc   :  { %v1614_v32 = vadd.f32 %v1613_v51, %v1612_v30  ;;  %v1352_v57 = vrot.slane %v1351_v25, 4  ;;  %v1478_v18 = vsub.f32 1.0, %v1477_v2  ;;  %v1305_v60 = vadd.f32 %v3734_v36, %v1288_v24  ;;  %1867 = vmatpush.msra.mxu3 %v1803_v12 }
 0x1fd   :  { %v4005_v46 = vpop.eup %2440  ;;  %v1379_v13 = vsel %vm525_vm0, %v1329_v43, 0.0  ;;  %v1298_v5 = vadd.f32 %v3734_v36, %v1267_v53  ;;  %v1270_v34 = vadd.f32 %v3893_v52, %v3891_v0  ;;  %v1273_v7 = vadd.f32 %v3935_v27, %v3933_v11  ;;  %v1802_v27 = vld [vmem:[%s4445_s13] sm:$0xff] }
 0x1fe   :  { %v2443_v59 = vpop.eup %2442  ;;  %v1715_v28 = vsel %vm3979_vm13, %v1714_v38, %v1710_v55  ;;  %v1353_v42 = vadd.f32 %v1352_v57, %v1351_v25  ;;  %v1479_v8 = vmul.f32 %v3987_v62, %v1478_v18  ;;  %v1380_v33 = vrot.slane %v1379_v13, 4  ;;  %v1278_v26 = vpop.f32.mrf.mxu2  ;;  %1868 = vmatpush.msra.mxu3 %v1802_v27 }
 0x1ff   :  { %v4021_v56 = vpop.eup %2444  ;;  %v1487_v0 = vand.u32 2147483648, %v3939_v22  ;;  %v1565_v52 = vmul.f32 %v2443_v59, %v3543_v49  ;;  %2446 = vtanh.f32 %v1305_v60  ;;  %v1299_v11 = vadd.f32 %v3734_v36, %v1270_v34 }
 0x200   :  { %v1615_v40 = vrot.slane %v1614_v32, 2  ;;  %v1354_v19 = vrot.slane %v1353_v42, 2  ;;  %vm1482_vm15 = vweird.f32 %v3987_v62  ;;  %v1300_v39 = vadd.f32 %v3734_v36, %v1273_v7 }
 0x201   :  { %v1548_v30 = vmul.f32 %v1475_v37, %v1350_v48  ;;  %v1788_v20 = vmul.f32 %v1715_v28, %v1590_v14  ;;  %v1591_v49 = vsel %vm525_vm0, %v1565_v52, 0.0  ;;  %2448 = vtanh.f32 %v1298_v5  ;;  %vm4041_vm1 = vmor %vm1481_vm14, %vm1482_vm15 }
 0x202   :  { %v1480_v38 = vadd.f32 %v3987_v62, %v1479_v8  ;;  %v1381_v51 = vadd.f32 %v1380_v33, %v1379_v13  ;;  %v1592_v24 = vrot.slane %v1591_v49, 4  ;;  %v1717_v21 = vmul.f32 %v4021_v56, %v3969_v54 }
 0x203   :  { %v1165_v53 = vpop.f32.mrf.mxu1  ;;  %v1355_v55 = vadd.f32 %v1354_v19, %v1353_v42  ;;  %v1727_v48 = vand.u32 2147483648, %v3969_v54  ;;  %2450 = vtanh.f32 %v1299_v11  ;;  %v1276_v2 = vadd.f32 %v1275_v44, %v3985_v58 }
 0x204   :  { %v4047_v14 = vadd.f32 %v1615_v40, %v1614_v32  ;;  %vm4049_vm2 = vcmp.eq.f32.partialorder %v1485_v17, 8.507059e+37  ;;  %v1488_v43 = vor.u32 1.1754944e-38, %v1487_v0  ;;  %2452 = vtanh.f32 %v1300_v39 }
 0x205   :  { %v2447_v23 = vpop.eup %2446  ;;  %v1593_v61 = vadd.f32 %v1592_v24, %v1591_v49  ;;  %v1725_v22 = vand.u32 2147483647, %v3969_v54  ;;  %v1301_v57 = vadd.f32 %v3734_v36, %v1276_v2  ;;  %v1279_v18 = vadd.f32 %v1278_v26, %v1165_v53 }
 0x206   :  { %v4055_v60 = vadd.f32 %v1788_v20, %v1548_v30  ;;  %v1484_v58 = vsel %vm4041_vm1, %v3987_v62, %v1480_v38  ;;  %v1382_v44 = vrot.slane %v1381_v51, 2  ;;  %v1718_v17 = vsub.f32 1.0, %v1717_v21 }
 0x207   :  { %v2449_v32 = vpop.eup %2448  ;;  %v1356_v13 = vrot.slane %v1355_v55, 1  ;;  %v4060_v5 = vor.u32 1.1754944e-38, %v1727_v48  ;;  %2454 = vtanh.f32 %v1301_v57  ;;  %v1302_v34 = vadd.f32 %v3734_v36, %v1279_v18 }
 0x208   :  { %v1617_v7 = vrot.slane %v4047_v14, 1  ;;  %vm1721_vm3 = vweird.f32 %v3969_v54  ;;  %v1569_v12 = vmul.f32 %v2447_v23, %v4005_v46  ;;  %v1326_v59 = vmul.f32 %v2449_v32, %v3606_v50 }
 0x209   :  { %v1414_v28 = vrot.slane %v3759_v45, 1  ;;  %v2451_v62 = vpop.eup %2450  ;;  %v1489_v42 = vsel %vm4049_vm2, %v1488_v43, %v1484_v58  ;;  %v1594_v8 = vrot.slane %v1593_v61, 2  ;;  %vm1722_vm4 = vweird.f32 %v4021_v56 }
 0x20a   :  { %2456 = vtanh.f32 %v1302_v34  ;;  %v2453_v33 = vpop.eup %2452  ;;  %v4071_v36 = vadd.f32 %v1382_v44, %v1381_v51  ;;  %v1719_v0 = vmul.f32 %v4021_v56, %v1718_v17  ;;  %v1358_v52 = vsel %vm525_vm0, %v1326_v59, 0.0  ;;  %vm4103_vm6 = vmor %vm1721_vm3, %vm1722_vm4 }
 0x20b   :  { %v1566_v11 = vmul.f32 %v2451_v62, %v3629_v9  ;;  %v1357_v50 = vadd.f32 %v1356_v13, %v1355_v55  ;;  %v1359_v27 = vrot.slane %v1358_v52, 4  ;;  %v1327_v40 = vmul.f32 %v2453_v33, %v3693_v41 }
 0x20c   :  { %v1418_v19 = vrot.slane %v3768_v4, 2  ;;  %v1619_v39 = vsel %vm525_vm0, %v1569_v12, 0.0  ;;  %v4081_v20 = vadd.f32 %v1414_v28, %v3759_v45  ;;  %v1423_v49 = vadd.f32 %v3856_v3, %v1422_v10 }
 0x20d   :  { %v1598_v30 = vsel %vm525_vm0, %v1566_v11, 0.0  ;;  %v2455_v38 = vpop.eup %2454  ;;  %v1595_v51 = vadd.f32 %v1594_v8, %v1593_v61  ;;  %v1360_v9 = vadd.f32 %v1359_v27, %v1358_v52  ;;  %v1365_v21 = vsel %vm525_vm0, %v1327_v40, 0.0 }
 0x20e   :  { %v1599_v24 = vrot.slane %v1598_v30, 4  ;;  %vm4087_vm5 = vcmp.eq.f32.partialorder %v1725_v22, 8.507059e+37  ;;  %v1366_v53 = vrot.slane %v1365_v21, 4  ;;  %v1567_v26 = vmul.f32 %v2455_v38, %v3738_v31 }
 0x20f   :  { %v1419_v45 = vadd.f32 %v1418_v19, %v3768_v4  ;;  %v1428_v55 = vrot.slane %v3956_v1, 4  ;;  %v1620_v48 = vrot.slane %v1619_v39, 4  ;;  %v1361_v10 = vrot.slane %v1360_v9, 2 }
 0x210   :  { %v2457_v37 = vpop.eup %2456  ;;  %v1600_v2 = vadd.f32 %v1599_v24, %v1598_v30  ;;  %v1424_v25 = vrot.slane %v1423_v49, 2  ;;  %v1367_v43 = vadd.f32 %v1366_v53, %v1365_v21  ;;  %v1605_v23 = vsel %vm525_vm0, %v1567_v26, 0.0 }
 0x211   :  { %v1328_v61 = vmul.f32 %v2457_v37, %v3856_v3  ;;  %v1420_v22 = vrot.slane %v1419_v45, 1  ;;  %v1720_v57 = vadd.f32 %v4021_v56, %v1719_v0  ;;  %v1606_v58 = vrot.slane %v1605_v23, 4 }
 0x212   :  { %v1601_v18 = vrot.slane %v1600_v2, 2  ;;  %v1425_v31 = vadd.f32 %v1424_v25, %v1423_v49  ;;  %v1596_v44 = vrot.slane %v1595_v51, 1  ;;  %v1368_v4 = vrot.slane %v1367_v43, 2 }
 0x213   :  { %v1372_v17 = vsel %vm525_vm0, %v1328_v61, 0.0  ;;  %v1429_v32 = vadd.f32 %v3956_v1, %v1428_v55  ;;  %v1621_v3 = vadd.f32 %v1620_v48, %v1619_v39  ;;  %v1362_v34 = vadd.f32 %v1361_v10, %v1360_v9 }
 0x214   :  { %v1607_v12 = vadd.f32 %v1606_v58, %v1605_v23  ;;  %v1373_v59 = vrot.slane %v1372_v17, 4  ;;  %v4107_v28 = vadd.f32 %v1420_v22, %v1419_v45  ;;  %v1426_v62 = vrot.slane %v1425_v31, 1 }
 0x215   :  { %v1430_v8 = vrot.slane %v1429_v32, 2  ;;  %2458 = vrcp.f32 %v4081_v20  ;;  %v1602_v33 = vadd.f32 %v1601_v18, %v1600_v2  ;;  %v1369_v1 = vadd.f32 %v1368_v4, %v1367_v43 }
 0x216   :  { %v1608_v0 = vrot.slane %v1607_v12, 2  ;;  %v1374_v52 = vadd.f32 %v1373_v59, %v1372_v17  ;;  %v1597_v11 = vadd.f32 %v1596_v44, %v1595_v51  ;;  %v1724_v54 = vsel %vm4103_vm6, %v4021_v56, %v1720_v57 }
 0x217   :  { %v1384_v27 = vrot.slane %v4071_v36, 1  ;;  %v1431_v40 = vadd.f32 %v1430_v8, %v1429_v32  ;;  %v4114_v19 = vmul.f32 %v1489_v42, %v1357_v50  ;;  %v1622_v39 = vrot.slane %v1621_v3, 2 }
 0x218   :  { %v1609_v30 = vadd.f32 %v1608_v0, %v1607_v12  ;;  %v1375_v49 = vrot.slane %v1374_v52, 2  ;;  %v1363_v38 = vrot.slane %v1362_v34, 1  ;;  %v4116_v9 = vadd.f32 %v1426_v62, %v1425_v31 }
 0x219   :  { %v1432_v24 = vrot.slane %v1431_v40, 1  ;;  %2460 = vrcp.f32 %v4107_v28  ;;  %v1729_v51 = vsel %vm4087_vm5, %v4060_v5, %v1724_v54  ;;  %v1603_v21 = vrot.slane %v1602_v33, 1 }
 0x21a   :  { %v1370_v56 = vrot.slane %v1369_v1, 1  ;;  %v1376_v53 = vadd.f32 %v1375_v49, %v1374_v52  ;;  %v4124_v42 = vmul.f32 %v1729_v51, %v1597_v11  ;;  %v4127_v50 = vadd.f32 %v1384_v27, %v4071_v36 }
 0x21b   :  { %v4122_v26 = vpop.eup %2458  ;;  %v4129_v45 = vadd.f32 %v1432_v24, %v1431_v40  ;;  %v1501_v55 = vand.u32 2147483648, %v4081_v20  ;;  %v4132_v37 = vadd.f32 %v1622_v39, %v1621_v3  ;;  %v1610_v48 = vrot.slane %v1609_v30, 1 }
 0x21c   :  { %v1491_v5 = vmul.f32 %v4122_v26, %v4081_v20  ;;  %v1515_v41 = vand.u32 2147483648, %v4107_v28  ;;  %v4137_v10 = vadd.f32 %v1363_v38, %v1362_v34  ;;  %vm1495_vm7 = vweird.f32 %v4081_v20 }
 0x21d   :  { %v1499_v2 = vand.u32 2147483647, %v4081_v20  ;;  %2462 = vrcp.f32 %v4116_v9  ;;  %v4142_v36 = vadd.f32 %v1603_v21, %v1602_v33  ;;  %v4144_v25 = vadd.f32 %v1370_v56, %v1369_v1 }
 0x21e   :  { %v1377_v43 = vrot.slane %v1376_v53, 1  ;;  %v1492_v23 = vsub.f32 1.0, %v1491_v5  ;;  %v1502_v22 = vor.u32 1.1754944e-38, %v1501_v55  ;;  %vm1509_vm8 = vweird.f32 %v4107_v28 }
 0x21f   :  { %v4146_v61 = vpop.eup %2460  ;;  %v1513_v57 = vand.u32 2147483647, %v4107_v28  ;;  %2464 = vrcp.f32 %v4129_v45  ;;  %v4151_v18 = vadd.f32 %v1610_v48, %v1609_v30  ;;  %vm1496_vm9 = vweird.f32 %v4122_v26 }
 0x220   :  { %v1505_v58 = vmul.f32 %v4146_v61, %v4107_v28  ;;  %v4156_v31 = vor.u32 1.1754944e-38, %v1515_v41  ;;  %v1493_v44 = vmul.f32 %v4122_v26, %v1492_v23  ;;  %vm4159_vm10 = vcmp.eq.f32.partialorder %v1499_v2, 8.507059e+37  ;;  %vm4200_vm1 = vmor %vm1495_vm7, %vm1496_vm9 }
 0x221   :  { %vm1523_vm11 = vweird.f32 %v4116_v9  ;;  %v1527_v17 = vand.u32 2147483647, %v4116_v9  ;;  %v1529_v32 = vand.u32 2147483648, %v4116_v9  ;;  %v4166_v13 = vadd.f32 %v1377_v43, %v1376_v53 }
 0x222   :  { %v1506_v3 = vsub.f32 1.0, %v1505_v58  ;;  %v1541_v34 = vand.u32 2147483647, %v4129_v45  ;;  %v1654_v12 = vrot.slane %v3771_v29, 1  ;;  %vm4172_vm12 = vcmp.eq.f32.partialorder %v1513_v57, 8.507059e+37 }
 0x223   :  { %v4170_v59 = vpop.eup %2462  ;;  %vm1537_vm13 = vweird.f32 %v4129_v45  ;;  %v1658_v8 = vrot.slane %v3794_v6, 2  ;;  %v1663_v33 = vadd.f32 %v3827_v35, %v1662_v63  ;;  %v1668_v1 = vrot.slane %v4005_v46, 4 }
 0x224   :  { %v1507_v0 = vmul.f32 %v4146_v61, %v1506_v3  ;;  %vm1510_vm14 = vweird.f32 %v4146_v61  ;;  %v1519_v52 = vmul.f32 %v4170_v59, %v4116_v9  ;;  %v1543_v11 = vand.u32 2147483648, %v4129_v45 }
 0x225   :  { %v2465_v54 = vpop.eup %2464  ;;  %v1494_v27 = vadd.f32 %v4122_v26, %v1493_v44  ;;  %vm4188_vm15 = vcmp.eq.f32.partialorder %v1527_v17, 8.507059e+37  ;;  %v1530_v39 = vor.u32 1.1754944e-38, %v1529_v32  ;;  %v4193_v35 = vadd.f32 %v1654_v12, %v3771_v29  ;;  %vm4216_vm4 = vmor %vm1509_vm8, %vm1510_vm14 }
 0x226   :  { %v1659_v63 = vadd.f32 %v1658_v8, %v3794_v6  ;;  %v1520_v49 = vsub.f32 1.0, %v1519_v52  ;;  %vm1524_vm2 = vweird.f32 %v4170_v59  ;;  %v1533_v38 = vmul.f32 %v2465_v54, %v4129_v45 }
 0x227   :  { %vm4206_vm3 = vcmp.eq.f32.partialorder %v1541_v34, 8.507059e+37  ;;  %v1508_v29 = vadd.f32 %v4146_v61, %v1507_v0  ;;  %v1664_v51 = vrot.slane %v1663_v33, 2  ;;  %v1669_v21 = vadd.f32 %v4005_v46, %v1668_v1  ;;  %vm4232_vm6 = vmor %vm1523_vm11, %vm1524_vm2 }
 0x228   :  { %v1660_v6 = vrot.slane %v1659_v63, 1  ;;  %v1521_v56 = vmul.f32 %v4170_v59, %v1520_v49  ;;  %v1534_v53 = vsub.f32 1.0, %v1533_v38  ;;  %vm1538_vm5 = vweird.f32 %v2465_v54 }
 0x229   :  { %2466 = vrcp.f32 %v4193_v35  ;;  %v1498_v55 = vsel %vm4200_vm1, %v4122_v26, %v1494_v27  ;;  %v1665_v46 = vadd.f32 %v1664_v51, %v1663_v33  ;;  %v1670_v5 = vrot.slane %v1669_v21, 2  ;;  %vm4242_vm7 = vmor %vm1537_vm13, %vm1538_vm5 }
 0x22a   :  { %v4225_v48 = vadd.f32 %v1660_v6, %v1659_v63  ;;  %v1522_v28 = vadd.f32 %v4170_v59, %v1521_v56  ;;  %v1535_v2 = vmul.f32 %v2465_v54, %v1534_v53  ;;  %v1544_v43 = vor.u32 1.1754944e-38, %v1543_v11 }
 0x22b   :  { %v1624_v23 = vrot.slane %v4132_v37, 1  ;;  %v1512_v26 = vsel %vm4216_vm4, %v4146_v61, %v1508_v29  ;;  %v4249_v9 = vadd.f32 %v1617_v7, %v4047_v14  ;;  %v1666_v58 = vrot.slane %v1665_v46, 1 }
 0x22c   :  { %v1671_v44 = vadd.f32 %v1670_v5, %v1669_v21  ;;  %v1503_v17 = vsel %vm4159_vm10, %v1502_v22, %v1498_v55  ;;  %v1536_v32 = vadd.f32 %v2465_v54, %v1535_v2  ;;  %2468 = vrcp.f32 %v4225_v48 }
 0x22d   :  { %v4256_v45 = vadd.f32 %v4124_v42, %v4114_v19  ;;  %v1526_v61 = vsel %vm4232_vm6, %v4170_v59, %v1522_v28  ;;  %v4261_v3 = vadd.f32 %v1666_v58, %v1665_v46  ;;  %v1739_v7 = vand.u32 2147483647, %v4193_v35 }
 0x22e   :  { %v1672_v14 = vrot.slane %v1671_v44, 1  ;;  %v1517_v22 = vsel %vm4172_vm12, %v4156_v31, %v1512_v26  ;;  %v1540_v4 = vsel %vm4242_vm7, %v2465_v54, %v1536_v32  ;;  %v4270_v19 = vmul.f32 %v1503_v17, %v4137_v10  ;;  %v4350_v17 = vld [vmem:[%s4453_s21] ss:$0 sm:$0xff] }
 0x22f   :  { %v2467_v34 = vpop.eup %2466  ;;  %v4273_v42 = vadd.f32 %v1624_v23, %v4132_v37  ;;  %v4276_v12 = vmul.f32 %v1517_v22, %v4144_v25  ;;  %v1741_v33 = vand.u32 2147483648, %v4193_v35  ;;  %v1531_v31 = vsel %vm4188_vm15, %v1530_v39, %v1526_v61 }
 0x230   :  { %v4278_v59 = vadd.f32 %v1672_v14, %v1671_v44  ;;  %v1731_v8 = vmul.f32 %v2467_v34, %v4193_v35  ;;  %vm1735_vm8 = vweird.f32 %v4193_v35  ;;  %vm1749_vm9 = vweird.f32 %v4225_v48 }
 0x231   :  { %2470 = vrcp.f32 %v4261_v3  ;;  %v1545_v37 = vsel %vm4206_vm3, %v1544_v43, %v1540_v4  ;;  %vm1736_vm10 = vweird.f32 %v2467_v34  ;;  %vm4289_vm11 = vcmp.eq.f32.partialorder %v1739_v7, 8.507059e+37 }
 0x232   :  { %v1732_v10 = vsub.f32 1.0, %v1731_v8  ;;  %v2469_v62 = vpop.eup %2468  ;;  %v4294_v1 = vmul.f32 %v1531_v31, %v4166_v13  ;;  %v1753_v0 = vand.u32 2147483647, %v4225_v48  ;;  %v1755_v52 = vand.u32 2147483648, %v4225_v48  ;;  %vm4306_vm12 = vmor %vm1735_vm8, %vm1736_vm10 }
 0x233   :  { %2472 = vrcp.f32 %v4278_v59  ;;  %v1742_v54 = vor.u32 1.1754944e-38, %v1741_v33  ;;  %v1745_v27 = vmul.f32 %v2469_v62, %v4225_v48  ;;  %v1767_v40 = vand.u32 2147483647, %v4261_v3 }
 0x234   :  { %v1733_v11 = vmul.f32 %v2467_v34, %v1732_v10  ;;  %v4302_v39 = vmul.f32 %v1545_v37, %v4127_v50  ;;  %v1769_v63 = vand.u32 2147483648, %v4261_v3  ;;  %v1781_v30 = vand.u32 2147483647, %v4278_v59 }
 0x235   :  { %vm1837_vm13 = vcmask 1041409   ;;  %v1746_v38 = vsub.f32 1.0, %v1745_v27  ;;  %vm1750_vm14 = vweird.f32 %v2469_v62  ;;  %vm4315_vm15 = vcmp.eq.f32.partialorder %v1753_v0, 8.507059e+37 }
 0x236   :  { %v1734_v49 = vadd.f32 %v2467_v34, %v1733_v11  ;;  %v1838_v24 = vsel %vm1837_vm13, %v3922_v16, %v3645_v15  ;;  %v1756_v35 = vor.u32 1.1754944e-38, %v1755_v52  ;;  %vm1763_vm1 = vweird.f32 %v4261_v3  ;;  %vm4330_vm4 = vmor %vm1749_vm9, %vm1750_vm14 }
 0x237   :  { %v2471_v50 = vpop.eup %2470  ;;  %vm1777_vm2 = vweird.f32 %v4278_v59  ;;  %v1747_v51 = vmul.f32 %v2469_v62, %v1746_v38  ;;  %vm4324_vm3 = vcmp.eq.f32.partialorder %v1767_v40, 8.507059e+37  ;;  %v1770_v55 = vor.u32 1.1754944e-38, %v1769_v63 }
 0x238   :  { %v1738_v6 = vsel %vm4306_vm12, %v2467_v34, %v1734_v49  ;;  %v1759_v21 = vmul.f32 %v2471_v50, %v4261_v3  ;;  %vm4334_vm5 = vcmp.eq.f32.partialorder %v1781_v30, 8.507059e+37  ;;  %v1783_v5 = vand.u32 2147483648, %v4278_v59  ;;  %v2279_v3 = vld [vmem:[%s4592_s1] ss:$0 sm:$0xff] }
 0x239   :  { %v2473_v56 = vpop.eup %2472  ;;  %vm1839_vm6 = vcmask 1042434   ;;  %v1748_v28 = vadd.f32 %v2469_v62, %v1747_v51  ;;  %vm1764_vm7 = vweird.f32 %v2471_v50  ;;  %v1743_v48 = vsel %vm4289_vm11, %v1742_v54, %v1738_v6 }
 0x23a   :  { %v1760_v41 = vsub.f32 1.0, %v1759_v21  ;;  %v1773_v2 = vmul.f32 %v2473_v56, %v4278_v59  ;;  %vm1778_vm8 = vweird.f32 %v2473_v56  ;;  %v1957_v43 = vrot.slane %v4019_v47, 1  ;;  %vm4356_vm9 = vmor %vm1763_vm1, %vm1764_vm7  ;;  %v1880_v21 = vld [vmem:[#allocation25 + $0x8] sm:$0xff] }
 0x23b   :  { %v1958_v23 = vrot.slane %v4019_v47, 2  ;;  %v1752_v26 = vsel %vm4330_vm4, %v2469_v62, %v1748_v28  ;;  %v1790_v44 = vmul.f32 %v1743_v48, %v4142_v36  ;;  %v1784_v14 = vor.u32 1.1754944e-38, %v1783_v5  ;;  %vm4369_vm10 = vmor %vm1777_vm2, %vm1778_vm8  ;;  %1902 = vmatpush.msrb.mxu3 %v1880_v21 }
 0x23c   :  { %v1761_v57 = vmul.f32 %v2471_v50, %v1760_v41  ;;  %v1774_v58 = vsub.f32 1.0, %v1773_v2  ;;  %v1757_v32 = vsel %vm4315_vm15, %v1756_v35, %v1752_v26  ;;  %v1972_v7 = vmul.f32 %v3645_v15, %v4019_v47 }
 0x23d   :  { %v1973_v36 = vmul.f32 %v1957_v43, %v3922_v16  ;;  %v1791_v4 = vmul.f32 %v1757_v32, %v4151_v18  ;;  %v1840_v8 = vsel %vm1839_vm6, %v4055_v60, %v1838_v24  ;;  %vm1841_vm11 = vcmask 1043459   ;;  %v2277_v32 = vld [vmem:[#allocation23] ss:$0 sm:$0xff] }
 0x23e   :  { %v1762_v34 = vadd.f32 %v2471_v50, %v1761_v57  ;;  %v1775_v22 = vmul.f32 %v2473_v56, %v1774_v58  ;;  %vm1843_vm12 = vcmask 1044484   ;;  %v1974_v15 = vmul.f32 %v1958_v23, %v4055_v60  ;;  %v1879_v58 = vld [vmem:[#allocation25] sm:$0xff] }
 0x23f   :  { %v1990_v16 = vmul.f32 %v4350_v17, %v1973_v36  ;;  %v1798_v31 = vadd.f32 %v1790_v44, %v4270_v19  ;;  %v1989_v37 = vmul.f32 %v4350_v17, %v1972_v7  ;;  %v1799_v10 = vadd.f32 %v1791_v4, %v4276_v12  ;;  %1903 = vmatpush.msrb.mxu3 %v1879_v58 }
 0x240   :  { %v1766_v33 = vsel %vm4356_vm9, %v2471_v50, %v1762_v34  ;;  %v1776_v18 = vadd.f32 %v2473_v56, %v1775_v22  ;;  %v1991_v25 = vmul.f32 %v4350_v17, %v1974_v15  ;;  %v1842_v52 = vsel %vm1841_vm11, %v4256_v45, %v1840_v8  ;;  %v2278_v34 = vld [vmem:[#allocation26] ss:$0 sm:$0xff] }
 0x241   :  { %v1771_v59 = vsel %vm4324_vm3, %v1770_v55, %v1766_v33  ;;  %v2005_v62 = vrot.slane %v1990_v16, 7  ;;  %vm1845_vm14 = vcmask 1045509   ;;  %vm1847_vm15 = vcmask 1046534  }
 0x242   :  { %v1780_v60 = vsel %vm4369_vm10, %v2473_v56, %v1776_v18  ;;  %v1792_v0 = vmul.f32 %v1771_v59, %v4249_v9  ;;  %v2007_v54 = vrot.slane %v1991_v25, 6  ;;  %v1844_v40 = vsel %vm1843_vm12, %v1798_v31, %v1842_v52  ;;  %v2280_v52 = vld [vmem:[%s4452_s20] ss:$0 sm:$0xff]  ;;  %s2853_s20 = smov [#allocation28]  }
 0x243   :  { %v1785_v19 = vsel %vm4334_vm5, %v1784_v14, %v1780_v60  ;;  %v2006_v11 = vsel %vm1837_vm13, %v2005_v62, %v1989_v37  ;;  %v1846_v13 = vsel %vm1845_vm14, %v1799_v10, %v1844_v40  ;;  %vm1849_vm1 = vcmask 1047559  }
 0x244   :  { %v1793_v12 = vmul.f32 %v1785_v19, %v4273_v42  ;;  %v1800_v27 = vadd.f32 %v1792_v0, %v4294_v1  ;;  %v2008_v9 = vsel %vm1839_vm6, %v2007_v54, %v2006_v11  ;;  %v1959_v38 = vrot.slane %v4019_v47, 3 }
 0x245   :  { %v1960_v29 = vrot.slane %v4019_v47, 4  ;;  %v1961_v20 = vrot.slane %v4019_v47, 5  ;;  %v1962_v55 = vrot.slane %v4019_v47, 6  ;;  %vm2051_vm9 = vcmask 64512  }
 0x246   :  { %v1801_v63 = vadd.f32 %v1793_v12, %v4302_v39  ;;  %v1848_v30 = vsel %vm1847_vm15, %v1800_v27, %v1846_v13  ;;  %v1975_v42 = vmul.f32 %v1959_v38, %v4256_v45  ;;  %v1963_v45 = vrot.slane %v4019_v47, 7  ;;  %v1910_v47 = vld [vmem:[%s4450_s18 + $0x8] sm:$0xff] }
 0x247   :  { %v1976_v35 = vmul.f32 %v1960_v29, %v1798_v31  ;;  %v1977_v56 = vmul.f32 %v1961_v20, %v1799_v10  ;;  %v1978_v41 = vmul.f32 %v1962_v55, %v1800_v27  ;;  %v2024_v13 = vstv %s3010_s17  ;;  %s2066_s17 = sshll.u32 %s2853_s20, 4  ;;  %s2067_s17 = int_to_ptr.vmem [resolvable:$true] %s2066_s17 }
 0x248   :  { %v1850_v49 = vsel %vm1849_vm1, %v1801_v63, %v1848_v30  ;;  %v1992_v1 = vmul.f32 %v4350_v17, %v1975_v42  ;;  %v1979_v5 = vmul.f32 %v1963_v45, %v1801_v63  ;;  %vm2059_vm10 = vcmask 57344  }
 0x249   :  { %2213 = vmatmul.msk.f32.vlgmr.msra.gmra.mxu3 %vm525_vm0, %v1850_v49  ;;  %v1993_v39 = vmul.f32 %v4350_v17, %v1976_v35  ;;  %v1994_v53 = vmul.f32 %v4350_v17, %v1977_v56  ;;  %v1995_v48 = vmul.f32 %v4350_v17, %v1978_v41 }
 0x24a   :  { %v2009_v24 = vrot.slane %v1992_v1, 5  ;;  %v1996_v2 = vmul.f32 %v4350_v17, %v1979_v5  ;;  %1932 = vmatpush.msra.mxu3 %v1910_v47  ;;  %v1909_v17 = vld [vmem:[%s4450_s18] sm:$0xff]  ;;  %v2045_v1 = vlaneseq }
 0x24b   :  { %v2011_v6 = vrot.slane %v1993_v39, 4  ;;  %v2013_v46 = vrot.slane %v1994_v53, 3  ;;  %v2015_v43 = vrot.slane %v1995_v48, 2 }
 0x24c   :  { %v2010_v50 = vsel %vm1841_vm11, %v2009_v24, %v2008_v9  ;;  %v2017_v23 = vrot.slane %v1996_v2, 1  ;;  %1933 = vmatpush.msra.mxu3 %v1909_v17  ;;  %v2046_v35 = vshrl.u32 %v2045_v1, 7  ;;  %v2048_v39 = vand.u32 127, %v2045_v1 }
 0x24d   :  { %v2012_v51 = vsel %vm1843_vm12, %v2011_v6, %v2010_v50 }
 0x24e   :  { %v2014_v28 = vsel %vm1845_vm14, %v2013_v46, %v2012_v51  ;;  %vm2049_vm7 = vcmp.eq.s32.totalorder %v2046_v35, %v2048_v39 }
 0x24f   :  { %v2016_v26 = vsel %vm1847_vm15, %v2015_v43, %v2014_v28 }
 0x250   :  { %v2018_v57 = vsel %vm1849_vm1, %v2017_v23, %v2016_v26 }
 0x27e   :  { %v1826_v44 = vpop.f32.mrf.mxu3 }
 0x2cc   :  { %v1870_v61 = vpop.f32.mrf.mxu3 }
 0x2cd   :  { %v1871_v14 = vadd.f32 %v1870_v61, %v1826_v44 }
 0x2cf   :  { %v1877_v7 = vadd.f32 %v2277_v32, %v1871_v14 }
 0x2d1   :  { %v1878_v36 = vmax.f32 %v1877_v7, 0.0 }
 0x2d3   :  { %2214 = vmatmul.msk.f32.vlgmr.msrb.gmra.mxu3 %vm525_vm0, %v1878_v36 }
 0x356   :  { %v1905_v22 = vpop.f32.mrf.mxu3 }
 0x357   :  { %v1906_v4 = vadd.f32 %v2278_v34, %v1905_v22 }
 0x359   :  { %v1908_v8 = vmax.f32 %v1906_v4, 0.0 }
 0x35b   :  { %2215 = vmatmul.msk.f32.vlgmr.msra.gmra.mxu3 %vm525_vm0, %v1908_v8 }
 0x3de   :  { %v1935_v15 = vpop.f32.mrf.mxu3 }
 0x3df   :  { %v1936_v16 = vadd.f32 %v2279_v3, %v1935_v15 }
 0x3e1   :  { %v2216_v33 = vmul.f32 -1.442695, %v1936_v16 }
 0x3e3   :  { %2474 = vpow2.f32 %v2216_v33 }
 0x3e9   :  { %v2475_v18 = vpop.eup %2474 }
 0x3ea   :  { %v1941_v31 = vadd.f32 1.0, %v2475_v18 }
 0x3ec   :  { %2476 = vrcp.f32 %v1941_v31  ;;  %v1953_v25 = vand.u32 2147483648, %v1941_v31  ;;  %v1951_v60 = vand.u32 2147483647, %v1941_v31  ;;  %vm1947_vm2 = vweird.f32 %v1941_v31 }
 0x3ee   :  { %v1954_v19 = vor.u32 1.1754944e-38, %v1953_v25  ;;  %vm1952_vm4 = vcmp.eq.f32.partialorder %v1951_v60, 8.507059e+37 }
 0x3f2   :  { %v2477_v37 = vpop.eup %2476 }
 0x3f3   :  { %v1943_v59 = vmul.f32 %v2477_v37, %v1941_v31  ;;  %vm1948_vm13 = vweird.f32 %v2477_v37 }
 0x3f4   :  { %vm1949_vm3 = vmor %vm1947_vm2, %vm1948_vm13 }
 0x3f5   :  { %v1944_v10 = vsub.f32 1.0, %v1943_v59 }
 0x3f7   :  { %v1945_v62 = vmul.f32 %v2477_v37, %v1944_v10 }
 0x3f9   :  { %v1946_v0 = vadd.f32 %v2477_v37, %v1945_v62 }
 0x3fb   :  { %v1950_v11 = vsel %vm1949_vm3, %v2477_v37, %v1946_v0 }
 0x3fc   :  { %v1955_v54 = vsel %vm1952_vm4, %v1954_v19, %v1950_v11 }
 0x3fd   :  { %v1984_v12 = vmul.f32 %v2280_v52, %v1955_v54 }
 0x3ff   :  { %v2020_v27 = vadd.f32 %v2018_v57, %v1984_v12 }
 0x401   :  { %v2021_v40 = vsel %vm525_vm0, %v2020_v27, 0.0 }
 0x402   :  { %2022 = vadd.xlane.f32.xlu1 %v2021_v40 }
 0x475   :  { %v2023_v9 = vpop.xlane.xlu1 %2022 }
 0x476   :  { %v2025_v63 = vadd.f32 %v2024_v13, %v2023_v9 }
 0x478   :  { %v2217_v30 = vmul.f32 -1.442695, %v2025_v63 }
 0x47a   :  { %2478 = vpow2.f32 %v2217_v30 }
 0x480   :  { %v2479_v49 = vpop.eup %2478 }
 0x481   :  { %v2029_v38 = vadd.f32 1.0, %v2479_v49 }
 0x483   :  { %2480 = vrcp.f32 %v2029_v38  ;;  %v2041_v29 = vand.u32 2147483648, %v2029_v38  ;;  %v2039_v51 = vand.u32 2147483647, %v2029_v38  ;;  %vm2035_vm0 = vweird.f32 %v2029_v38 }
 0x485   :  { %v2042_v20 = vor.u32 1.1754944e-38, %v2041_v29  ;;  %vm2040_vm8 = vcmp.eq.f32.partialorder %v2039_v51, 8.507059e+37 }
 0x489   :  { %v2481_v42 = vpop.eup %2480 }
 0x48a   :  { %v2031_v24 = vmul.f32 %v2481_v42, %v2029_v38  ;;  %vm2036_vm5 = vweird.f32 %v2481_v42 }
 0x48b   :  { %vm2037_vm6 = vmor %vm2035_vm0, %vm2036_vm5 }
 0x48c   :  { %v2032_v50 = vsub.f32 1.0, %v2031_v24 }
 0x48e   :  { %v2033_v6 = vmul.f32 %v2481_v42, %v2032_v50 }
 0x490   :  { %v2034_v21 = vadd.f32 %v2481_v42, %v2033_v6 }
 0x492   :  { %v2038_v56 = vsel %vm2037_vm6, %v2481_v42, %v2034_v21 }
 0x493   :  { %v2043_v45 = vsel %vm2040_vm8, %v2042_v20, %v2038_v56 }
 0x494   :  { %v2050_v53 = vsel %vm2049_vm7, %v2043_v45, 0.0 }
 0x495   :  { %v2052_v55 = vsel %vm2051_vm9, %v2050_v53, 0.0 }
 0x496   :  { %v2053_v46 = vrot.slane %v2052_v55, 4 }
 0x498   :  { %v2054_v5 = vadd.f32 %v2053_v46, %v2052_v55 }
 0x49a   :  { %v2055_v28 = vrot.slane %v2054_v5, 2 }
 0x49c   :  { %v2056_v41 = vadd.f32 %v2055_v28, %v2054_v5 }
 0x49e   :  { %v2057_v2 = vrot.slane %v2056_v41, 1 }
 0x4a0   :  { %v2058_v48 = vadd.f32 %v2057_v2, %v2056_v41 }
 0x4a2   :  { %2060 = vst.msk [vmem:[#allocation28] sm:$0x1] %vm2059_vm10, %v2058_v48 }
 0x4a3   :  { %2071 = dma.vmem_to_hbm [thread:$0]  %s2067_s17, 16, %s2069_s19, [#allocation14]  }
 0x4a4   :  { %2823 = dma.done.wait [#allocation14], 16  }
 0x4a5   :  { %2824 = vsyncadd [#allocation14], 4294967280 }
 0x4a6   :  { %2076 = vsyncpa [#allocation13], 1 }
 0x4a7   :  { %2077 = vsyncpa [#allocation18], 1 }
 0x4a8   :  { %2078 = vsyncpa [#allocation21], 1 }
 0x4a9   :  { %2079 = vsyncpa [#allocation24], 1 }
 0x4aa   :  { %2080 = vsyncpa [#allocation27], 1 }
 0x4ab   :  { %2081 = vsyncpa [#allocation14], 1 }
 0x4ac   :  { %2082 = vsyncpa [#allocation15], 1 }
 0x4ad   :  { %2083 = vsyncmov [#allocation6] }
 0x4b0   :  { %s2084_s28 = vpop.sfrf %2083 }
 0x4b1   :  { %p2218_p1 = scmp.ne.s32.totalorder %s2084_s28, 0 }
 0x4b3   :  { %2088 = shalt.err (%p2218_p1)  }
 0x4b4   :  { %2090 = vsyncmov [#allocation6 + $0x1] }
 0x4b7   :  { %s2091_s22 = vpop.sfrf %2090 }
 0x4b8   :  { %p2219_p2 = scmp.ne.s32.totalorder %s2091_s22, 0 }
 0x4ba   :  { %2095 = shalt.err (%p2219_p2)  }
 0x4bb   :  { %2097 = vsyncmov [#allocation6 + $0x2] }
 0x4be   :  { %s2098_s3 = vpop.sfrf %2097 }
 0x4bf   :  { %p2220_p3 = scmp.ne.s32.totalorder %s2098_s3, 0 }
 0x4c1   :  { %2102 = shalt.err (%p2220_p3)  }
 0x4c2   :  { %2104 = vsyncmov [#allocation6 + $0x3] }
 0x4c5   :  { %s2105_s15 = vpop.sfrf %2104 }
 0x4c6   :  { %p2221_p4 = scmp.ne.s32.totalorder %s2105_s15, 0 }
 0x4c8   :  { %2109 = shalt.err (%p2221_p4)  }

</bundles_post_ra>
